<compile_context>
chip_gen: v7x
topology: tpu7x:2x2x1
jax: 0.10.0
libtpu: 0.0.40
codegen_flags: <defaults>
</compile_context>

<pallas_src>
import functools

import jax
import jax.numpy as jnp
from jax.experimental import pallas as pl
from jax.experimental.pallas import tpu as pltpu

VMEM = pl.BlockSpec(memory_space=pltpu.MemorySpace.VMEM)


def _lstm_act(gates, c_prev, H):
    """PyTorch LSTM cell non-linearities; gate order i, f, g, o."""
    i_g = jax.nn.sigmoid(gates[:, 0 * H:1 * H])
    f_g = jax.nn.sigmoid(gates[:, 1 * H:2 * H])
    g_g = jnp.tanh(gates[:, 2 * H:3 * H])
    o_g = jax.nn.sigmoid(gates[:, 3 * H:4 * H])
    c_new = f_g * c_prev + i_g * g_g
    h_new = o_g * jnp.tanh(c_new)
    return h_new, c_new


# ------------------------- single fused forward kernel ----------------------
def _seq2seq_kernel(
        ids_flat_ref, ids_tm_ref, gum_ref,
        enc_tab_ref, enc_in_b_ref, dec_tab_ref, dec_in_b_ref,
        enc_wih_ref, enc_whh_ref, enc_b_ref,
        dec_wih_ref, dec_whh_ref, dec_b_ref,
        lab_ref, clsw_ref, clsb_ref,
        w1h_ref, w1c_ref, b1_ref, g_ref, be_ref, w2_ref, b2_ref,
        scores_ref, tokens_ref,
        h_st, c_st, xg_cache,
        *, L, H, V, S, B, mask_id):
    f32 = jnp.float32

    # ------------------------------ encoder ---------------------------------
    h_st[...] = jnp.zeros_like(h_st)
    c_st[...] = jnp.zeros_like(c_st)

    # embedding + Linear + ReLU for ALL encoder positions in one shot
    # (embedding lookup folded into the precomputed enc_tab = embedding @ W).
    vio_flat = jax.lax.broadcasted_iota(jnp.int32, (S * B, V), 1)
    oh_enc = (vio_flat == ids_flat_ref[...]).astype(f32)            # (S*B, V)
    enc_x = jnp.maximum(
        jnp.dot(oh_enc, enc_tab_ref[...], preferred_element_type=f32)
        + enc_in_b_ref[...], 0.0)                                    # (S*B, H)
    # TODO(synk): embedding_to_encoder Dropout(0.1) is an eval-mode identity.
    # layer-0 input-gate contributions for all timesteps, one batched matmul
    enc_xg0 = (jnp.dot(enc_x, enc_wih_ref[0], preferred_element_type=f32)
               + enc_b_ref[0])                                        # (S*B, 4H)

    for j in range(S):                       # static unroll, S is small
        gt = enc_xg0[j * B:(j + 1) * B, :] + jnp.dot(
            h_st[0], enc_whh_ref[0], preferred_element_type=f32)
        h_new, c_new = _lstm_act(gt, c_st[0], H)
        h_st[0] = h_new
        c_st[0] = c_new
        x = h_new
        for l in range(1, L):
            # TODO(synk): nn.LSTM inter-layer Dropout(0.1) is an eval identity.
            gt = (jnp.dot(x, enc_wih_ref[l], preferred_element_type=f32)
                  + jnp.dot(h_st[l], enc_whh_ref[l], preferred_element_type=f32)
                  + enc_b_ref[l])
            h_new, c_new = _lstm_act(gt, c_st[l], H)
            h_st[l] = h_new
            c_st[l] = c_new
            x = h_new
    # h_st / c_st now hold the encoder final state == decoder initial state.

    # ------------------------------ decoder ---------------------------------
    vio = jax.lax.broadcasted_iota(jnp.int32, (B, V), 1)              # hoisted

    def embed_gates(tok):        # (B,1) int32 -> decoder layer-0 gate preact
        oh = (vio == tok).astype(f32)
        xp = jnp.maximum(
            jnp.dot(oh, dec_tab_ref[...], preferred_element_type=f32)
            + dec_in_b_ref[...], 0.0)
        # TODO(synk): embedding_to_decoder Dropout(0.1) is an eval identity.
        return (jnp.dot(xp, dec_wih_ref[0], preferred_element_type=f32)
                + dec_b_ref[0])                                       # (B, 4H)

    tok0 = ids_tm_ref[0]                                              # (B, 1)
    xg_cache[0] = embed_gates(tok0)
    tokens_ref[0] = tok0
    scores_ref[0] = jnp.zeros((B, 1), f32)

    # loop-invariant classifier branch of fc1, hoisted out of the decode loop
    cls = lab_ref[...] * clsw_ref[...] + clsb_ref[...]                # (B, C)
    cls_fc1 = (jnp.dot(cls, w1c_ref[...], preferred_element_type=f32)
               + b1_ref[...])                                         # (B, D)

    def decode_step(t, carry):
        # Reference semantics: decoder(prefix_0..t-1, (h, c)) with CARRIED
        # state, so the growing prefix is re-run each step.  Layer 0 only
        # needs the recurrent half (input half cached in xg_cache).
        def prefix_step(j, c2):
            gt = xg_cache[j] + jnp.dot(h_st[0], dec_whh_ref[0],
                                       preferred_element_type=jnp.float32)
            h_new, c_new = _lstm_act(gt, c_st[0], H)
            h_st[0] = h_new
            c_st[0] = c_new
            x = h_new
            for l in range(1, L):
                # TODO(synk): nn.LSTM inter-layer Dropout(0.1) eval identity.
                gt = (jnp.dot(x, dec_wih_ref[l],
                              preferred_element_type=jnp.float32)
                      + jnp.dot(h_st[l], dec_whh_ref[l],
                                preferred_element_type=jnp.float32)
                      + dec_b_ref[l])
                h_new, c_new = _lstm_act(gt, c_st[l], H)
                h_st[l] = h_new
                c_st[l] = c_new
                x = h_new
            return c2

        jax.lax.fori_loop(0, t, prefix_step, 0)

        # ---- fused head: fc1 + ReLU + LayerNorm + fc2 + log-softmax --------
        dec_top = h_st[L - 1]                                         # (B, H)
        h1 = jnp.maximum(
            jnp.dot(dec_top, w1h_ref[...], preferred_element_type=jnp.float32)
            + cls_fc1, 0.0)
        mu = jnp.mean(h1, axis=-1, keepdims=True)
        var = jnp.mean(jnp.square(h1 - mu), axis=-1, keepdims=True)
        hn = (h1 - mu) * jax.lax.rsqrt(var + 1e-5) * g_ref[...] + be_ref[...]
        # TODO(synk): fully_connected Dropout(0.1) is an eval-mode identity.
        logits = (jnp.dot(hn, w2_ref[...], preferred_element_type=jnp.float32)
                  + b2_ref[...])
        m = jnp.max(logits, axis=-1, keepdims=True)
        logp = logits - (m + jnp.log(jnp.sum(jnp.exp(logits - m),
                                             axis=-1, keepdims=True)))  # (B,V)

        # ---- Gumbel-max categorical sample (host-precomputed noise) --------
        z = logp + gum_ref[t]
        zmax = jnp.max(z, axis=-1, keepdims=True)
        samp = jnp.min(jnp.where(z >= zmax, vio, V),
                       axis=-1, keepdims=True)                        # (B, 1)
        slp = jnp.sum(jnp.where(vio == samp, logp, 0.0),
                      axis=-1, keepdims=True)                         # (B, 1)

        # ---- bookkeeping: time-major dynamic-index writes, no lane masks ---
        cur = ids_tm_ref[t]                                           # (B, 1)
        nxt = jnp.where(cur == mask_id, samp, cur)
        scores_ref[t] = slp
        tokens_ref[t] = nxt
        xg_cache[t] = embed_gates(nxt)
        return carry

    jax.lax.fori_loop(1, S, decode_step, 0)


def seq2seq_pallas(ids_flat, ids_tm, gum, enc_tab, enc_in_b, dec_tab, dec_in_b,
                   enc_wih, enc_whh, enc_b, dec_wih, dec_whh, dec_b,
                   labels, cls_w, cls_b, w1h, w1c, b1, ln_g, ln_b, w2, b2,
                   *, L, H, V, S, B, mask_id):
    kern = functools.partial(_seq2seq_kernel, L=L, H=H, V=V, S=S, B=B,
                             mask_id=mask_id)
    return pl.pallas_call(
        kern,
        out_shape=(jax.ShapeDtypeStruct((S, B, 1), jnp.float32),
                   jax.ShapeDtypeStruct((S, B, 1), jnp.int32)),
        in_specs=[VMEM] * 23,
        out_specs=(VMEM, VMEM),
        scratch_shapes=[
            pltpu.VMEM((L, B, H), jnp.float32),       # carried decoder h
            pltpu.VMEM((L, B, H), jnp.float32),       # carried decoder c
            pltpu.VMEM((S, B, 4 * H), jnp.float32),   # cached layer-0 gate preacts
        ],
    )(ids_flat, ids_tm, gum, enc_tab, enc_in_b, dec_tab, dec_in_b,
      enc_wih, enc_whh, enc_b, dec_wih, dec_whh, dec_b,
      labels, cls_w, cls_b, w1h, w1c, b1, ln_g, ln_b, w2, b2)


# ------------------------------ model wrapper -------------------------------
def init_params(key, cfg):
    V, E, H = cfg["vocab_size"], cfg["embedding_dim"], cfg["hidden"]
    L, C = cfg["num_layers"], cfg["cls_size"]
    D = H + C
    keys = iter(jax.random.split(key, 64))

    def nrm(shape, scale=0.1):
        return (scale * jax.random.normal(next(keys), shape)).astype(jnp.float32)

    def lstm_stack():
        wih, whh, b = [], [], []
        for _ in range(L):
            wih.append(nrm((H, 4 * H)))
            whh.append(nrm((H, 4 * H)))
            b.append(nrm((1, 4 * H)))                 # b_ih + b_hh combined
        return jnp.stack(wih), jnp.stack(whh), jnp.stack(b)

    e_wih, e_whh, e_b = lstm_stack()
    d_wih, d_whh, d_b = lstm_stack()
    return dict(
        embedding=nrm((V, E)).at[0].set(0.0),         # padding_idx=0 row zeroed
        enc_in_w=nrm((E, H)), enc_in_b=nrm((1, H)),
        dec_in_w=nrm((E, H)), dec_in_b=nrm((1, H)),
        enc_wih=e_wih, enc_whh=e_whh, enc_b=e_b,
        dec_wih=d_wih, dec_whh=d_whh, dec_b=d_b,
        cls_w=nrm((1, C)), cls_b=nrm((1, C)),
        fc1_w=nrm((D, D)), fc1_b=nrm((1, D)),
        ln_g=jnp.ones((1, D), jnp.float32), ln_b=jnp.zeros((1, D), jnp.float32),
        fc2_w=nrm((D, V)), fc2_b=nrm((1, V)),
    )


def forward(params, input_ids, attention_mask, classification_labels,
            sample_key, cfg):
    del attention_mask                    # accepted but unused, as in reference
    B, S = input_ids.shape
    V, H = cfg["vocab_size"], cfg["hidden"]
    L, C = cfg["num_layers"], cfg["cls_size"]

    ids = input_ids.astype(jnp.int32)
    ids_tm = jnp.transpose(ids).reshape(S, B, 1)        # time-major tokens
    ids_flat = jnp.transpose(ids).reshape(S * B, 1)

    # embedding lookup folded into the input projections (tiny (V,H) tables)
    enc_tab = jnp.dot(params["embedding"], params["enc_in_w"])
    dec_tab = jnp.dot(params["embedding"], params["dec_in_w"])

    # categorical sampling noise for every decode step (Gumbel-max)
    gum = jax.random.gumbel(sample_key, (S, B, V), dtype=jnp.float32)
    labels = classification_labels.reshape(B, 1).astype(jnp.float32)

    scores_tm, tokens_tm = seq2seq_pallas(
        ids_flat, ids_tm, gum, enc_tab, params["enc_in_b"],
        dec_tab, params["dec_in_b"],
        params["enc_wih"], params["enc_whh"], params["enc_b"],
        params["dec_wih"], params["dec_whh"], params["dec_b"],
        labels, params["cls_w"], params["cls_b"],
        params["fc1_w"][:H], params["fc1_w"][H:], params["fc1_b"],
        params["ln_g"], params["ln_b"], params["fc2_w"], params["fc2_b"],
        L=L, H=H, V=V, S=S, B=B, mask_id=cfg["mask_id"])

    scores = jnp.transpose(scores_tm[:, :, 0])           # (B, S)
    dec_ids = jnp.transpose(tokens_tm[:, :, 0])          # (B, S) int32
    return scores, dec_ids


# ---------------------------------- main ------------------------------------
if __name__ == "__main__":
    cfg = dict(vocab_size=16, embedding_dim=32, hidden=32, num_layers=2,
               cls_size=8, mask_id=3)

    key = jax.random.PRNGKey(0)
    k_param, k_ids, k_lab, k_sample = jax.random.split(key, 4)

    B, S = 2, 8
    params = init_params(k_param, cfg)
    input_ids = jax.random.randint(k_ids, (B, S), 0, cfg["vocab_size"],
                                   dtype=jnp.int32)
    # force a couple of masked positions so the sampling branch is exercised
    input_ids = input_ids.at[0, 3].set(cfg["mask_id"]).at[1, 5].set(cfg["mask_id"])
    attention_mask = jnp.ones((B, S), jnp.int32)
    classification_labels = jax.random.bernoulli(k_lab, 0.5, (B,)).astype(jnp.float32)

    fwd = jax.jit(functools.partial(forward, cfg=cfg))
    scores, dec_ids = fwd(params, input_ids, attention_mask,
                          classification_labels, k_sample)
    jax.block_until_ready((scores, dec_ids))

    assert scores.shape == (B, S) and dec_ids.shape == (B, S)
    assert scores.dtype == jnp.float32 and dec_ids.dtype == jnp.int32
    assert bool(jnp.all(dec_ids[:, 0] == input_ids[:, 0]))
    assert bool(jnp.all(scores[:, 0] == 0.0))
    assert bool(jnp.all(scores <= 0.0))
    keep = input_ids[:, 1:] != cfg["mask_id"]
    assert bool(jnp.all(jnp.where(keep, dec_ids[:, 1:] == input_ids[:, 1:], True)))
    assert bool(jnp.all((dec_ids >= 0) & (dec_ids < cfg["vocab_size"])))
    print("KERNEL_OK")
</pallas_src>

<mosaic_0001>
module attributes {stable_mosaic.version = 11 : i64} {
  func.func @_seq2seq_kernel(%arg0: memref<16x1xi32, #tpu.memory_space<vmem>>, %arg1: memref<8x2x1xi32, #tpu.memory_space<vmem>>, %arg2: memref<8x2x16xf32, #tpu.memory_space<vmem>>, %arg3: memref<16x32xf32, #tpu.memory_space<vmem>>, %arg4: memref<1x32xf32, #tpu.memory_space<vmem>>, %arg5: memref<16x32xf32, #tpu.memory_space<vmem>>, %arg6: memref<1x32xf32, #tpu.memory_space<vmem>>, %arg7: memref<2x32x128xf32, #tpu.memory_space<vmem>>, %arg8: memref<2x32x128xf32, #tpu.memory_space<vmem>>, %arg9: memref<2x1x128xf32, #tpu.memory_space<vmem>>, %arg10: memref<2x32x128xf32, #tpu.memory_space<vmem>>, %arg11: memref<2x32x128xf32, #tpu.memory_space<vmem>>, %arg12: memref<2x1x128xf32, #tpu.memory_space<vmem>>, %arg13: memref<2x1xf32, #tpu.memory_space<vmem>>, %arg14: memref<1x8xf32, #tpu.memory_space<vmem>>, %arg15: memref<1x8xf32, #tpu.memory_space<vmem>>, %arg16: memref<32x40xf32, #tpu.memory_space<vmem>>, %arg17: memref<8x40xf32, #tpu.memory_space<vmem>>, %arg18: memref<1x40xf32, #tpu.memory_space<vmem>>, %arg19: memref<1x40xf32, #tpu.memory_space<vmem>>, %arg20: memref<1x40xf32, #tpu.memory_space<vmem>>, %arg21: memref<40x16xf32, #tpu.memory_space<vmem>>, %arg22: memref<1x16xf32, #tpu.memory_space<vmem>>, %arg23: memref<8x2x1xf32, #tpu.memory_space<vmem>>, %arg24: memref<8x2x1xi32, #tpu.memory_space<vmem>>, %arg25: memref<2x2x32xf32, #tpu.memory_space<vmem>>, %arg26: memref<2x2x32xf32, #tpu.memory_space<vmem>>, %arg27: memref<8x2x128xf32, #tpu.memory_space<vmem>>) attributes {dimension_semantics = [], scalar_prefetch = 0 : i64, scratch_operands = 3 : i64, tpu.core_type = #tpu.core_type<tc>} {
    %cst = arith.constant 0.000000e+00 : f32
    %0 = vector.broadcast %cst : f32 to vector<2x2x32xf32>
    %c0 = arith.constant 0 : index
    %c0_0 = arith.constant 0 : index
    %c0_1 = arith.constant 0 : index
    %1 = vector.load %arg25[%c0, %c0_0, %c0_1] : memref<2x2x32xf32, #tpu.memory_space<vmem>>, vector<2x2x32xf32>
    tpu.vector_store %arg25[%c0, %c0_0, %c0_1], %0 {strides = array<i32>} : memref<2x2x32xf32, #tpu.memory_space<vmem>>, vector<2x2x32xf32>,
    %cst_2 = arith.constant 0.000000e+00 : f32
    %2 = vector.broadcast %cst_2 : f32 to vector<2x2x32xf32>
    %c0_3 = arith.constant 0 : index
    %c0_4 = arith.constant 0 : index
    %c0_5 = arith.constant 0 : index
    %3 = vector.load %arg26[%c0_3, %c0_4, %c0_5] : memref<2x2x32xf32, #tpu.memory_space<vmem>>, vector<2x2x32xf32>
    tpu.vector_store %arg26[%c0_3, %c0_4, %c0_5], %2 {strides = array<i32>} : memref<2x2x32xf32, #tpu.memory_space<vmem>>, vector<2x2x32xf32>,
    %4 = tpu.iota {dimensions = array<i32: 1>} : vector<16x16xi32>
    %c0_6 = arith.constant 0 : index
    %c0_7 = arith.constant 0 : index
    %5 = vector.load %arg0[%c0_6, %c0_7] : memref<16x1xi32, #tpu.memory_space<vmem>>, vector<16x1xi32>
    %6 = vector.broadcast %5 : vector<16x1xi32> to vector<16x16xi32>
    %7 = arith.cmpi eq, %4, %6 : vector<16x16xi32>
    %8 = arith.extui %7 : vector<16x16xi1> to vector<16x16xi32>
    %9 = arith.sitofp %8 : vector<16x16xi32> to vector<16x16xf32>
    %c0_8 = arith.constant 0 : index
    %c0_9 = arith.constant 0 : index
    %10 = vector.load %arg3[%c0_8, %c0_9] : memref<16x32xf32, #tpu.memory_space<vmem>>, vector<16x32xf32>
    %cst_10 = arith.constant dense<0.000000e+00> : vector<16x32xf32>
    %11 = tpu.matmul %9, %10, %cst_10 {dimension_numbers = #tpu.dot_dimension_numbers<[1], [0], [0], [1], [0, 0, 1, 1], [], []>} : vector<16x16xf32>, vector<16x32xf32>, vector<16x32xf32> -> vector<16x32xf32>
    %c0_11 = arith.constant 0 : index
    %c0_12 = arith.constant 0 : index
    %12 = vector.load %arg4[%c0_11, %c0_12] : memref<1x32xf32, #tpu.memory_space<vmem>>, vector<1x32xf32>
    %13 = vector.broadcast %12 : vector<1x32xf32> to vector<16x32xf32>
    %14 = arith.addf %11, %13 : vector<16x32xf32>
    %cst_13 = arith.constant 0.000000e+00 : f32
    %15 = vector.broadcast %cst_13 : f32 to vector<16x32xf32>
    %16 = arith.maximumf %14, %15 : vector<16x32xf32>
    %c0_14 = arith.constant 0 : index
    %c0_15 = arith.constant 0 : index
    %c0_16 = arith.constant 0 : index
    %17 = vector.load %arg7[%c0_14, %c0_15, %c0_16] : memref<2x32x128xf32, #tpu.memory_space<vmem>>, vector<1x32x128xf32>
    %18 = vector.shape_cast %17 : vector<1x32x128xf32> to vector<32x128xf32>
    %cst_17 = arith.constant dense<0.000000e+00> : vector<16x128xf32>
    %19 = tpu.matmul %16, %18, %cst_17 {dimension_numbers = #tpu.dot_dimension_numbers<[1], [0], [0], [1], [0, 0, 1, 1], [], []>} : vector<16x32xf32>, vector<32x128xf32>, vector<16x128xf32> -> vector<16x128xf32>
    %c0_18 = arith.constant 0 : index
    %c0_19 = arith.constant 0 : index
    %c0_20 = arith.constant 0 : index
    %20 = vector.load %arg9[%c0_18, %c0_19, %c0_20] : memref<2x1x128xf32, #tpu.memory_space<vmem>>, vector<1x1x128xf32>
    %21 = vector.shape_cast %20 : vector<1x1x128xf32> to vector<1x128xf32>
    %22 = vector.broadcast %21 : vector<1x128xf32> to vector<16x128xf32>
    %23 = arith.addf %19, %22 : vector<16x128xf32>
    %24 = vector.extract_strided_slice %23 {offsets = [0, 0], sizes = [2, 128], strides = [1, 1]} : vector<16x128xf32> to vector<2x128xf32>
    %c0_21 = arith.constant 0 : index
    %c0_22 = arith.constant 0 : index
    %c0_23 = arith.constant 0 : index
    %25 = vector.load %arg25[%c0_21, %c0_22, %c0_23] : memref<2x2x32xf32, #tpu.memory_space<vmem>>, vector<1x2x32xf32>
    %26 = vector.shape_cast %25 : vector<1x2x32xf32> to vector<2x32xf32>
    %c0_24 = arith.constant 0 : index
    %c0_25 = arith.constant 0 : index
    %c0_26 = arith.constant 0 : index
    %27 = vector.load %arg8[%c0_24, %c0_25, %c0_26] : memref<2x32x128xf32, #tpu.memory_space<vmem>>, vector<1x32x128xf32>
    %28 = vector.shape_cast %27 : vector<1x32x128xf32> to vector<32x128xf32>
    %cst_27 = arith.constant dense<0.000000e+00> : vector<2x128xf32>
    %29 = tpu.matmul %26, %28, %cst_27 {dimension_numbers = #tpu.dot_dimension_numbers<[1], [0], [0], [1], [0, 0, 1, 1], [], []>} : vector<2x32xf32>, vector<32x128xf32>, vector<2x128xf32> -> vector<2x128xf32>
    %30 = arith.addf %24, %29 : vector<2x128xf32>
    %c0_28 = arith.constant 0 : index
    %c0_29 = arith.constant 0 : index
    %c0_30 = arith.constant 0 : index
    %31 = vector.load %arg26[%c0_28, %c0_29, %c0_30] : memref<2x2x32xf32, #tpu.memory_space<vmem>>, vector<1x2x32xf32>
    %32 = vector.shape_cast %31 : vector<1x2x32xf32> to vector<2x32xf32>
    %33 = vector.extract_strided_slice %30 {offsets = [0, 0], sizes = [2, 32], strides = [1, 1]} : vector<2x128xf32> to vector<2x32xf32>
    %34 = arith.negf %33 : vector<2x32xf32>
    %35 = math.exp %34 : vector<2x32xf32>
    %cst_31 = arith.constant 1.000000e+00 : f32
    %36 = vector.broadcast %cst_31 : f32 to vector<2x32xf32>
    %37 = arith.addf %36, %35 : vector<2x32xf32>
    %38 = arith.divf %36, %37 : vector<2x32xf32>
    %39 = vector.extract_strided_slice %30 {offsets = [0, 32], sizes = [2, 32], strides = [1, 1]} : vector<2x128xf32> to vector<2x32xf32>
    %40 = arith.negf %39 : vector<2x32xf32>
    %41 = math.exp %40 : vector<2x32xf32>
    %cst_32 = arith.constant 1.000000e+00 : f32
    %42 = vector.broadcast %cst_32 : f32 to vector<2x32xf32>
    %43 = arith.addf %42, %41 : vector<2x32xf32>
    %44 = arith.divf %42, %43 : vector<2x32xf32>
    %45 = vector.extract_strided_slice %30 {offsets = [0, 64], sizes = [2, 32], strides = [1, 1]} : vector<2x128xf32> to vector<2x32xf32>
    %46 = math.tanh %45 : vector<2x32xf32>
    %47 = vector.extract_strided_slice %30 {offsets = [0, 96], sizes = [2, 32], strides = [1, 1]} : vector<2x128xf32> to vector<2x32xf32>
    %48 = arith.negf %47 : vector<2x32xf32>
    %49 = math.exp %48 : vector<2x32xf32>
    %cst_33 = arith.constant 1.000000e+00 : f32
    %50 = vector.broadcast %cst_33 : f32 to vector<2x32xf32>
    %51 = arith.addf %50, %49 : vector<2x32xf32>
    %52 = arith.divf %50, %51 : vector<2x32xf32>
    %53 = arith.mulf %44, %32 : vector<2x32xf32>
    %54 = arith.mulf %38, %46 : vector<2x32xf32>
    %55 = arith.addf %53, %54 : vector<2x32xf32>
    %56 = math.tanh %55 : vector<2x32xf32>
    %57 = arith.mulf %52, %56 : vector<2x32xf32>
    %c0_34 = arith.constant 0 : index
    %c0_35 = arith.constant 0 : index
    %c0_36 = arith.constant 0 : index
    %58 = vector.load %arg25[%c0_34, %c0_35, %c0_36] : memref<2x2x32xf32, #tpu.memory_space<vmem>>, vector<1x2x32xf32>
    %59 = vector.shape_cast %58 : vector<1x2x32xf32> to vector<2x32xf32>
    %60 = vector.shape_cast %57 : vector<2x32xf32> to vector<1x2x32xf32>
    tpu.vector_store %arg25[%c0_34, %c0_35, %c0_36], %60 {strides = array<i32>} : memref<2x2x32xf32, #tpu.memory_space<vmem>>, vector<1x2x32xf32>,
    %c0_37 = arith.constant 0 : index
    %c0_38 = arith.constant 0 : index
    %c0_39 = arith.constant 0 : index
    %61 = vector.load %arg26[%c0_37, %c0_38, %c0_39] : memref<2x2x32xf32, #tpu.memory_space<vmem>>, vector<1x2x32xf32>
    %62 = vector.shape_cast %61 : vector<1x2x32xf32> to vector<2x32xf32>
    %63 = vector.shape_cast %55 : vector<2x32xf32> to vector<1x2x32xf32>
    tpu.vector_store %arg26[%c0_37, %c0_38, %c0_39], %63 {strides = array<i32>} : memref<2x2x32xf32, #tpu.memory_space<vmem>>, vector<1x2x32xf32>,
    %c1 = arith.constant 1 : index
    %c0_40 = arith.constant 0 : index
    %c0_41 = arith.constant 0 : index
    %64 = vector.load %arg7[%c1, %c0_40, %c0_41] : memref<2x32x128xf32, #tpu.memory_space<vmem>>, vector<1x32x128xf32>
    %65 = vector.shape_cast %64 : vector<1x32x128xf32> to vector<32x128xf32>
    %cst_42 = arith.constant dense<0.000000e+00> : vector<2x128xf32>
    %66 = tpu.matmul %57, %65, %cst_42 {dimension_numbers = #tpu.dot_dimension_numbers<[1], [0], [0], [1], [0, 0, 1, 1], [], []>} : vector<2x32xf32>, vector<32x128xf32>, vector<2x128xf32> -> vector<2x128xf32>
    %c1_43 = arith.constant 1 : index
    %c0_44 = arith.constant 0 : index
    %c0_45 = arith.constant 0 : index
    %67 = vector.load %arg25[%c1_43, %c0_44, %c0_45] : memref<2x2x32xf32, #tpu.memory_space<vmem>>, vector<1x2x32xf32>
    %68 = vector.shape_cast %67 : vector<1x2x32xf32> to vector<2x32xf32>
    %c1_46 = arith.constant 1 : index
    %c0_47 = arith.constant 0 : index
    %c0_48 = arith.constant 0 : index
    %69 = vector.load %arg8[%c1_46, %c0_47, %c0_48] : memref<2x32x128xf32, #tpu.memory_space<vmem>>, vector<1x32x128xf32>
    %70 = vector.shape_cast %69 : vector<1x32x128xf32> to vector<32x128xf32>
    %cst_49 = arith.constant dense<0.000000e+00> : vector<2x128xf32>
    %71 = tpu.matmul %68, %70, %cst_49 {dimension_numbers = #tpu.dot_dimension_numbers<[1], [0], [0], [1], [0, 0, 1, 1], [], []>} : vector<2x32xf32>, vector<32x128xf32>, vector<2x128xf32> -> vector<2x128xf32>
    %72 = arith.addf %66, %71 : vector<2x128xf32>
    %c1_50 = arith.constant 1 : index
    %c0_51 = arith.constant 0 : index
    %c0_52 = arith.constant 0 : index
    %73 = vector.load %arg9[%c1_50, %c0_51, %c0_52] : memref<2x1x128xf32, #tpu.memory_space<vmem>>, vector<1x1x128xf32>
    %74 = vector.shape_cast %73 : vector<1x1x128xf32> to vector<1x128xf32>
    %75 = vector.broadcast %74 : vector<1x128xf32> to vector<2x128xf32>
    %76 = arith.addf %72, %75 : vector<2x128xf32>
    %c1_53 = arith.constant 1 : index
    %c0_54 = arith.constant 0 : index
    %c0_55 = arith.constant 0 : index
    %77 = vector.load %arg26[%c1_53, %c0_54, %c0_55] : memref<2x2x32xf32, #tpu.memory_space<vmem>>, vector<1x2x32xf32>
    %78 = vector.shape_cast %77 : vector<1x2x32xf32> to vector<2x32xf32>
    %79 = vector.extract_strided_slice %76 {offsets = [0, 0], sizes = [2, 32], strides = [1, 1]} : vector<2x128xf32> to vector<2x32xf32>
    %80 = arith.negf %79 : vector<2x32xf32>
    %81 = math.exp %80 : vector<2x32xf32>
    %cst_56 = arith.constant 1.000000e+00 : f32
    %82 = vector.broadcast %cst_56 : f32 to vector<2x32xf32>
    %83 = arith.addf %82, %81 : vector<2x32xf32>
    %84 = arith.divf %82, %83 : vector<2x32xf32>
    %85 = vector.extract_strided_slice %76 {offsets = [0, 32], sizes = [2, 32], strides = [1, 1]} : vector<2x128xf32> to vector<2x32xf32>
    %86 = arith.negf %85 : vector<2x32xf32>
    %87 = math.exp %86 : vector<2x32xf32>
    %cst_57 = arith.constant 1.000000e+00 : f32
    %88 = vector.broadcast %cst_57 : f32 to vector<2x32xf32>
    %89 = arith.addf %88, %87 : vector<2x32xf32>
    %90 = arith.divf %88, %89 : vector<2x32xf32>
    %91 = vector.extract_strided_slice %76 {offsets = [0, 64], sizes = [2, 32], strides = [1, 1]} : vector<2x128xf32> to vector<2x32xf32>
    %92 = math.tanh %91 : vector<2x32xf32>
    %93 = vector.extract_strided_slice %76 {offsets = [0, 96], sizes = [2, 32], strides = [1, 1]} : vector<2x128xf32> to vector<2x32xf32>
    %94 = arith.negf %93 : vector<2x32xf32>
    %95 = math.exp %94 : vector<2x32xf32>
    %cst_58 = arith.constant 1.000000e+00 : f32
    %96 = vector.broadcast %cst_58 : f32 to vector<2x32xf32>
    %97 = arith.addf %96, %95 : vector<2x32xf32>
    %98 = arith.divf %96, %97 : vector<2x32xf32>
    %99 = arith.mulf %90, %78 : vector<2x32xf32>
    %100 = arith.mulf %84, %92 : vector<2x32xf32>
    %101 = arith.addf %99, %100 : vector<2x32xf32>
    %102 = math.tanh %101 : vector<2x32xf32>
    %103 = arith.mulf %98, %102 : vector<2x32xf32>
    %c1_59 = arith.constant 1 : index
    %c0_60 = arith.constant 0 : index
    %c0_61 = arith.constant 0 : index
    %104 = vector.load %arg25[%c1_59, %c0_60, %c0_61] : memref<2x2x32xf32, #tpu.memory_space<vmem>>, vector<1x2x32xf32>
    %105 = vector.shape_cast %104 : vector<1x2x32xf32> to vector<2x32xf32>
    %106 = vector.shape_cast %103 : vector<2x32xf32> to vector<1x2x32xf32>
    tpu.vector_store %arg25[%c1_59, %c0_60, %c0_61], %106 {strides = array<i32>} : memref<2x2x32xf32, #tpu.memory_space<vmem>>, vector<1x2x32xf32>,
    %c1_62 = arith.constant 1 : index
    %c0_63 = arith.constant 0 : index
    %c0_64 = arith.constant 0 : index
    %107 = vector.load %arg26[%c1_62, %c0_63, %c0_64] : memref<2x2x32xf32, #tpu.memory_space<vmem>>, vector<1x2x32xf32>
    %108 = vector.shape_cast %107 : vector<1x2x32xf32> to vector<2x32xf32>
    %109 = vector.shape_cast %101 : vector<2x32xf32> to vector<1x2x32xf32>
    tpu.vector_store %arg26[%c1_62, %c0_63, %c0_64], %109 {strides = array<i32>} : memref<2x2x32xf32, #tpu.memory_space<vmem>>, vector<1x2x32xf32>,
    %110 = vector.extract_strided_slice %23 {offsets = [2, 0], sizes = [2, 128], strides = [1, 1]} : vector<16x128xf32> to vector<2x128xf32>
    %c0_65 = arith.constant 0 : index
    %c0_66 = arith.constant 0 : index
    %c0_67 = arith.constant 0 : index
    %111 = vector.load %arg25[%c0_65, %c0_66, %c0_67] : memref<2x2x32xf32, #tpu.memory_space<vmem>>, vector<1x2x32xf32>
    %112 = vector.shape_cast %111 : vector<1x2x32xf32> to vector<2x32xf32>
    %c0_68 = arith.constant 0 : index
    %c0_69 = arith.constant 0 : index
    %c0_70 = arith.constant 0 : index
    %113 = vector.load %arg8[%c0_68, %c0_69, %c0_70] : memref<2x32x128xf32, #tpu.memory_space<vmem>>, vector<1x32x128xf32>
    %114 = vector.shape_cast %113 : vector<1x32x128xf32> to vector<32x128xf32>
    %cst_71 = arith.constant dense<0.000000e+00> : vector<2x128xf32>
    %115 = tpu.matmul %112, %114, %cst_71 {dimension_numbers = #tpu.dot_dimension_numbers<[1], [0], [0], [1], [0, 0, 1, 1], [], []>} : vector<2x32xf32>, vector<32x128xf32>, vector<2x128xf32> -> vector<2x128xf32>
    %116 = arith.addf %110, %115 : vector<2x128xf32>
    %c0_72 = arith.constant 0 : index
    %c0_73 = arith.constant 0 : index
    %c0_74 = arith.constant 0 : index
    %117 = vector.load %arg26[%c0_72, %c0_73, %c0_74] : memref<2x2x32xf32, #tpu.memory_space<vmem>>, vector<1x2x32xf32>
    %118 = vector.shape_cast %117 : vector<1x2x32xf32> to vector<2x32xf32>
    %119 = vector.extract_strided_slice %116 {offsets = [0, 0], sizes = [2, 32], strides = [1, 1]} : vector<2x128xf32> to vector<2x32xf32>
    %120 = arith.negf %119 : vector<2x32xf32>
    %121 = math.exp %120 : vector<2x32xf32>
    %cst_75 = arith.constant 1.000000e+00 : f32
    %122 = vector.broadcast %cst_75 : f32 to vector<2x32xf32>
    %123 = arith.addf %122, %121 : vector<2x32xf32>
    %124 = arith.divf %122, %123 : vector<2x32xf32>
    %125 = vector.extract_strided_slice %116 {offsets = [0, 32], sizes = [2, 32], strides = [1, 1]} : vector<2x128xf32> to vector<2x32xf32>
    %126 = arith.negf %125 : vector<2x32xf32>
    %127 = math.exp %126 : vector<2x32xf32>
    %cst_76 = arith.constant 1.000000e+00 : f32
    %128 = vector.broadcast %cst_76 : f32 to vector<2x32xf32>
    %129 = arith.addf %128, %127 : vector<2x32xf32>
    %130 = arith.divf %128, %129 : vector<2x32xf32>
    %131 = vector.extract_strided_slice %116 {offsets = [0, 64], sizes = [2, 32], strides = [1, 1]} : vector<2x128xf32> to vector<2x32xf32>
    %132 = math.tanh %131 : vector<2x32xf32>
    %133 = vector.extract_strided_slice %116 {offsets = [0, 96], sizes = [2, 32], strides = [1, 1]} : vector<2x128xf32> to vector<2x32xf32>
    %134 = arith.negf %133 : vector<2x32xf32>
    %135 = math.exp %134 : vector<2x32xf32>
    %cst_77 = arith.constant 1.000000e+00 : f32
    %136 = vector.broadcast %cst_77 : f32 to vector<2x32xf32>
    %137 = arith.addf %136, %135 : vector<2x32xf32>
    %138 = arith.divf %136, %137 : vector<2x32xf32>
    %139 = arith.mulf %130, %118 : vector<2x32xf32>
    %140 = arith.mulf %124, %132 : vector<2x32xf32>
    %141 = arith.addf %139, %140 : vector<2x32xf32>
    %142 = math.tanh %141 : vector<2x32xf32>
    %143 = arith.mulf %138, %142 : vector<2x32xf32>
    %c0_78 = arith.constant 0 : index
    %c0_79 = arith.constant 0 : index
    %c0_80 = arith.constant 0 : index
    %144 = vector.load %arg25[%c0_78, %c0_79, %c0_80] : memref<2x2x32xf32, #tpu.memory_space<vmem>>, vector<1x2x32xf32>
    %145 = vector.shape_cast %144 : vector<1x2x32xf32> to vector<2x32xf32>
    %146 = vector.shape_cast %143 : vector<2x32xf32> to vector<1x2x32xf32>
    tpu.vector_store %arg25[%c0_78, %c0_79, %c0_80], %146 {strides = array<i32>} : memref<2x2x32xf32, #tpu.memory_space<vmem>>, vector<1x2x32xf32>,
    %c0_81 = arith.constant 0 : index
    %c0_82 = arith.constant 0 : index
    %c0_83 = arith.constant 0 : index
    %147 = vector.load %arg26[%c0_81, %c0_82, %c0_83] : memref<2x2x32xf32, #tpu.memory_space<vmem>>, vector<1x2x32xf32>
    %148 = vector.shape_cast %147 : vector<1x2x32xf32> to vector<2x32xf32>
    %149 = vector.shape_cast %141 : vector<2x32xf32> to vector<1x2x32xf32>
    tpu.vector_store %arg26[%c0_81, %c0_82, %c0_83], %149 {strides = array<i32>} : memref<2x2x32xf32, #tpu.memory_space<vmem>>, vector<1x2x32xf32>,
    %c1_84 = arith.constant 1 : index
    %c0_85 = arith.constant 0 : index
    %c0_86 = arith.constant 0 : index
    %150 = vector.load %arg7[%c1_84, %c0_85, %c0_86] : memref<2x32x128xf32, #tpu.memory_space<vmem>>, vector<1x32x128xf32>
    %151 = vector.shape_cast %150 : vector<1x32x128xf32> to vector<32x128xf32>
    %cst_87 = arith.constant dense<0.000000e+00> : vector<2x128xf32>
    %152 = tpu.matmul %143, %151, %cst_87 {dimension_numbers = #tpu.dot_dimension_numbers<[1], [0], [0], [1], [0, 0, 1, 1], [], []>} : vector<2x32xf32>, vector<32x128xf32>, vector<2x128xf32> -> vector<2x128xf32>
    %c1_88 = arith.constant 1 : index
    %c0_89 = arith.constant 0 : index
    %c0_90 = arith.constant 0 : index
    %153 = vector.load %arg25[%c1_88, %c0_89, %c0_90] : memref<2x2x32xf32, #tpu.memory_space<vmem>>, vector<1x2x32xf32>
    %154 = vector.shape_cast %153 : vector<1x2x32xf32> to vector<2x32xf32>
    %c1_91 = arith.constant 1 : index
    %c0_92 = arith.constant 0 : index
    %c0_93 = arith.constant 0 : index
    %155 = vector.load %arg8[%c1_91, %c0_92, %c0_93] : memref<2x32x128xf32, #tpu.memory_space<vmem>>, vector<1x32x128xf32>
    %156 = vector.shape_cast %155 : vector<1x32x128xf32> to vector<32x128xf32>
    %cst_94 = arith.constant dense<0.000000e+00> : vector<2x128xf32>
    %157 = tpu.matmul %154, %156, %cst_94 {dimension_numbers = #tpu.dot_dimension_numbers<[1], [0], [0], [1], [0, 0, 1, 1], [], []>} : vector<2x32xf32>, vector<32x128xf32>, vector<2x128xf32> -> vector<2x128xf32>
    %158 = arith.addf %152, %157 : vector<2x128xf32>
    %c1_95 = arith.constant 1 : index
    %c0_96 = arith.constant 0 : index
    %c0_97 = arith.constant 0 : index
    %159 = vector.load %arg9[%c1_95, %c0_96, %c0_97] : memref<2x1x128xf32, #tpu.memory_space<vmem>>, vector<1x1x128xf32>
    %160 = vector.shape_cast %159 : vector<1x1x128xf32> to vector<1x128xf32>
    %161 = vector.broadcast %160 : vector<1x128xf32> to vector<2x128xf32>
    %162 = arith.addf %158, %161 : vector<2x128xf32>
    %c1_98 = arith.constant 1 : index
    %c0_99 = arith.constant 0 : index
    %c0_100 = arith.constant 0 : index
    %163 = vector.load %arg26[%c1_98, %c0_99, %c0_100] : memref<2x2x32xf32, #tpu.memory_space<vmem>>, vector<1x2x32xf32>
    %164 = vector.shape_cast %163 : vector<1x2x32xf32> to vector<2x32xf32>
    %165 = vector.extract_strided_slice %162 {offsets = [0, 0], sizes = [2, 32], strides = [1, 1]} : vector<2x128xf32> to vector<2x32xf32>
    %166 = arith.negf %165 : vector<2x32xf32>
    %167 = math.exp %166 : vector<2x32xf32>
    %cst_101 = arith.constant 1.000000e+00 : f32
    %168 = vector.broadcast %cst_101 : f32 to vector<2x32xf32>
    %169 = arith.addf %168, %167 : vector<2x32xf32>
    %170 = arith.divf %168, %169 : vector<2x32xf32>
    %171 = vector.extract_strided_slice %162 {offsets = [0, 32], sizes = [2, 32], strides = [1, 1]} : vector<2x128xf32> to vector<2x32xf32>
    %172 = arith.negf %171 : vector<2x32xf32>
    %173 = math.exp %172 : vector<2x32xf32>
    %cst_102 = arith.constant 1.000000e+00 : f32
    %174 = vector.broadcast %cst_102 : f32 to vector<2x32xf32>
    %175 = arith.addf %174, %173 : vector<2x32xf32>
    %176 = arith.divf %174, %175 : vector<2x32xf32>
    %177 = vector.extract_strided_slice %162 {offsets = [0, 64], sizes = [2, 32], strides = [1, 1]} : vector<2x128xf32> to vector<2x32xf32>
    %178 = math.tanh %177 : vector<2x32xf32>
    %179 = vector.extract_strided_slice %162 {offsets = [0, 96], sizes = [2, 32], strides = [1, 1]} : vector<2x128xf32> to vector<2x32xf32>
    %180 = arith.negf %179 : vector<2x32xf32>
    %181 = math.exp %180 : vector<2x32xf32>
    %cst_103 = arith.constant 1.000000e+00 : f32
    %182 = vector.broadcast %cst_103 : f32 to vector<2x32xf32>
    %183 = arith.addf %182, %181 : vector<2x32xf32>
    %184 = arith.divf %182, %183 : vector<2x32xf32>
    %185 = arith.mulf %176, %164 : vector<2x32xf32>
    %186 = arith.mulf %170, %178 : vector<2x32xf32>
    %187 = arith.addf %185, %186 : vector<2x32xf32>
    %188 = math.tanh %187 : vector<2x32xf32>
    %189 = arith.mulf %184, %188 : vector<2x32xf32>
    %c1_104 = arith.constant 1 : index
    %c0_105 = arith.constant 0 : index
    %c0_106 = arith.constant 0 : index
    %190 = vector.load %arg25[%c1_104, %c0_105, %c0_106] : memref<2x2x32xf32, #tpu.memory_space<vmem>>, vector<1x2x32xf32>
    %191 = vector.shape_cast %190 : vector<1x2x32xf32> to vector<2x32xf32>
    %192 = vector.shape_cast %189 : vector<2x32xf32> to vector<1x2x32xf32>
    tpu.vector_store %arg25[%c1_104, %c0_105, %c0_106], %192 {strides = array<i32>} : memref<2x2x32xf32, #tpu.memory_space<vmem>>, vector<1x2x32xf32>,
    %c1_107 = arith.constant 1 : index
    %c0_108 = arith.constant 0 : index
    %c0_109 = arith.constant 0 : index
    %193 = vector.load %arg26[%c1_107, %c0_108, %c0_109] : memref<2x2x32xf32, #tpu.memory_space<vmem>>, vector<1x2x32xf32>
    %194 = vector.shape_cast %193 : vector<1x2x32xf32> to vector<2x32xf32>
    %195 = vector.shape_cast %187 : vector<2x32xf32> to vector<1x2x32xf32>
    tpu.vector_store %arg26[%c1_107, %c0_108, %c0_109], %195 {strides = array<i32>} : memref<2x2x32xf32, #tpu.memory_space<vmem>>, vector<1x2x32xf32>,
    %196 = vector.extract_strided_slice %23 {offsets = [4, 0], sizes = [2, 128], strides = [1, 1]} : vector<16x128xf32> to vector<2x128xf32>
    %c0_110 = arith.constant 0 : index
    %c0_111 = arith.constant 0 : index
    %c0_112 = arith.constant 0 : index
    %197 = vector.load %arg25[%c0_110, %c0_111, %c0_112] : memref<2x2x32xf32, #tpu.memory_space<vmem>>, vector<1x2x32xf32>
    %198 = vector.shape_cast %197 : vector<1x2x32xf32> to vector<2x32xf32>
    %c0_113 = arith.constant 0 : index
    %c0_114 = arith.constant 0 : index
    %c0_115 = arith.constant 0 : index
    %199 = vector.load %arg8[%c0_113, %c0_114, %c0_115] : memref<2x32x128xf32, #tpu.memory_space<vmem>>, vector<1x32x128xf32>
    %200 = vector.shape_cast %199 : vector<1x32x128xf32> to vector<32x128xf32>
    %cst_116 = arith.constant dense<0.000000e+00> : vector<2x128xf32>
    %201 = tpu.matmul %198, %200, %cst_116 {dimension_numbers = #tpu.dot_dimension_numbers<[1], [0], [0], [1], [0, 0, 1, 1], [], []>} : vector<2x32xf32>, vector<32x128xf32>, vector<2x128xf32> -> vector<2x128xf32>
    %202 = arith.addf %196, %201 : vector<2x128xf32>
    %c0_117 = arith.constant 0 : index
    %c0_118 = arith.constant 0 : index
    %c0_119 = arith.constant 0 : index
    %203 = vector.load %arg26[%c0_117, %c0_118, %c0_119] : memref<2x2x32xf32, #tpu.memory_space<vmem>>, vector<1x2x32xf32>
    %204 = vector.shape_cast %203 : vector<1x2x32xf32> to vector<2x32xf32>
    %205 = vector.extract_strided_slice %202 {offsets = [0, 0], sizes = [2, 32], strides = [1, 1]} : vector<2x128xf32> to vector<2x32xf32>
    %206 = arith.negf %205 : vector<2x32xf32>
    %207 = math.exp %206 : vector<2x32xf32>
    %cst_120 = arith.constant 1.000000e+00 : f32
    %208 = vector.broadcast %cst_120 : f32 to vector<2x32xf32>
    %209 = arith.addf %208, %207 : vector<2x32xf32>
    %210 = arith.divf %208, %209 : vector<2x32xf32>
    %211 = vector.extract_strided_slice %202 {offsets = [0, 32], sizes = [2, 32], strides = [1, 1]} : vector<2x128xf32> to vector<2x32xf32>
    %212 = arith.negf %211 : vector<2x32xf32>
    %213 = math.exp %212 : vector<2x32xf32>
    %cst_121 = arith.constant 1.000000e+00 : f32
    %214 = vector.broadcast %cst_121 : f32 to vector<2x32xf32>
    %215 = arith.addf %214, %213 : vector<2x32xf32>
    %216 = arith.divf %214, %215 : vector<2x32xf32>
    %217 = vector.extract_strided_slice %202 {offsets = [0, 64], sizes = [2, 32], strides = [1, 1]} : vector<2x128xf32> to vector<2x32xf32>
    %218 = math.tanh %217 : vector<2x32xf32>
    %219 = vector.extract_strided_slice %202 {offsets = [0, 96], sizes = [2, 32], strides = [1, 1]} : vector<2x128xf32> to vector<2x32xf32>
    %220 = arith.negf %219 : vector<2x32xf32>
    %221 = math.exp %220 : vector<2x32xf32>
    %cst_122 = arith.constant 1.000000e+00 : f32
    %222 = vector.broadcast %cst_122 : f32 to vector<2x32xf32>
    %223 = arith.addf %222, %221 : vector<2x32xf32>
    %224 = arith.divf %222, %223 : vector<2x32xf32>
    %225 = arith.mulf %216, %204 : vector<2x32xf32>
    %226 = arith.mulf %210, %218 : vector<2x32xf32>
    %227 = arith.addf %225, %226 : vector<2x32xf32>
    %228 = math.tanh %227 : vector<2x32xf32>
    %229 = arith.mulf %224, %228 : vector<2x32xf32>
    %c0_123 = arith.constant 0 : index
    %c0_124 = arith.constant 0 : index
    %c0_125 = arith.constant 0 : index
    %230 = vector.load %arg25[%c0_123, %c0_124, %c0_125] : memref<2x2x32xf32, #tpu.memory_space<vmem>>, vector<1x2x32xf32>
    %231 = vector.shape_cast %230 : vector<1x2x32xf32> to vector<2x32xf32>
    %232 = vector.shape_cast %229 : vector<2x32xf32> to vector<1x2x32xf32>
    tpu.vector_store %arg25[%c0_123, %c0_124, %c0_125], %232 {strides = array<i32>} : memref<2x2x32xf32, #tpu.memory_space<vmem>>, vector<1x2x32xf32>,
    %c0_126 = arith.constant 0 : index
    %c0_127 = arith.constant 0 : index
    %c0_128 = arith.constant 0 : index
    %233 = vector.load %arg26[%c0_126, %c0_127, %c0_128] : memref<2x2x32xf32, #tpu.memory_space<vmem>>, vector<1x2x32xf32>
    %234 = vector.shape_cast %233 : vector<1x2x32xf32> to vector<2x32xf32>
    %235 = vector.shape_cast %227 : vector<2x32xf32> to vector<1x2x32xf32>
    tpu.vector_store %arg26[%c0_126, %c0_127, %c0_128], %235 {strides = array<i32>} : memref<2x2x32xf32, #tpu.memory_space<vmem>>, vector<1x2x32xf32>,
    %c1_129 = arith.constant 1 : index
    %c0_130 = arith.constant 0 : index
    %c0_131 = arith.constant 0 : index
    %236 = vector.load %arg7[%c1_129, %c0_130, %c0_131] : memref<2x32x128xf32, #tpu.memory_space<vmem>>, vector<1x32x128xf32>
    %237 = vector.shape_cast %236 : vector<1x32x128xf32> to vector<32x128xf32>
    %cst_132 = arith.constant dense<0.000000e+00> : vector<2x128xf32>
    %238 = tpu.matmul %229, %237, %cst_132 {dimension_numbers = #tpu.dot_dimension_numbers<[1], [0], [0], [1], [0, 0, 1, 1], [], []>} : vector<2x32xf32>, vector<32x128xf32>, vector<2x128xf32> -> vector<2x128xf32>
    %c1_133 = arith.constant 1 : index
    %c0_134 = arith.constant 0 : index
    %c0_135 = arith.constant 0 : index
    %239 = vector.load %arg25[%c1_133, %c0_134, %c0_135] : memref<2x2x32xf32, #tpu.memory_space<vmem>>, vector<1x2x32xf32>
    %240 = vector.shape_cast %239 : vector<1x2x32xf32> to vector<2x32xf32>
    %c1_136 = arith.constant 1 : index
    %c0_137 = arith.constant 0 : index
    %c0_138 = arith.constant 0 : index
    %241 = vector.load %arg8[%c1_136, %c0_137, %c0_138] : memref<2x32x128xf32, #tpu.memory_space<vmem>>, vector<1x32x128xf32>
    %242 = vector.shape_cast %241 : vector<1x32x128xf32> to vector<32x128xf32>
    %cst_139 = arith.constant dense<0.000000e+00> : vector<2x128xf32>
    %243 = tpu.matmul %240, %242, %cst_139 {dimension_numbers = #tpu.dot_dimension_numbers<[1], [0], [0], [1], [0, 0, 1, 1], [], []>} : vector<2x32xf32>, vector<32x128xf32>, vector<2x128xf32> -> vector<2x128xf32>
    %244 = arith.addf %238, %243 : vector<2x128xf32>
    %c1_140 = arith.constant 1 : index
    %c0_141 = arith.constant 0 : index
    %c0_142 = arith.constant 0 : index
    %245 = vector.load %arg9[%c1_140, %c0_141, %c0_142] : memref<2x1x128xf32, #tpu.memory_space<vmem>>, vector<1x1x128xf32>
    %246 = vector.shape_cast %245 : vector<1x1x128xf32> to vector<1x128xf32>
    %247 = vector.broadcast %246 : vector<1x128xf32> to vector<2x128xf32>
    %248 = arith.addf %244, %247 : vector<2x128xf32>
    %c1_143 = arith.constant 1 : index
    %c0_144 = arith.constant 0 : index
    %c0_145 = arith.constant 0 : index
    %249 = vector.load %arg26[%c1_143, %c0_144, %c0_145] : memref<2x2x32xf32, #tpu.memory_space<vmem>>, vector<1x2x32xf32>
    %250 = vector.shape_cast %249 : vector<1x2x32xf32> to vector<2x32xf32>
    %251 = vector.extract_strided_slice %248 {offsets = [0, 0], sizes = [2, 32], strides = [1, 1]} : vector<2x128xf32> to vector<2x32xf32>
    %252 = arith.negf %251 : vector<2x32xf32>
    %253 = math.exp %252 : vector<2x32xf32>
    %cst_146 = arith.constant 1.000000e+00 : f32
    %254 = vector.broadcast %cst_146 : f32 to vector<2x32xf32>
    %255 = arith.addf %254, %253 : vector<2x32xf32>
    %256 = arith.divf %254, %255 : vector<2x32xf32>
    %257 = vector.extract_strided_slice %248 {offsets = [0, 32], sizes = [2, 32], strides = [1, 1]} : vector<2x128xf32> to vector<2x32xf32>
    %258 = arith.negf %257 : vector<2x32xf32>
    %259 = math.exp %258 : vector<2x32xf32>
    %cst_147 = arith.constant 1.000000e+00 : f32
    %260 = vector.broadcast %cst_147 : f32 to vector<2x32xf32>
    %261 = arith.addf %260, %259 : vector<2x32xf32>
    %262 = arith.divf %260, %261 : vector<2x32xf32>
    %263 = vector.extract_strided_slice %248 {offsets = [0, 64], sizes = [2, 32], strides = [1, 1]} : vector<2x128xf32> to vector<2x32xf32>
    %264 = math.tanh %263 : vector<2x32xf32>
    %265 = vector.extract_strided_slice %248 {offsets = [0, 96], sizes = [2, 32], strides = [1, 1]} : vector<2x128xf32> to vector<2x32xf32>
    %266 = arith.negf %265 : vector<2x32xf32>
    %267 = math.exp %266 : vector<2x32xf32>
    %cst_148 = arith.constant 1.000000e+00 : f32
    %268 = vector.broadcast %cst_148 : f32 to vector<2x32xf32>
    %269 = arith.addf %268, %267 : vector<2x32xf32>
    %270 = arith.divf %268, %269 : vector<2x32xf32>
    %271 = arith.mulf %262, %250 : vector<2x32xf32>
    %272 = arith.mulf %256, %264 : vector<2x32xf32>
    %273 = arith.addf %271, %272 : vector<2x32xf32>
    %274 = math.tanh %273 : vector<2x32xf32>
    %275 = arith.mulf %270, %274 : vector<2x32xf32>
    %c1_149 = arith.constant 1 : index
    %c0_150 = arith.constant 0 : index
    %c0_151 = arith.constant 0 : index
    %276 = vector.load %arg25[%c1_149, %c0_150, %c0_151] : memref<2x2x32xf32, #tpu.memory_space<vmem>>, vector<1x2x32xf32>
    %277 = vector.shape_cast %276 : vector<1x2x32xf32> to vector<2x32xf32>
    %278 = vector.shape_cast %275 : vector<2x32xf32> to vector<1x2x32xf32>
    tpu.vector_store %arg25[%c1_149, %c0_150, %c0_151], %278 {strides = array<i32>} : memref<2x2x32xf32, #tpu.memory_space<vmem>>, vector<1x2x32xf32>,
    %c1_152 = arith.constant 1 : index
    %c0_153 = arith.constant 0 : index
    %c0_154 = arith.constant 0 : index
    %279 = vector.load %arg26[%c1_152, %c0_153, %c0_154] : memref<2x2x32xf32, #tpu.memory_space<vmem>>, vector<1x2x32xf32>
    %280 = vector.shape_cast %279 : vector<1x2x32xf32> to vector<2x32xf32>
    %281 = vector.shape_cast %273 : vector<2x32xf32> to vector<1x2x32xf32>
    tpu.vector_store %arg26[%c1_152, %c0_153, %c0_154], %281 {strides = array<i32>} : memref<2x2x32xf32, #tpu.memory_space<vmem>>, vector<1x2x32xf32>,
    %282 = vector.extract_strided_slice %23 {offsets = [6, 0], sizes = [2, 128], strides = [1, 1]} : vector<16x128xf32> to vector<2x128xf32>
    %c0_155 = arith.constant 0 : index
    %c0_156 = arith.constant 0 : index
    %c0_157 = arith.constant 0 : index
    %283 = vector.load %arg25[%c0_155, %c0_156, %c0_157] : memref<2x2x32xf32, #tpu.memory_space<vmem>>, vector<1x2x32xf32>
    %284 = vector.shape_cast %283 : vector<1x2x32xf32> to vector<2x32xf32>
    %c0_158 = arith.constant 0 : index
    %c0_159 = arith.constant 0 : index
    %c0_160 = arith.constant 0 : index
    %285 = vector.load %arg8[%c0_158, %c0_159, %c0_160] : memref<2x32x128xf32, #tpu.memory_space<vmem>>, vector<1x32x128xf32>
    %286 = vector.shape_cast %285 : vector<1x32x128xf32> to vector<32x128xf32>
    %cst_161 = arith.constant dense<0.000000e+00> : vector<2x128xf32>
    %287 = tpu.matmul %284, %286, %cst_161 {dimension_numbers = #tpu.dot_dimension_numbers<[1], [0], [0], [1], [0, 0, 1, 1], [], []>} : vector<2x32xf32>, vector<32x128xf32>, vector<2x128xf32> -> vector<2x128xf32>
    %288 = arith.addf %282, %287 : vector<2x128xf32>
    %c0_162 = arith.constant 0 : index
    %c0_163 = arith.constant 0 : index
    %c0_164 = arith.constant 0 : index
    %289 = vector.load %arg26[%c0_162, %c0_163, %c0_164] : memref<2x2x32xf32, #tpu.memory_space<vmem>>, vector<1x2x32xf32>
    %290 = vector.shape_cast %289 : vector<1x2x32xf32> to vector<2x32xf32>
    %291 = vector.extract_strided_slice %288 {offsets = [0, 0], sizes = [2, 32], strides = [1, 1]} : vector<2x128xf32> to vector<2x32xf32>
    %292 = arith.negf %291 : vector<2x32xf32>
    %293 = math.exp %292 : vector<2x32xf32>
    %cst_165 = arith.constant 1.000000e+00 : f32
    %294 = vector.broadcast %cst_165 : f32 to vector<2x32xf32>
    %295 = arith.addf %294, %293 : vector<2x32xf32>
    %296 = arith.divf %294, %295 : vector<2x32xf32>
    %297 = vector.extract_strided_slice %288 {offsets = [0, 32], sizes = [2, 32], strides = [1, 1]} : vector<2x128xf32> to vector<2x32xf32>
    %298 = arith.negf %297 : vector<2x32xf32>
    %299 = math.exp %298 : vector<2x32xf32>
    %cst_166 = arith.constant 1.000000e+00 : f32
    %300 = vector.broadcast %cst_166 : f32 to vector<2x32xf32>
    %301 = arith.addf %300, %299 : vector<2x32xf32>
    %302 = arith.divf %300, %301 : vector<2x32xf32>
    %303 = vector.extract_strided_slice %288 {offsets = [0, 64], sizes = [2, 32], strides = [1, 1]} : vector<2x128xf32> to vector<2x32xf32>
    %304 = math.tanh %303 : vector<2x32xf32>
    %305 = vector.extract_strided_slice %288 {offsets = [0, 96], sizes = [2, 32], strides = [1, 1]} : vector<2x128xf32> to vector<2x32xf32>
    %306 = arith.negf %305 : vector<2x32xf32>
    %307 = math.exp %306 : vector<2x32xf32>
    %cst_167 = arith.constant 1.000000e+00 : f32
    %308 = vector.broadcast %cst_167 : f32 to vector<2x32xf32>
    %309 = arith.addf %308, %307 : vector<2x32xf32>
    %310 = arith.divf %308, %309 : vector<2x32xf32>
    %311 = arith.mulf %302, %290 : vector<2x32xf32>
    %312 = arith.mulf %296, %304 : vector<2x32xf32>
    %313 = arith.addf %311, %312 : vector<2x32xf32>
    %314 = math.tanh %313 : vector<2x32xf32>
    %315 = arith.mulf %310, %314 : vector<2x32xf32>
    %c0_168 = arith.constant 0 : index
    %c0_169 = arith.constant 0 : index
    %c0_170 = arith.constant 0 : index
    %316 = vector.load %arg25[%c0_168, %c0_169, %c0_170] : memref<2x2x32xf32, #tpu.memory_space<vmem>>, vector<1x2x32xf32>
    %317 = vector.shape_cast %316 : vector<1x2x32xf32> to vector<2x32xf32>
    %318 = vector.shape_cast %315 : vector<2x32xf32> to vector<1x2x32xf32>
    tpu.vector_store %arg25[%c0_168, %c0_169, %c0_170], %318 {strides = array<i32>} : memref<2x2x32xf32, #tpu.memory_space<vmem>>, vector<1x2x32xf32>,
    %c0_171 = arith.constant 0 : index
    %c0_172 = arith.constant 0 : index
    %c0_173 = arith.constant 0 : index
    %319 = vector.load %arg26[%c0_171, %c0_172, %c0_173] : memref<2x2x32xf32, #tpu.memory_space<vmem>>, vector<1x2x32xf32>
    %320 = vector.shape_cast %319 : vector<1x2x32xf32> to vector<2x32xf32>
    %321 = vector.shape_cast %313 : vector<2x32xf32> to vector<1x2x32xf32>
    tpu.vector_store %arg26[%c0_171, %c0_172, %c0_173], %321 {strides = array<i32>} : memref<2x2x32xf32, #tpu.memory_space<vmem>>, vector<1x2x32xf32>,
    %c1_174 = arith.constant 1 : index
    %c0_175 = arith.constant 0 : index
    %c0_176 = arith.constant 0 : index
    %322 = vector.load %arg7[%c1_174, %c0_175, %c0_176] : memref<2x32x128xf32, #tpu.memory_space<vmem>>, vector<1x32x128xf32>
    %323 = vector.shape_cast %322 : vector<1x32x128xf32> to vector<32x128xf32>
    %cst_177 = arith.constant dense<0.000000e+00> : vector<2x128xf32>
    %324 = tpu.matmul %315, %323, %cst_177 {dimension_numbers = #tpu.dot_dimension_numbers<[1], [0], [0], [1], [0, 0, 1, 1], [], []>} : vector<2x32xf32>, vector<32x128xf32>, vector<2x128xf32> -> vector<2x128xf32>
    %c1_178 = arith.constant 1 : index
    %c0_179 = arith.constant 0 : index
    %c0_180 = arith.constant 0 : index
    %325 = vector.load %arg25[%c1_178, %c0_179, %c0_180] : memref<2x2x32xf32, #tpu.memory_space<vmem>>, vector<1x2x32xf32>
    %326 = vector.shape_cast %325 : vector<1x2x32xf32> to vector<2x32xf32>
    %c1_181 = arith.constant 1 : index
    %c0_182 = arith.constant 0 : index
    %c0_183 = arith.constant 0 : index
    %327 = vector.load %arg8[%c1_181, %c0_182, %c0_183] : memref<2x32x128xf32, #tpu.memory_space<vmem>>, vector<1x32x128xf32>
    %328 = vector.shape_cast %327 : vector<1x32x128xf32> to vector<32x128xf32>
    %cst_184 = arith.constant dense<0.000000e+00> : vector<2x128xf32>
    %329 = tpu.matmul %326, %328, %cst_184 {dimension_numbers = #tpu.dot_dimension_numbers<[1], [0], [0], [1], [0, 0, 1, 1], [], []>} : vector<2x32xf32>, vector<32x128xf32>, vector<2x128xf32> -> vector<2x128xf32>
    %330 = arith.addf %324, %329 : vector<2x128xf32>
    %c1_185 = arith.constant 1 : index
    %c0_186 = arith.constant 0 : index
    %c0_187 = arith.constant 0 : index
    %331 = vector.load %arg9[%c1_185, %c0_186, %c0_187] : memref<2x1x128xf32, #tpu.memory_space<vmem>>, vector<1x1x128xf32>
    %332 = vector.shape_cast %331 : vector<1x1x128xf32> to vector<1x128xf32>
    %333 = vector.broadcast %332 : vector<1x128xf32> to vector<2x128xf32>
    %334 = arith.addf %330, %333 : vector<2x128xf32>
    %c1_188 = arith.constant 1 : index
    %c0_189 = arith.constant 0 : index
    %c0_190 = arith.constant 0 : index
    %335 = vector.load %arg26[%c1_188, %c0_189, %c0_190] : memref<2x2x32xf32, #tpu.memory_space<vmem>>, vector<1x2x32xf32>
    %336 = vector.shape_cast %335 : vector<1x2x32xf32> to vector<2x32xf32>
    %337 = vector.extract_strided_slice %334 {offsets = [0, 0], sizes = [2, 32], strides = [1, 1]} : vector<2x128xf32> to vector<2x32xf32>
    %338 = arith.negf %337 : vector<2x32xf32>
    %339 = math.exp %338 : vector<2x32xf32>
    %cst_191 = arith.constant 1.000000e+00 : f32
    %340 = vector.broadcast %cst_191 : f32 to vector<2x32xf32>
    %341 = arith.addf %340, %339 : vector<2x32xf32>
    %342 = arith.divf %340, %341 : vector<2x32xf32>
    %343 = vector.extract_strided_slice %334 {offsets = [0, 32], sizes = [2, 32], strides = [1, 1]} : vector<2x128xf32> to vector<2x32xf32>
    %344 = arith.negf %343 : vector<2x32xf32>
    %345 = math.exp %344 : vector<2x32xf32>
    %cst_192 = arith.constant 1.000000e+00 : f32
    %346 = vector.broadcast %cst_192 : f32 to vector<2x32xf32>
    %347 = arith.addf %346, %345 : vector<2x32xf32>
    %348 = arith.divf %346, %347 : vector<2x32xf32>
    %349 = vector.extract_strided_slice %334 {offsets = [0, 64], sizes = [2, 32], strides = [1, 1]} : vector<2x128xf32> to vector<2x32xf32>
    %350 = math.tanh %349 : vector<2x32xf32>
    %351 = vector.extract_strided_slice %334 {offsets = [0, 96], sizes = [2, 32], strides = [1, 1]} : vector<2x128xf32> to vector<2x32xf32>
    %352 = arith.negf %351 : vector<2x32xf32>
    %353 = math.exp %352 : vector<2x32xf32>
    %cst_193 = arith.constant 1.000000e+00 : f32
    %354 = vector.broadcast %cst_193 : f32 to vector<2x32xf32>
    %355 = arith.addf %354, %353 : vector<2x32xf32>
    %356 = arith.divf %354, %355 : vector<2x32xf32>
    %357 = arith.mulf %348, %336 : vector<2x32xf32>
    %358 = arith.mulf %342, %350 : vector<2x32xf32>
    %359 = arith.addf %357, %358 : vector<2x32xf32>
    %360 = math.tanh %359 : vector<2x32xf32>
    %361 = arith.mulf %356, %360 : vector<2x32xf32>
    %c1_194 = arith.constant 1 : index
    %c0_195 = arith.constant 0 : index
    %c0_196 = arith.constant 0 : index
    %362 = vector.load %arg25[%c1_194, %c0_195, %c0_196] : memref<2x2x32xf32, #tpu.memory_space<vmem>>, vector<1x2x32xf32>
    %363 = vector.shape_cast %362 : vector<1x2x32xf32> to vector<2x32xf32>
    %364 = vector.shape_cast %361 : vector<2x32xf32> to vector<1x2x32xf32>
    tpu.vector_store %arg25[%c1_194, %c0_195, %c0_196], %364 {strides = array<i32>} : memref<2x2x32xf32, #tpu.memory_space<vmem>>, vector<1x2x32xf32>,
    %c1_197 = arith.constant 1 : index
    %c0_198 = arith.constant 0 : index
    %c0_199 = arith.constant 0 : index
    %365 = vector.load %arg26[%c1_197, %c0_198, %c0_199] : memref<2x2x32xf32, #tpu.memory_space<vmem>>, vector<1x2x32xf32>
    %366 = vector.shape_cast %365 : vector<1x2x32xf32> to vector<2x32xf32>
    %367 = vector.shape_cast %359 : vector<2x32xf32> to vector<1x2x32xf32>
    tpu.vector_store %arg26[%c1_197, %c0_198, %c0_199], %367 {strides = array<i32>} : memref<2x2x32xf32, #tpu.memory_space<vmem>>, vector<1x2x32xf32>,
    %368 = vector.extract_strided_slice %23 {offsets = [8, 0], sizes = [2, 128], strides = [1, 1]} : vector<16x128xf32> to vector<2x128xf32>
    %c0_200 = arith.constant 0 : index
    %c0_201 = arith.constant 0 : index
    %c0_202 = arith.constant 0 : index
    %369 = vector.load %arg25[%c0_200, %c0_201, %c0_202] : memref<2x2x32xf32, #tpu.memory_space<vmem>>, vector<1x2x32xf32>
    %370 = vector.shape_cast %369 : vector<1x2x32xf32> to vector<2x32xf32>
    %c0_203 = arith.constant 0 : index
    %c0_204 = arith.constant 0 : index
    %c0_205 = arith.constant 0 : index
    %371 = vector.load %arg8[%c0_203, %c0_204, %c0_205] : memref<2x32x128xf32, #tpu.memory_space<vmem>>, vector<1x32x128xf32>
    %372 = vector.shape_cast %371 : vector<1x32x128xf32> to vector<32x128xf32>
    %cst_206 = arith.constant dense<0.000000e+00> : vector<2x128xf32>
    %373 = tpu.matmul %370, %372, %cst_206 {dimension_numbers = #tpu.dot_dimension_numbers<[1], [0], [0], [1], [0, 0, 1, 1], [], []>} : vector<2x32xf32>, vector<32x128xf32>, vector<2x128xf32> -> vector<2x128xf32>
    %374 = arith.addf %368, %373 : vector<2x128xf32>
    %c0_207 = arith.constant 0 : index
    %c0_208 = arith.constant 0 : index
    %c0_209 = arith.constant 0 : index
    %375 = vector.load %arg26[%c0_207, %c0_208, %c0_209] : memref<2x2x32xf32, #tpu.memory_space<vmem>>, vector<1x2x32xf32>
    %376 = vector.shape_cast %375 : vector<1x2x32xf32> to vector<2x32xf32>
    %377 = vector.extract_strided_slice %374 {offsets = [0, 0], sizes = [2, 32], strides = [1, 1]} : vector<2x128xf32> to vector<2x32xf32>
    %378 = arith.negf %377 : vector<2x32xf32>
    %379 = math.exp %378 : vector<2x32xf32>
    %cst_210 = arith.constant 1.000000e+00 : f32
    %380 = vector.broadcast %cst_210 : f32 to vector<2x32xf32>
    %381 = arith.addf %380, %379 : vector<2x32xf32>
    %382 = arith.divf %380, %381 : vector<2x32xf32>
    %383 = vector.extract_strided_slice %374 {offsets = [0, 32], sizes = [2, 32], strides = [1, 1]} : vector<2x128xf32> to vector<2x32xf32>
    %384 = arith.negf %383 : vector<2x32xf32>
    %385 = math.exp %384 : vector<2x32xf32>
    %cst_211 = arith.constant 1.000000e+00 : f32
    %386 = vector.broadcast %cst_211 : f32 to vector<2x32xf32>
    %387 = arith.addf %386, %385 : vector<2x32xf32>
    %388 = arith.divf %386, %387 : vector<2x32xf32>
    %389 = vector.extract_strided_slice %374 {offsets = [0, 64], sizes = [2, 32], strides = [1, 1]} : vector<2x128xf32> to vector<2x32xf32>
    %390 = math.tanh %389 : vector<2x32xf32>
    %391 = vector.extract_strided_slice %374 {offsets = [0, 96], sizes = [2, 32], strides = [1, 1]} : vector<2x128xf32> to vector<2x32xf32>
    %392 = arith.negf %391 : vector<2x32xf32>
    %393 = math.exp %392 : vector<2x32xf32>
    %cst_212 = arith.constant 1.000000e+00 : f32
    %394 = vector.broadcast %cst_212 : f32 to vector<2x32xf32>
    %395 = arith.addf %394, %393 : vector<2x32xf32>
    %396 = arith.divf %394, %395 : vector<2x32xf32>
    %397 = arith.mulf %388, %376 : vector<2x32xf32>
    %398 = arith.mulf %382, %390 : vector<2x32xf32>
    %399 = arith.addf %397, %398 : vector<2x32xf32>
    %400 = math.tanh %399 : vector<2x32xf32>
    %401 = arith.mulf %396, %400 : vector<2x32xf32>
    %c0_213 = arith.constant 0 : index
    %c0_214 = arith.constant 0 : index
    %c0_215 = arith.constant 0 : index
    %402 = vector.load %arg25[%c0_213, %c0_214, %c0_215] : memref<2x2x32xf32, #tpu.memory_space<vmem>>, vector<1x2x32xf32>
    %403 = vector.shape_cast %402 : vector<1x2x32xf32> to vector<2x32xf32>
    %404 = vector.shape_cast %401 : vector<2x32xf32> to vector<1x2x32xf32>
    tpu.vector_store %arg25[%c0_213, %c0_214, %c0_215], %404 {strides = array<i32>} : memref<2x2x32xf32, #tpu.memory_space<vmem>>, vector<1x2x32xf32>,
    %c0_216 = arith.constant 0 : index
    %c0_217 = arith.constant 0 : index
    %c0_218 = arith.constant 0 : index
    %405 = vector.load %arg26[%c0_216, %c0_217, %c0_218] : memref<2x2x32xf32, #tpu.memory_space<vmem>>, vector<1x2x32xf32>
    %406 = vector.shape_cast %405 : vector<1x2x32xf32> to vector<2x32xf32>
    %407 = vector.shape_cast %399 : vector<2x32xf32> to vector<1x2x32xf32>
    tpu.vector_store %arg26[%c0_216, %c0_217, %c0_218], %407 {strides = array<i32>} : memref<2x2x32xf32, #tpu.memory_space<vmem>>, vector<1x2x32xf32>,
    %c1_219 = arith.constant 1 : index
    %c0_220 = arith.constant 0 : index
    %c0_221 = arith.constant 0 : index
    %408 = vector.load %arg7[%c1_219, %c0_220, %c0_221] : memref<2x32x128xf32, #tpu.memory_space<vmem>>, vector<1x32x128xf32>
    %409 = vector.shape_cast %408 : vector<1x32x128xf32> to vector<32x128xf32>
    %cst_222 = arith.constant dense<0.000000e+00> : vector<2x128xf32>
    %410 = tpu.matmul %401, %409, %cst_222 {dimension_numbers = #tpu.dot_dimension_numbers<[1], [0], [0], [1], [0, 0, 1, 1], [], []>} : vector<2x32xf32>, vector<32x128xf32>, vector<2x128xf32> -> vector<2x128xf32>
    %c1_223 = arith.constant 1 : index
    %c0_224 = arith.constant 0 : index
    %c0_225 = arith.constant 0 : index
    %411 = vector.load %arg25[%c1_223, %c0_224, %c0_225] : memref<2x2x32xf32, #tpu.memory_space<vmem>>, vector<1x2x32xf32>
    %412 = vector.shape_cast %411 : vector<1x2x32xf32> to vector<2x32xf32>
    %c1_226 = arith.constant 1 : index
    %c0_227 = arith.constant 0 : index
    %c0_228 = arith.constant 0 : index
    %413 = vector.load %arg8[%c1_226, %c0_227, %c0_228] : memref<2x32x128xf32, #tpu.memory_space<vmem>>, vector<1x32x128xf32>
    %414 = vector.shape_cast %413 : vector<1x32x128xf32> to vector<32x128xf32>
    %cst_229 = arith.constant dense<0.000000e+00> : vector<2x128xf32>
    %415 = tpu.matmul %412, %414, %cst_229 {dimension_numbers = #tpu.dot_dimension_numbers<[1], [0], [0], [1], [0, 0, 1, 1], [], []>} : vector<2x32xf32>, vector<32x128xf32>, vector<2x128xf32> -> vector<2x128xf32>
    %416 = arith.addf %410, %415 : vector<2x128xf32>
    %c1_230 = arith.constant 1 : index
    %c0_231 = arith.constant 0 : index
    %c0_232 = arith.constant 0 : index
    %417 = vector.load %arg9[%c1_230, %c0_231, %c0_232] : memref<2x1x128xf32, #tpu.memory_space<vmem>>, vector<1x1x128xf32>
    %418 = vector.shape_cast %417 : vector<1x1x128xf32> to vector<1x128xf32>
    %419 = vector.broadcast %418 : vector<1x128xf32> to vector<2x128xf32>
    %420 = arith.addf %416, %419 : vector<2x128xf32>
    %c1_233 = arith.constant 1 : index
    %c0_234 = arith.constant 0 : index
    %c0_235 = arith.constant 0 : index
    %421 = vector.load %arg26[%c1_233, %c0_234, %c0_235] : memref<2x2x32xf32, #tpu.memory_space<vmem>>, vector<1x2x32xf32>
    %422 = vector.shape_cast %421 : vector<1x2x32xf32> to vector<2x32xf32>
    %423 = vector.extract_strided_slice %420 {offsets = [0, 0], sizes = [2, 32], strides = [1, 1]} : vector<2x128xf32> to vector<2x32xf32>
    %424 = arith.negf %423 : vector<2x32xf32>
    %425 = math.exp %424 : vector<2x32xf32>
    %cst_236 = arith.constant 1.000000e+00 : f32
    %426 = vector.broadcast %cst_236 : f32 to vector<2x32xf32>
    %427 = arith.addf %426, %425 : vector<2x32xf32>
    %428 = arith.divf %426, %427 : vector<2x32xf32>
    %429 = vector.extract_strided_slice %420 {offsets = [0, 32], sizes = [2, 32], strides = [1, 1]} : vector<2x128xf32> to vector<2x32xf32>
    %430 = arith.negf %429 : vector<2x32xf32>
    %431 = math.exp %430 : vector<2x32xf32>
    %cst_237 = arith.constant 1.000000e+00 : f32
    %432 = vector.broadcast %cst_237 : f32 to vector<2x32xf32>
    %433 = arith.addf %432, %431 : vector<2x32xf32>
    %434 = arith.divf %432, %433 : vector<2x32xf32>
    %435 = vector.extract_strided_slice %420 {offsets = [0, 64], sizes = [2, 32], strides = [1, 1]} : vector<2x128xf32> to vector<2x32xf32>
    %436 = math.tanh %435 : vector<2x32xf32>
    %437 = vector.extract_strided_slice %420 {offsets = [0, 96], sizes = [2, 32], strides = [1, 1]} : vector<2x128xf32> to vector<2x32xf32>
    %438 = arith.negf %437 : vector<2x32xf32>
    %439 = math.exp %438 : vector<2x32xf32>
    %cst_238 = arith.constant 1.000000e+00 : f32
    %440 = vector.broadcast %cst_238 : f32 to vector<2x32xf32>
    %441 = arith.addf %440, %439 : vector<2x32xf32>
    %442 = arith.divf %440, %441 : vector<2x32xf32>
    %443 = arith.mulf %434, %422 : vector<2x32xf32>
    %444 = arith.mulf %428, %436 : vector<2x32xf32>
    %445 = arith.addf %443, %444 : vector<2x32xf32>
    %446 = math.tanh %445 : vector<2x32xf32>
    %447 = arith.mulf %442, %446 : vector<2x32xf32>
    %c1_239 = arith.constant 1 : index
    %c0_240 = arith.constant 0 : index
    %c0_241 = arith.constant 0 : index
    %448 = vector.load %arg25[%c1_239, %c0_240, %c0_241] : memref<2x2x32xf32, #tpu.memory_space<vmem>>, vector<1x2x32xf32>
    %449 = vector.shape_cast %448 : vector<1x2x32xf32> to vector<2x32xf32>
    %450 = vector.shape_cast %447 : vector<2x32xf32> to vector<1x2x32xf32>
    tpu.vector_store %arg25[%c1_239, %c0_240, %c0_241], %450 {strides = array<i32>} : memref<2x2x32xf32, #tpu.memory_space<vmem>>, vector<1x2x32xf32>,
    %c1_242 = arith.constant 1 : index
    %c0_243 = arith.constant 0 : index
    %c0_244 = arith.constant 0 : index
    %451 = vector.load %arg26[%c1_242, %c0_243, %c0_244] : memref<2x2x32xf32, #tpu.memory_space<vmem>>, vector<1x2x32xf32>
    %452 = vector.shape_cast %451 : vector<1x2x32xf32> to vector<2x32xf32>
    %453 = vector.shape_cast %445 : vector<2x32xf32> to vector<1x2x32xf32>
    tpu.vector_store %arg26[%c1_242, %c0_243, %c0_244], %453 {strides = array<i32>} : memref<2x2x32xf32, #tpu.memory_space<vmem>>, vector<1x2x32xf32>,
    %454 = vector.extract_strided_slice %23 {offsets = [10, 0], sizes = [2, 128], strides = [1, 1]} : vector<16x128xf32> to vector<2x128xf32>
    %c0_245 = arith.constant 0 : index
    %c0_246 = arith.constant 0 : index
    %c0_247 = arith.constant 0 : index
    %455 = vector.load %arg25[%c0_245, %c0_246, %c0_247] : memref<2x2x32xf32, #tpu.memory_space<vmem>>, vector<1x2x32xf32>
    %456 = vector.shape_cast %455 : vector<1x2x32xf32> to vector<2x32xf32>
    %c0_248 = arith.constant 0 : index
    %c0_249 = arith.constant 0 : index
    %c0_250 = arith.constant 0 : index
    %457 = vector.load %arg8[%c0_248, %c0_249, %c0_250] : memref<2x32x128xf32, #tpu.memory_space<vmem>>, vector<1x32x128xf32>
    %458 = vector.shape_cast %457 : vector<1x32x128xf32> to vector<32x128xf32>
    %cst_251 = arith.constant dense<0.000000e+00> : vector<2x128xf32>
    %459 = tpu.matmul %456, %458, %cst_251 {dimension_numbers = #tpu.dot_dimension_numbers<[1], [0], [0], [1], [0, 0, 1, 1], [], []>} : vector<2x32xf32>, vector<32x128xf32>, vector<2x128xf32> -> vector<2x128xf32>
    %460 = arith.addf %454, %459 : vector<2x128xf32>
    %c0_252 = arith.constant 0 : index
    %c0_253 = arith.constant 0 : index
    %c0_254 = arith.constant 0 : index
    %461 = vector.load %arg26[%c0_252, %c0_253, %c0_254] : memref<2x2x32xf32, #tpu.memory_space<vmem>>, vector<1x2x32xf32>
    %462 = vector.shape_cast %461 : vector<1x2x32xf32> to vector<2x32xf32>
    %463 = vector.extract_strided_slice %460 {offsets = [0, 0], sizes = [2, 32], strides = [1, 1]} : vector<2x128xf32> to vector<2x32xf32>
    %464 = arith.negf %463 : vector<2x32xf32>
    %465 = math.exp %464 : vector<2x32xf32>
    %cst_255 = arith.constant 1.000000e+00 : f32
    %466 = vector.broadcast %cst_255 : f32 to vector<2x32xf32>
    %467 = arith.addf %466, %465 : vector<2x32xf32>
    %468 = arith.divf %466, %467 : vector<2x32xf32>
    %469 = vector.extract_strided_slice %460 {offsets = [0, 32], sizes = [2, 32], strides = [1, 1]} : vector<2x128xf32> to vector<2x32xf32>
    %470 = arith.negf %469 : vector<2x32xf32>
    %471 = math.exp %470 : vector<2x32xf32>
    %cst_256 = arith.constant 1.000000e+00 : f32
    %472 = vector.broadcast %cst_256 : f32 to vector<2x32xf32>
    %473 = arith.addf %472, %471 : vector<2x32xf32>
    %474 = arith.divf %472, %473 : vector<2x32xf32>
    %475 = vector.extract_strided_slice %460 {offsets = [0, 64], sizes = [2, 32], strides = [1, 1]} : vector<2x128xf32> to vector<2x32xf32>
    %476 = math.tanh %475 : vector<2x32xf32>
    %477 = vector.extract_strided_slice %460 {offsets = [0, 96], sizes = [2, 32], strides = [1, 1]} : vector<2x128xf32> to vector<2x32xf32>
    %478 = arith.negf %477 : vector<2x32xf32>
    %479 = math.exp %478 : vector<2x32xf32>
    %cst_257 = arith.constant 1.000000e+00 : f32
    %480 = vector.broadcast %cst_257 : f32 to vector<2x32xf32>
    %481 = arith.addf %480, %479 : vector<2x32xf32>
    %482 = arith.divf %480, %481 : vector<2x32xf32>
    %483 = arith.mulf %474, %462 : vector<2x32xf32>
    %484 = arith.mulf %468, %476 : vector<2x32xf32>
    %485 = arith.addf %483, %484 : vector<2x32xf32>
    %486 = math.tanh %485 : vector<2x32xf32>
    %487 = arith.mulf %482, %486 : vector<2x32xf32>
    %c0_258 = arith.constant 0 : index
    %c0_259 = arith.constant 0 : index
    %c0_260 = arith.constant 0 : index
    %488 = vector.load %arg25[%c0_258, %c0_259, %c0_260] : memref<2x2x32xf32, #tpu.memory_space<vmem>>, vector<1x2x32xf32>
    %489 = vector.shape_cast %488 : vector<1x2x32xf32> to vector<2x32xf32>
    %490 = vector.shape_cast %487 : vector<2x32xf32> to vector<1x2x32xf32>
    tpu.vector_store %arg25[%c0_258, %c0_259, %c0_260], %490 {strides = array<i32>} : memref<2x2x32xf32, #tpu.memory_space<vmem>>, vector<1x2x32xf32>,
    %c0_261 = arith.constant 0 : index
    %c0_262 = arith.constant 0 : index
    %c0_263 = arith.constant 0 : index
    %491 = vector.load %arg26[%c0_261, %c0_262, %c0_263] : memref<2x2x32xf32, #tpu.memory_space<vmem>>, vector<1x2x32xf32>
    %492 = vector.shape_cast %491 : vector<1x2x32xf32> to vector<2x32xf32>
    %493 = vector.shape_cast %485 : vector<2x32xf32> to vector<1x2x32xf32>
    tpu.vector_store %arg26[%c0_261, %c0_262, %c0_263], %493 {strides = array<i32>} : memref<2x2x32xf32, #tpu.memory_space<vmem>>, vector<1x2x32xf32>,
    %c1_264 = arith.constant 1 : index
    %c0_265 = arith.constant 0 : index
    %c0_266 = arith.constant 0 : index
    %494 = vector.load %arg7[%c1_264, %c0_265, %c0_266] : memref<2x32x128xf32, #tpu.memory_space<vmem>>, vector<1x32x128xf32>
    %495 = vector.shape_cast %494 : vector<1x32x128xf32> to vector<32x128xf32>
    %cst_267 = arith.constant dense<0.000000e+00> : vector<2x128xf32>
    %496 = tpu.matmul %487, %495, %cst_267 {dimension_numbers = #tpu.dot_dimension_numbers<[1], [0], [0], [1], [0, 0, 1, 1], [], []>} : vector<2x32xf32>, vector<32x128xf32>, vector<2x128xf32> -> vector<2x128xf32>
    %c1_268 = arith.constant 1 : index
    %c0_269 = arith.constant 0 : index
    %c0_270 = arith.constant 0 : index
    %497 = vector.load %arg25[%c1_268, %c0_269, %c0_270] : memref<2x2x32xf32, #tpu.memory_space<vmem>>, vector<1x2x32xf32>
    %498 = vector.shape_cast %497 : vector<1x2x32xf32> to vector<2x32xf32>
    %c1_271 = arith.constant 1 : index
    %c0_272 = arith.constant 0 : index
    %c0_273 = arith.constant 0 : index
    %499 = vector.load %arg8[%c1_271, %c0_272, %c0_273] : memref<2x32x128xf32, #tpu.memory_space<vmem>>, vector<1x32x128xf32>
    %500 = vector.shape_cast %499 : vector<1x32x128xf32> to vector<32x128xf32>
    %cst_274 = arith.constant dense<0.000000e+00> : vector<2x128xf32>
    %501 = tpu.matmul %498, %500, %cst_274 {dimension_numbers = #tpu.dot_dimension_numbers<[1], [0], [0], [1], [0, 0, 1, 1], [], []>} : vector<2x32xf32>, vector<32x128xf32>, vector<2x128xf32> -> vector<2x128xf32>
    %502 = arith.addf %496, %501 : vector<2x128xf32>
    %c1_275 = arith.constant 1 : index
    %c0_276 = arith.constant 0 : index
    %c0_277 = arith.constant 0 : index
    %503 = vector.load %arg9[%c1_275, %c0_276, %c0_277] : memref<2x1x128xf32, #tpu.memory_space<vmem>>, vector<1x1x128xf32>
    %504 = vector.shape_cast %503 : vector<1x1x128xf32> to vector<1x128xf32>
    %505 = vector.broadcast %504 : vector<1x128xf32> to vector<2x128xf32>
    %506 = arith.addf %502, %505 : vector<2x128xf32>
    %c1_278 = arith.constant 1 : index
    %c0_279 = arith.constant 0 : index
    %c0_280 = arith.constant 0 : index
    %507 = vector.load %arg26[%c1_278, %c0_279, %c0_280] : memref<2x2x32xf32, #tpu.memory_space<vmem>>, vector<1x2x32xf32>
    %508 = vector.shape_cast %507 : vector<1x2x32xf32> to vector<2x32xf32>
    %509 = vector.extract_strided_slice %506 {offsets = [0, 0], sizes = [2, 32], strides = [1, 1]} : vector<2x128xf32> to vector<2x32xf32>
    %510 = arith.negf %509 : vector<2x32xf32>
    %511 = math.exp %510 : vector<2x32xf32>
    %cst_281 = arith.constant 1.000000e+00 : f32
    %512 = vector.broadcast %cst_281 : f32 to vector<2x32xf32>
    %513 = arith.addf %512, %511 : vector<2x32xf32>
    %514 = arith.divf %512, %513 : vector<2x32xf32>
    %515 = vector.extract_strided_slice %506 {offsets = [0, 32], sizes = [2, 32], strides = [1, 1]} : vector<2x128xf32> to vector<2x32xf32>
    %516 = arith.negf %515 : vector<2x32xf32>
    %517 = math.exp %516 : vector<2x32xf32>
    %cst_282 = arith.constant 1.000000e+00 : f32
    %518 = vector.broadcast %cst_282 : f32 to vector<2x32xf32>
    %519 = arith.addf %518, %517 : vector<2x32xf32>
    %520 = arith.divf %518, %519 : vector<2x32xf32>
    %521 = vector.extract_strided_slice %506 {offsets = [0, 64], sizes = [2, 32], strides = [1, 1]} : vector<2x128xf32> to vector<2x32xf32>
    %522 = math.tanh %521 : vector<2x32xf32>
    %523 = vector.extract_strided_slice %506 {offsets = [0, 96], sizes = [2, 32], strides = [1, 1]} : vector<2x128xf32> to vector<2x32xf32>
    %524 = arith.negf %523 : vector<2x32xf32>
    %525 = math.exp %524 : vector<2x32xf32>
    %cst_283 = arith.constant 1.000000e+00 : f32
    %526 = vector.broadcast %cst_283 : f32 to vector<2x32xf32>
    %527 = arith.addf %526, %525 : vector<2x32xf32>
    %528 = arith.divf %526, %527 : vector<2x32xf32>
    %529 = arith.mulf %520, %508 : vector<2x32xf32>
    %530 = arith.mulf %514, %522 : vector<2x32xf32>
    %531 = arith.addf %529, %530 : vector<2x32xf32>
    %532 = math.tanh %531 : vector<2x32xf32>
    %533 = arith.mulf %528, %532 : vector<2x32xf32>
    %c1_284 = arith.constant 1 : index
    %c0_285 = arith.constant 0 : index
    %c0_286 = arith.constant 0 : index
    %534 = vector.load %arg25[%c1_284, %c0_285, %c0_286] : memref<2x2x32xf32, #tpu.memory_space<vmem>>, vector<1x2x32xf32>
    %535 = vector.shape_cast %534 : vector<1x2x32xf32> to vector<2x32xf32>
    %536 = vector.shape_cast %533 : vector<2x32xf32> to vector<1x2x32xf32>
    tpu.vector_store %arg25[%c1_284, %c0_285, %c0_286], %536 {strides = array<i32>} : memref<2x2x32xf32, #tpu.memory_space<vmem>>, vector<1x2x32xf32>,
    %c1_287 = arith.constant 1 : index
    %c0_288 = arith.constant 0 : index
    %c0_289 = arith.constant 0 : index
    %537 = vector.load %arg26[%c1_287, %c0_288, %c0_289] : memref<2x2x32xf32, #tpu.memory_space<vmem>>, vector<1x2x32xf32>
    %538 = vector.shape_cast %537 : vector<1x2x32xf32> to vector<2x32xf32>
    %539 = vector.shape_cast %531 : vector<2x32xf32> to vector<1x2x32xf32>
    tpu.vector_store %arg26[%c1_287, %c0_288, %c0_289], %539 {strides = array<i32>} : memref<2x2x32xf32, #tpu.memory_space<vmem>>, vector<1x2x32xf32>,
    %540 = vector.extract_strided_slice %23 {offsets = [12, 0], sizes = [2, 128], strides = [1, 1]} : vector<16x128xf32> to vector<2x128xf32>
    %c0_290 = arith.constant 0 : index
    %c0_291 = arith.constant 0 : index
    %c0_292 = arith.constant 0 : index
    %541 = vector.load %arg25[%c0_290, %c0_291, %c0_292] : memref<2x2x32xf32, #tpu.memory_space<vmem>>, vector<1x2x32xf32>
    %542 = vector.shape_cast %541 : vector<1x2x32xf32> to vector<2x32xf32>
    %c0_293 = arith.constant 0 : index
    %c0_294 = arith.constant 0 : index
    %c0_295 = arith.constant 0 : index
    %543 = vector.load %arg8[%c0_293, %c0_294, %c0_295] : memref<2x32x128xf32, #tpu.memory_space<vmem>>, vector<1x32x128xf32>
    %544 = vector.shape_cast %543 : vector<1x32x128xf32> to vector<32x128xf32>
    %cst_296 = arith.constant dense<0.000000e+00> : vector<2x128xf32>
    %545 = tpu.matmul %542, %544, %cst_296 {dimension_numbers = #tpu.dot_dimension_numbers<[1], [0], [0], [1], [0, 0, 1, 1], [], []>} : vector<2x32xf32>, vector<32x128xf32>, vector<2x128xf32> -> vector<2x128xf32>
    %546 = arith.addf %540, %545 : vector<2x128xf32>
    %c0_297 = arith.constant 0 : index
    %c0_298 = arith.constant 0 : index
    %c0_299 = arith.constant 0 : index
    %547 = vector.load %arg26[%c0_297, %c0_298, %c0_299] : memref<2x2x32xf32, #tpu.memory_space<vmem>>, vector<1x2x32xf32>
    %548 = vector.shape_cast %547 : vector<1x2x32xf32> to vector<2x32xf32>
    %549 = vector.extract_strided_slice %546 {offsets = [0, 0], sizes = [2, 32], strides = [1, 1]} : vector<2x128xf32> to vector<2x32xf32>
    %550 = arith.negf %549 : vector<2x32xf32>
    %551 = math.exp %550 : vector<2x32xf32>
    %cst_300 = arith.constant 1.000000e+00 : f32
    %552 = vector.broadcast %cst_300 : f32 to vector<2x32xf32>
    %553 = arith.addf %552, %551 : vector<2x32xf32>
    %554 = arith.divf %552, %553 : vector<2x32xf32>
    %555 = vector.extract_strided_slice %546 {offsets = [0, 32], sizes = [2, 32], strides = [1, 1]} : vector<2x128xf32> to vector<2x32xf32>
    %556 = arith.negf %555 : vector<2x32xf32>
    %557 = math.exp %556 : vector<2x32xf32>
    %cst_301 = arith.constant 1.000000e+00 : f32
    %558 = vector.broadcast %cst_301 : f32 to vector<2x32xf32>
    %559 = arith.addf %558, %557 : vector<2x32xf32>
    %560 = arith.divf %558, %559 : vector<2x32xf32>
    %561 = vector.extract_strided_slice %546 {offsets = [0, 64], sizes = [2, 32], strides = [1, 1]} : vector<2x128xf32> to vector<2x32xf32>
    %562 = math.tanh %561 : vector<2x32xf32>
    %563 = vector.extract_strided_slice %546 {offsets = [0, 96], sizes = [2, 32], strides = [1, 1]} : vector<2x128xf32> to vector<2x32xf32>
    %564 = arith.negf %563 : vector<2x32xf32>
    %565 = math.exp %564 : vector<2x32xf32>
    %cst_302 = arith.constant 1.000000e+00 : f32
    %566 = vector.broadcast %cst_302 : f32 to vector<2x32xf32>
    %567 = arith.addf %566, %565 : vector<2x32xf32>
    %568 = arith.divf %566, %567 : vector<2x32xf32>
    %569 = arith.mulf %560, %548 : vector<2x32xf32>
    %570 = arith.mulf %554, %562 : vector<2x32xf32>
    %571 = arith.addf %569, %570 : vector<2x32xf32>
    %572 = math.tanh %571 : vector<2x32xf32>
    %573 = arith.mulf %568, %572 : vector<2x32xf32>
    %c0_303 = arith.constant 0 : index
    %c0_304 = arith.constant 0 : index
    %c0_305 = arith.constant 0 : index
    %574 = vector.load %arg25[%c0_303, %c0_304, %c0_305] : memref<2x2x32xf32, #tpu.memory_space<vmem>>, vector<1x2x32xf32>
    %575 = vector.shape_cast %574 : vector<1x2x32xf32> to vector<2x32xf32>
    %576 = vector.shape_cast %573 : vector<2x32xf32> to vector<1x2x32xf32>
    tpu.vector_store %arg25[%c0_303, %c0_304, %c0_305], %576 {strides = array<i32>} : memref<2x2x32xf32, #tpu.memory_space<vmem>>, vector<1x2x32xf32>,
    %c0_306 = arith.constant 0 : index
    %c0_307 = arith.constant 0 : index
    %c0_308 = arith.constant 0 : index
    %577 = vector.load %arg26[%c0_306, %c0_307, %c0_308] : memref<2x2x32xf32, #tpu.memory_space<vmem>>, vector<1x2x32xf32>
    %578 = vector.shape_cast %577 : vector<1x2x32xf32> to vector<2x32xf32>
    %579 = vector.shape_cast %571 : vector<2x32xf32> to vector<1x2x32xf32>
    tpu.vector_store %arg26[%c0_306, %c0_307, %c0_308], %579 {strides = array<i32>} : memref<2x2x32xf32, #tpu.memory_space<vmem>>, vector<1x2x32xf32>,
    %c1_309 = arith.constant 1 : index
    %c0_310 = arith.constant 0 : index
    %c0_311 = arith.constant 0 : index
    %580 = vector.load %arg7[%c1_309, %c0_310, %c0_311] : memref<2x32x128xf32, #tpu.memory_space<vmem>>, vector<1x32x128xf32>
    %581 = vector.shape_cast %580 : vector<1x32x128xf32> to vector<32x128xf32>
    %cst_312 = arith.constant dense<0.000000e+00> : vector<2x128xf32>
    %582 = tpu.matmul %573, %581, %cst_312 {dimension_numbers = #tpu.dot_dimension_numbers<[1], [0], [0], [1], [0, 0, 1, 1], [], []>} : vector<2x32xf32>, vector<32x128xf32>, vector<2x128xf32> -> vector<2x128xf32>
    %c1_313 = arith.constant 1 : index
    %c0_314 = arith.constant 0 : index
    %c0_315 = arith.constant 0 : index
    %583 = vector.load %arg25[%c1_313, %c0_314, %c0_315] : memref<2x2x32xf32, #tpu.memory_space<vmem>>, vector<1x2x32xf32>
    %584 = vector.shape_cast %583 : vector<1x2x32xf32> to vector<2x32xf32>
    %c1_316 = arith.constant 1 : index
    %c0_317 = arith.constant 0 : index
    %c0_318 = arith.constant 0 : index
    %585 = vector.load %arg8[%c1_316, %c0_317, %c0_318] : memref<2x32x128xf32, #tpu.memory_space<vmem>>, vector<1x32x128xf32>
    %586 = vector.shape_cast %585 : vector<1x32x128xf32> to vector<32x128xf32>
    %cst_319 = arith.constant dense<0.000000e+00> : vector<2x128xf32>
    %587 = tpu.matmul %584, %586, %cst_319 {dimension_numbers = #tpu.dot_dimension_numbers<[1], [0], [0], [1], [0, 0, 1, 1], [], []>} : vector<2x32xf32>, vector<32x128xf32>, vector<2x128xf32> -> vector<2x128xf32>
    %588 = arith.addf %582, %587 : vector<2x128xf32>
    %c1_320 = arith.constant 1 : index
    %c0_321 = arith.constant 0 : index
    %c0_322 = arith.constant 0 : index
    %589 = vector.load %arg9[%c1_320, %c0_321, %c0_322] : memref<2x1x128xf32, #tpu.memory_space<vmem>>, vector<1x1x128xf32>
    %590 = vector.shape_cast %589 : vector<1x1x128xf32> to vector<1x128xf32>
    %591 = vector.broadcast %590 : vector<1x128xf32> to vector<2x128xf32>
    %592 = arith.addf %588, %591 : vector<2x128xf32>
    %c1_323 = arith.constant 1 : index
    %c0_324 = arith.constant 0 : index
    %c0_325 = arith.constant 0 : index
    %593 = vector.load %arg26[%c1_323, %c0_324, %c0_325] : memref<2x2x32xf32, #tpu.memory_space<vmem>>, vector<1x2x32xf32>
    %594 = vector.shape_cast %593 : vector<1x2x32xf32> to vector<2x32xf32>
    %595 = vector.extract_strided_slice %592 {offsets = [0, 0], sizes = [2, 32], strides = [1, 1]} : vector<2x128xf32> to vector<2x32xf32>
    %596 = arith.negf %595 : vector<2x32xf32>
    %597 = math.exp %596 : vector<2x32xf32>
    %cst_326 = arith.constant 1.000000e+00 : f32
    %598 = vector.broadcast %cst_326 : f32 to vector<2x32xf32>
    %599 = arith.addf %598, %597 : vector<2x32xf32>
    %600 = arith.divf %598, %599 : vector<2x32xf32>
    %601 = vector.extract_strided_slice %592 {offsets = [0, 32], sizes = [2, 32], strides = [1, 1]} : vector<2x128xf32> to vector<2x32xf32>
    %602 = arith.negf %601 : vector<2x32xf32>
    %603 = math.exp %602 : vector<2x32xf32>
    %cst_327 = arith.constant 1.000000e+00 : f32
    %604 = vector.broadcast %cst_327 : f32 to vector<2x32xf32>
    %605 = arith.addf %604, %603 : vector<2x32xf32>
    %606 = arith.divf %604, %605 : vector<2x32xf32>
    %607 = vector.extract_strided_slice %592 {offsets = [0, 64], sizes = [2, 32], strides = [1, 1]} : vector<2x128xf32> to vector<2x32xf32>
    %608 = math.tanh %607 : vector<2x32xf32>
    %609 = vector.extract_strided_slice %592 {offsets = [0, 96], sizes = [2, 32], strides = [1, 1]} : vector<2x128xf32> to vector<2x32xf32>
    %610 = arith.negf %609 : vector<2x32xf32>
    %611 = math.exp %610 : vector<2x32xf32>
    %cst_328 = arith.constant 1.000000e+00 : f32
    %612 = vector.broadcast %cst_328 : f32 to vector<2x32xf32>
    %613 = arith.addf %612, %611 : vector<2x32xf32>
    %614 = arith.divf %612, %613 : vector<2x32xf32>
    %615 = arith.mulf %606, %594 : vector<2x32xf32>
    %616 = arith.mulf %600, %608 : vector<2x32xf32>
    %617 = arith.addf %615, %616 : vector<2x32xf32>
    %618 = math.tanh %617 : vector<2x32xf32>
    %619 = arith.mulf %614, %618 : vector<2x32xf32>
    %c1_329 = arith.constant 1 : index
    %c0_330 = arith.constant 0 : index
    %c0_331 = arith.constant 0 : index
    %620 = vector.load %arg25[%c1_329, %c0_330, %c0_331] : memref<2x2x32xf32, #tpu.memory_space<vmem>>, vector<1x2x32xf32>
    %621 = vector.shape_cast %620 : vector<1x2x32xf32> to vector<2x32xf32>
    %622 = vector.shape_cast %619 : vector<2x32xf32> to vector<1x2x32xf32>
    tpu.vector_store %arg25[%c1_329, %c0_330, %c0_331], %622 {strides = array<i32>} : memref<2x2x32xf32, #tpu.memory_space<vmem>>, vector<1x2x32xf32>,
    %c1_332 = arith.constant 1 : index
    %c0_333 = arith.constant 0 : index
    %c0_334 = arith.constant 0 : index
    %623 = vector.load %arg26[%c1_332, %c0_333, %c0_334] : memref<2x2x32xf32, #tpu.memory_space<vmem>>, vector<1x2x32xf32>
    %624 = vector.shape_cast %623 : vector<1x2x32xf32> to vector<2x32xf32>
    %625 = vector.shape_cast %617 : vector<2x32xf32> to vector<1x2x32xf32>
    tpu.vector_store %arg26[%c1_332, %c0_333, %c0_334], %625 {strides = array<i32>} : memref<2x2x32xf32, #tpu.memory_space<vmem>>, vector<1x2x32xf32>,
    %626 = vector.extract_strided_slice %23 {offsets = [14, 0], sizes = [2, 128], strides = [1, 1]} : vector<16x128xf32> to vector<2x128xf32>
    %c0_335 = arith.constant 0 : index
    %c0_336 = arith.constant 0 : index
    %c0_337 = arith.constant 0 : index
    %627 = vector.load %arg25[%c0_335, %c0_336, %c0_337] : memref<2x2x32xf32, #tpu.memory_space<vmem>>, vector<1x2x32xf32>
    %628 = vector.shape_cast %627 : vector<1x2x32xf32> to vector<2x32xf32>
    %c0_338 = arith.constant 0 : index
    %c0_339 = arith.constant 0 : index
    %c0_340 = arith.constant 0 : index
    %629 = vector.load %arg8[%c0_338, %c0_339, %c0_340] : memref<2x32x128xf32, #tpu.memory_space<vmem>>, vector<1x32x128xf32>
    %630 = vector.shape_cast %629 : vector<1x32x128xf32> to vector<32x128xf32>
    %cst_341 = arith.constant dense<0.000000e+00> : vector<2x128xf32>
    %631 = tpu.matmul %628, %630, %cst_341 {dimension_numbers = #tpu.dot_dimension_numbers<[1], [0], [0], [1], [0, 0, 1, 1], [], []>} : vector<2x32xf32>, vector<32x128xf32>, vector<2x128xf32> -> vector<2x128xf32>
    %632 = arith.addf %626, %631 : vector<2x128xf32>
    %c0_342 = arith.constant 0 : index
    %c0_343 = arith.constant 0 : index
    %c0_344 = arith.constant 0 : index
    %633 = vector.load %arg26[%c0_342, %c0_343, %c0_344] : memref<2x2x32xf32, #tpu.memory_space<vmem>>, vector<1x2x32xf32>
    %634 = vector.shape_cast %633 : vector<1x2x32xf32> to vector<2x32xf32>
    %635 = vector.extract_strided_slice %632 {offsets = [0, 0], sizes = [2, 32], strides = [1, 1]} : vector<2x128xf32> to vector<2x32xf32>
    %636 = arith.negf %635 : vector<2x32xf32>
    %637 = math.exp %636 : vector<2x32xf32>
    %cst_345 = arith.constant 1.000000e+00 : f32
    %638 = vector.broadcast %cst_345 : f32 to vector<2x32xf32>
    %639 = arith.addf %638, %637 : vector<2x32xf32>
    %640 = arith.divf %638, %639 : vector<2x32xf32>
    %641 = vector.extract_strided_slice %632 {offsets = [0, 32], sizes = [2, 32], strides = [1, 1]} : vector<2x128xf32> to vector<2x32xf32>
    %642 = arith.negf %641 : vector<2x32xf32>
    %643 = math.exp %642 : vector<2x32xf32>
    %cst_346 = arith.constant 1.000000e+00 : f32
    %644 = vector.broadcast %cst_346 : f32 to vector<2x32xf32>
    %645 = arith.addf %644, %643 : vector<2x32xf32>
    %646 = arith.divf %644, %645 : vector<2x32xf32>
    %647 = vector.extract_strided_slice %632 {offsets = [0, 64], sizes = [2, 32], strides = [1, 1]} : vector<2x128xf32> to vector<2x32xf32>
    %648 = math.tanh %647 : vector<2x32xf32>
    %649 = vector.extract_strided_slice %632 {offsets = [0, 96], sizes = [2, 32], strides = [1, 1]} : vector<2x128xf32> to vector<2x32xf32>
    %650 = arith.negf %649 : vector<2x32xf32>
    %651 = math.exp %650 : vector<2x32xf32>
    %cst_347 = arith.constant 1.000000e+00 : f32
    %652 = vector.broadcast %cst_347 : f32 to vector<2x32xf32>
    %653 = arith.addf %652, %651 : vector<2x32xf32>
    %654 = arith.divf %652, %653 : vector<2x32xf32>
    %655 = arith.mulf %646, %634 : vector<2x32xf32>
    %656 = arith.mulf %640, %648 : vector<2x32xf32>
    %657 = arith.addf %655, %656 : vector<2x32xf32>
    %658 = math.tanh %657 : vector<2x32xf32>
    %659 = arith.mulf %654, %658 : vector<2x32xf32>
    %c0_348 = arith.constant 0 : index
    %c0_349 = arith.constant 0 : index
    %c0_350 = arith.constant 0 : index
    %660 = vector.load %arg25[%c0_348, %c0_349, %c0_350] : memref<2x2x32xf32, #tpu.memory_space<vmem>>, vector<1x2x32xf32>
    %661 = vector.shape_cast %660 : vector<1x2x32xf32> to vector<2x32xf32>
    %662 = vector.shape_cast %659 : vector<2x32xf32> to vector<1x2x32xf32>
    tpu.vector_store %arg25[%c0_348, %c0_349, %c0_350], %662 {strides = array<i32>} : memref<2x2x32xf32, #tpu.memory_space<vmem>>, vector<1x2x32xf32>,
    %c0_351 = arith.constant 0 : index
    %c0_352 = arith.constant 0 : index
    %c0_353 = arith.constant 0 : index
    %663 = vector.load %arg26[%c0_351, %c0_352, %c0_353] : memref<2x2x32xf32, #tpu.memory_space<vmem>>, vector<1x2x32xf32>
    %664 = vector.shape_cast %663 : vector<1x2x32xf32> to vector<2x32xf32>
    %665 = vector.shape_cast %657 : vector<2x32xf32> to vector<1x2x32xf32>
    tpu.vector_store %arg26[%c0_351, %c0_352, %c0_353], %665 {strides = array<i32>} : memref<2x2x32xf32, #tpu.memory_space<vmem>>, vector<1x2x32xf32>,
    %c1_354 = arith.constant 1 : index
    %c0_355 = arith.constant 0 : index
    %c0_356 = arith.constant 0 : index
    %666 = vector.load %arg7[%c1_354, %c0_355, %c0_356] : memref<2x32x128xf32, #tpu.memory_space<vmem>>, vector<1x32x128xf32>
    %667 = vector.shape_cast %666 : vector<1x32x128xf32> to vector<32x128xf32>
    %cst_357 = arith.constant dense<0.000000e+00> : vector<2x128xf32>
    %668 = tpu.matmul %659, %667, %cst_357 {dimension_numbers = #tpu.dot_dimension_numbers<[1], [0], [0], [1], [0, 0, 1, 1], [], []>} : vector<2x32xf32>, vector<32x128xf32>, vector<2x128xf32> -> vector<2x128xf32>
    %c1_358 = arith.constant 1 : index
    %c0_359 = arith.constant 0 : index
    %c0_360 = arith.constant 0 : index
    %669 = vector.load %arg25[%c1_358, %c0_359, %c0_360] : memref<2x2x32xf32, #tpu.memory_space<vmem>>, vector<1x2x32xf32>
    %670 = vector.shape_cast %669 : vector<1x2x32xf32> to vector<2x32xf32>
    %c1_361 = arith.constant 1 : index
    %c0_362 = arith.constant 0 : index
    %c0_363 = arith.constant 0 : index
    %671 = vector.load %arg8[%c1_361, %c0_362, %c0_363] : memref<2x32x128xf32, #tpu.memory_space<vmem>>, vector<1x32x128xf32>
    %672 = vector.shape_cast %671 : vector<1x32x128xf32> to vector<32x128xf32>
    %cst_364 = arith.constant dense<0.000000e+00> : vector<2x128xf32>
    %673 = tpu.matmul %670, %672, %cst_364 {dimension_numbers = #tpu.dot_dimension_numbers<[1], [0], [0], [1], [0, 0, 1, 1], [], []>} : vector<2x32xf32>, vector<32x128xf32>, vector<2x128xf32> -> vector<2x128xf32>
    %674 = arith.addf %668, %673 : vector<2x128xf32>
    %c1_365 = arith.constant 1 : index
    %c0_366 = arith.constant 0 : index
    %c0_367 = arith.constant 0 : index
    %675 = vector.load %arg9[%c1_365, %c0_366, %c0_367] : memref<2x1x128xf32, #tpu.memory_space<vmem>>, vector<1x1x128xf32>
    %676 = vector.shape_cast %675 : vector<1x1x128xf32> to vector<1x128xf32>
    %677 = vector.broadcast %676 : vector<1x128xf32> to vector<2x128xf32>
    %678 = arith.addf %674, %677 : vector<2x128xf32>
    %c1_368 = arith.constant 1 : index
    %c0_369 = arith.constant 0 : index
    %c0_370 = arith.constant 0 : index
    %679 = vector.load %arg26[%c1_368, %c0_369, %c0_370] : memref<2x2x32xf32, #tpu.memory_space<vmem>>, vector<1x2x32xf32>
    %680 = vector.shape_cast %679 : vector<1x2x32xf32> to vector<2x32xf32>
    %681 = vector.extract_strided_slice %678 {offsets = [0, 0], sizes = [2, 32], strides = [1, 1]} : vector<2x128xf32> to vector<2x32xf32>
    %682 = arith.negf %681 : vector<2x32xf32>
    %683 = math.exp %682 : vector<2x32xf32>
    %cst_371 = arith.constant 1.000000e+00 : f32
    %684 = vector.broadcast %cst_371 : f32 to vector<2x32xf32>
    %685 = arith.addf %684, %683 : vector<2x32xf32>
    %686 = arith.divf %684, %685 : vector<2x32xf32>
    %687 = vector.extract_strided_slice %678 {offsets = [0, 32], sizes = [2, 32], strides = [1, 1]} : vector<2x128xf32> to vector<2x32xf32>
    %688 = arith.negf %687 : vector<2x32xf32>
    %689 = math.exp %688 : vector<2x32xf32>
    %cst_372 = arith.constant 1.000000e+00 : f32
    %690 = vector.broadcast %cst_372 : f32 to vector<2x32xf32>
    %691 = arith.addf %690, %689 : vector<2x32xf32>
    %692 = arith.divf %690, %691 : vector<2x32xf32>
    %693 = vector.extract_strided_slice %678 {offsets = [0, 64], sizes = [2, 32], strides = [1, 1]} : vector<2x128xf32> to vector<2x32xf32>
    %694 = math.tanh %693 : vector<2x32xf32>
    %695 = vector.extract_strided_slice %678 {offsets = [0, 96], sizes = [2, 32], strides = [1, 1]} : vector<2x128xf32> to vector<2x32xf32>
    %696 = arith.negf %695 : vector<2x32xf32>
    %697 = math.exp %696 : vector<2x32xf32>
    %cst_373 = arith.constant 1.000000e+00 : f32
    %698 = vector.broadcast %cst_373 : f32 to vector<2x32xf32>
    %699 = arith.addf %698, %697 : vector<2x32xf32>
    %700 = arith.divf %698, %699 : vector<2x32xf32>
    %701 = arith.mulf %692, %680 : vector<2x32xf32>
    %702 = arith.mulf %686, %694 : vector<2x32xf32>
    %703 = arith.addf %701, %702 : vector<2x32xf32>
    %704 = math.tanh %703 : vector<2x32xf32>
    %705 = arith.mulf %700, %704 : vector<2x32xf32>
    %c1_374 = arith.constant 1 : index
    %c0_375 = arith.constant 0 : index
    %c0_376 = arith.constant 0 : index
    %706 = vector.load %arg25[%c1_374, %c0_375, %c0_376] : memref<2x2x32xf32, #tpu.memory_space<vmem>>, vector<1x2x32xf32>
    %707 = vector.shape_cast %706 : vector<1x2x32xf32> to vector<2x32xf32>
    %708 = vector.shape_cast %705 : vector<2x32xf32> to vector<1x2x32xf32>
    tpu.vector_store %arg25[%c1_374, %c0_375, %c0_376], %708 {strides = array<i32>} : memref<2x2x32xf32, #tpu.memory_space<vmem>>, vector<1x2x32xf32>,
    %c1_377 = arith.constant 1 : index
    %c0_378 = arith.constant 0 : index
    %c0_379 = arith.constant 0 : index
    %709 = vector.load %arg26[%c1_377, %c0_378, %c0_379] : memref<2x2x32xf32, #tpu.memory_space<vmem>>, vector<1x2x32xf32>
    %710 = vector.shape_cast %709 : vector<1x2x32xf32> to vector<2x32xf32>
    %711 = vector.shape_cast %703 : vector<2x32xf32> to vector<1x2x32xf32>
    tpu.vector_store %arg26[%c1_377, %c0_378, %c0_379], %711 {strides = array<i32>} : memref<2x2x32xf32, #tpu.memory_space<vmem>>, vector<1x2x32xf32>,
    %712 = tpu.iota {dimensions = array<i32: 1>} : vector<2x16xi32>
    %c0_380 = arith.constant 0 : index
    %c0_381 = arith.constant 0 : index
    %c0_382 = arith.constant 0 : index
    %713 = vector.load %arg1[%c0_380, %c0_381, %c0_382] : memref<8x2x1xi32, #tpu.memory_space<vmem>>, vector<1x2x1xi32>
    %714 = vector.shape_cast %713 : vector<1x2x1xi32> to vector<2x1xi32>
    %715 = vector.broadcast %714 : vector<2x1xi32> to vector<2x16xi32>
    %716 = arith.cmpi eq, %712, %715 : vector<2x16xi32>
    %717 = arith.extui %716 : vector<2x16xi1> to vector<2x16xi32>
    %718 = arith.sitofp %717 : vector<2x16xi32> to vector<2x16xf32>
    %c0_383 = arith.constant 0 : index
    %c0_384 = arith.constant 0 : index
    %719 = vector.load %arg5[%c0_383, %c0_384] : memref<16x32xf32, #tpu.memory_space<vmem>>, vector<16x32xf32>
    %cst_385 = arith.constant dense<0.000000e+00> : vector<2x32xf32>
    %720 = tpu.matmul %718, %719, %cst_385 {dimension_numbers = #tpu.dot_dimension_numbers<[1], [0], [0], [1], [0, 0, 1, 1], [], []>} : vector<2x16xf32>, vector<16x32xf32>, vector<2x32xf32> -> vector<2x32xf32>
    %c0_386 = arith.constant 0 : index
    %c0_387 = arith.constant 0 : index
    %721 = vector.load %arg6[%c0_386, %c0_387] : memref<1x32xf32, #tpu.memory_space<vmem>>, vector<1x32xf32>
    %722 = vector.broadcast %721 : vector<1x32xf32> to vector<2x32xf32>
    %723 = arith.addf %720, %722 : vector<2x32xf32>
    %cst_388 = arith.constant 0.000000e+00 : f32
    %724 = vector.broadcast %cst_388 : f32 to vector<2x32xf32>
    %725 = arith.maximumf %723, %724 : vector<2x32xf32>
    %c0_389 = arith.constant 0 : index
    %c0_390 = arith.constant 0 : index
    %c0_391 = arith.constant 0 : index
    %726 = vector.load %arg10[%c0_389, %c0_390, %c0_391] : memref<2x32x128xf32, #tpu.memory_space<vmem>>, vector<1x32x128xf32>
    %727 = vector.shape_cast %726 : vector<1x32x128xf32> to vector<32x128xf32>
    %cst_392 = arith.constant dense<0.000000e+00> : vector<2x128xf32>
    %728 = tpu.matmul %725, %727, %cst_392 {dimension_numbers = #tpu.dot_dimension_numbers<[1], [0], [0], [1], [0, 0, 1, 1], [], []>} : vector<2x32xf32>, vector<32x128xf32>, vector<2x128xf32> -> vector<2x128xf32>
    %c0_393 = arith.constant 0 : index
    %c0_394 = arith.constant 0 : index
    %c0_395 = arith.constant 0 : index
    %729 = vector.load %arg12[%c0_393, %c0_394, %c0_395] : memref<2x1x128xf32, #tpu.memory_space<vmem>>, vector<1x1x128xf32>
    %730 = vector.shape_cast %729 : vector<1x1x128xf32> to vector<1x128xf32>
    %731 = vector.broadcast %730 : vector<1x128xf32> to vector<2x128xf32>
    %732 = arith.addf %728, %731 : vector<2x128xf32>
    %c0_396 = arith.constant 0 : index
    %c0_397 = arith.constant 0 : index
    %c0_398 = arith.constant 0 : index
    %733 = vector.load %arg27[%c0_396, %c0_397, %c0_398] : memref<8x2x128xf32, #tpu.memory_space<vmem>>, vector<1x2x128xf32>
    %734 = vector.shape_cast %733 : vector<1x2x128xf32> to vector<2x128xf32>
    %735 = vector.shape_cast %732 : vector<2x128xf32> to vector<1x2x128xf32>
    tpu.vector_store %arg27[%c0_396, %c0_397, %c0_398], %735 {strides = array<i32>} : memref<8x2x128xf32, #tpu.memory_space<vmem>>, vector<1x2x128xf32>,
    %c0_399 = arith.constant 0 : index
    %c0_400 = arith.constant 0 : index
    %c0_401 = arith.constant 0 : index
    %736 = vector.load %arg24[%c0_399, %c0_400, %c0_401] : memref<8x2x1xi32, #tpu.memory_space<vmem>>, vector<1x2x1xi32>
    %737 = vector.shape_cast %736 : vector<1x2x1xi32> to vector<2x1xi32>
    %738 = vector.shape_cast %714 : vector<2x1xi32> to vector<1x2x1xi32>
    tpu.vector_store %arg24[%c0_399, %c0_400, %c0_401], %738 {strides = array<i32>} : memref<8x2x1xi32, #tpu.memory_space<vmem>>, vector<1x2x1xi32>,
    %cst_402 = arith.constant 0.000000e+00 : f32
    %739 = vector.broadcast %cst_402 : f32 to vector<2x1xf32>
    %c0_403 = arith.constant 0 : index
    %c0_404 = arith.constant 0 : index
    %c0_405 = arith.constant 0 : index
    %740 = vector.load %arg23[%c0_403, %c0_404, %c0_405] : memref<8x2x1xf32, #tpu.memory_space<vmem>>, vector<1x2x1xf32>
    %741 = vector.shape_cast %740 : vector<1x2x1xf32> to vector<2x1xf32>
    %742 = vector.shape_cast %739 : vector<2x1xf32> to vector<1x2x1xf32>
    tpu.vector_store %arg23[%c0_403, %c0_404, %c0_405], %742 {strides = array<i32>} : memref<8x2x1xf32, #tpu.memory_space<vmem>>, vector<1x2x1xf32>,
    %c0_406 = arith.constant 0 : index
    %c0_407 = arith.constant 0 : index
    %743 = vector.load %arg13[%c0_406, %c0_407] : memref<2x1xf32, #tpu.memory_space<vmem>>, vector<2x1xf32>
    %c0_408 = arith.constant 0 : index
    %c0_409 = arith.constant 0 : index
    %744 = vector.load %arg14[%c0_408, %c0_409] : memref<1x8xf32, #tpu.memory_space<vmem>>, vector<1x8xf32>
    %745 = vector.broadcast %743 : vector<2x1xf32> to vector<2x8xf32>
    %746 = vector.broadcast %744 : vector<1x8xf32> to vector<2x8xf32>
    %747 = arith.mulf %745, %746 : vector<2x8xf32>
    %c0_410 = arith.constant 0 : index
    %c0_411 = arith.constant 0 : index
    %748 = vector.load %arg15[%c0_410, %c0_411] : memref<1x8xf32, #tpu.memory_space<vmem>>, vector<1x8xf32>
    %749 = vector.broadcast %748 : vector<1x8xf32> to vector<2x8xf32>
    %750 = arith.addf %747, %749 : vector<2x8xf32>
    %c0_412 = arith.constant 0 : index
    %c0_413 = arith.constant 0 : index
    %751 = vector.load %arg17[%c0_412, %c0_413] : memref<8x40xf32, #tpu.memory_space<vmem>>, vector<8x40xf32>
    %cst_414 = arith.constant dense<0.000000e+00> : vector<2x40xf32>
    %752 = tpu.matmul %750, %751, %cst_414 {dimension_numbers = #tpu.dot_dimension_numbers<[1], [0], [0], [1], [0, 0, 1, 1], [], []>} : vector<2x8xf32>, vector<8x40xf32>, vector<2x40xf32> -> vector<2x40xf32>
    %c0_415 = arith.constant 0 : index
    %c0_416 = arith.constant 0 : index
    %753 = vector.load %arg18[%c0_415, %c0_416] : memref<1x40xf32, #tpu.memory_space<vmem>>, vector<1x40xf32>
    %754 = vector.broadcast %753 : vector<1x40xf32> to vector<2x40xf32>
    %755 = arith.addf %752, %754 : vector<2x40xf32>
    %c1_i32 = arith.constant 1 : i32
    %c7_i32 = arith.constant 7 : i32
    %756 = arith.addi %c1_i32, %c7_i32 : i32
    %c1_i32_417 = arith.constant 1 : i32
    scf.for %arg28 = %c1_i32 to %756 step %c1_i32_417  : i32 {
      %c0_i32 = arith.constant 0 : i32
      %c0_i32_419 = arith.constant 0 : i32
      %757 = arith.subi %arg28, %c0_i32_419 : i32
      %758 = arith.addi %c0_i32_419, %757 : i32
      %c1_i32_420 = arith.constant 1 : i32
      scf.for %arg29 = %c0_i32_419 to %758 step %c1_i32_420  : i32 {
        %860 = arith.index_cast %arg29 : i32 to index
        %c0_471 = arith.constant 0 : index
        %c0_472 = arith.constant 0 : index
        %861 = vector.load %arg27[%860, %c0_471, %c0_472] : memref<8x2x128xf32, #tpu.memory_space<vmem>>, vector<1x2x128xf32>
        %862 = vector.shape_cast %861 : vector<1x2x128xf32> to vector<2x128xf32>
        %c0_473 = arith.constant 0 : index
        %c0_474 = arith.constant 0 : index
        %c0_475 = arith.constant 0 : index
        %863 = vector.load %arg25[%c0_473, %c0_474, %c0_475] : memref<2x2x32xf32, #tpu.memory_space<vmem>>, vector<1x2x32xf32>
        %864 = vector.shape_cast %863 : vector<1x2x32xf32> to vector<2x32xf32>
        %c0_476 = arith.constant 0 : index
        %c0_477 = arith.constant 0 : index
        %c0_478 = arith.constant 0 : index
        %865 = vector.load %arg11[%c0_476, %c0_477, %c0_478] : memref<2x32x128xf32, #tpu.memory_space<vmem>>, vector<1x32x128xf32>
        %866 = vector.shape_cast %865 : vector<1x32x128xf32> to vector<32x128xf32>
        %cst_479 = arith.constant dense<0.000000e+00> : vector<2x128xf32>
        %867 = tpu.matmul %864, %866, %cst_479 {dimension_numbers = #tpu.dot_dimension_numbers<[1], [0], [0], [1], [0, 0, 1, 1], [], []>} : vector<2x32xf32>, vector<32x128xf32>, vector<2x128xf32> -> vector<2x128xf32>
        %868 = arith.addf %862, %867 : vector<2x128xf32>
        %c0_480 = arith.constant 0 : index
        %c0_481 = arith.constant 0 : index
        %c0_482 = arith.constant 0 : index
        %869 = vector.load %arg26[%c0_480, %c0_481, %c0_482] : memref<2x2x32xf32, #tpu.memory_space<vmem>>, vector<1x2x32xf32>
        %870 = vector.shape_cast %869 : vector<1x2x32xf32> to vector<2x32xf32>
        %871 = vector.extract_strided_slice %868 {offsets = [0, 0], sizes = [2, 32], strides = [1, 1]} : vector<2x128xf32> to vector<2x32xf32>
        %872 = arith.negf %871 : vector<2x32xf32>
        %873 = math.exp %872 : vector<2x32xf32>
        %cst_483 = arith.constant 1.000000e+00 : f32
        %874 = vector.broadcast %cst_483 : f32 to vector<2x32xf32>
        %875 = arith.addf %874, %873 : vector<2x32xf32>
        %876 = arith.divf %874, %875 : vector<2x32xf32>
        %877 = vector.extract_strided_slice %868 {offsets = [0, 32], sizes = [2, 32], strides = [1, 1]} : vector<2x128xf32> to vector<2x32xf32>
        %878 = arith.negf %877 : vector<2x32xf32>
        %879 = math.exp %878 : vector<2x32xf32>
        %cst_484 = arith.constant 1.000000e+00 : f32
        %880 = vector.broadcast %cst_484 : f32 to vector<2x32xf32>
        %881 = arith.addf %880, %879 : vector<2x32xf32>
        %882 = arith.divf %880, %881 : vector<2x32xf32>
        %883 = vector.extract_strided_slice %868 {offsets = [0, 64], sizes = [2, 32], strides = [1, 1]} : vector<2x128xf32> to vector<2x32xf32>
        %884 = math.tanh %883 : vector<2x32xf32>
        %885 = vector.extract_strided_slice %868 {offsets = [0, 96], sizes = [2, 32], strides = [1, 1]} : vector<2x128xf32> to vector<2x32xf32>
        %886 = arith.negf %885 : vector<2x32xf32>
        %887 = math.exp %886 : vector<2x32xf32>
        %cst_485 = arith.constant 1.000000e+00 : f32
        %888 = vector.broadcast %cst_485 : f32 to vector<2x32xf32>
        %889 = arith.addf %888, %887 : vector<2x32xf32>
        %890 = arith.divf %888, %889 : vector<2x32xf32>
        %891 = arith.mulf %882, %870 : vector<2x32xf32>
        %892 = arith.mulf %876, %884 : vector<2x32xf32>
        %893 = arith.addf %891, %892 : vector<2x32xf32>
        %894 = math.tanh %893 : vector<2x32xf32>
        %895 = arith.mulf %890, %894 : vector<2x32xf32>
        %c0_486 = arith.constant 0 : index
        %c0_487 = arith.constant 0 : index
        %c0_488 = arith.constant 0 : index
        %896 = vector.load %arg25[%c0_486, %c0_487, %c0_488] : memref<2x2x32xf32, #tpu.memory_space<vmem>>, vector<1x2x32xf32>
        %897 = vector.shape_cast %896 : vector<1x2x32xf32> to vector<2x32xf32>
        %898 = vector.shape_cast %895 : vector<2x32xf32> to vector<1x2x32xf32>
        tpu.vector_store %arg25[%c0_486, %c0_487, %c0_488], %898 {strides = array<i32>} : memref<2x2x32xf32, #tpu.memory_space<vmem>>, vector<1x2x32xf32>,
        %c0_489 = arith.constant 0 : index
        %c0_490 = arith.constant 0 : index
        %c0_491 = arith.constant 0 : index
        %899 = vector.load %arg26[%c0_489, %c0_490, %c0_491] : memref<2x2x32xf32, #tpu.memory_space<vmem>>, vector<1x2x32xf32>
        %900 = vector.shape_cast %899 : vector<1x2x32xf32> to vector<2x32xf32>
        %901 = vector.shape_cast %893 : vector<2x32xf32> to vector<1x2x32xf32>
        tpu.vector_store %arg26[%c0_489, %c0_490, %c0_491], %901 {strides = array<i32>} : memref<2x2x32xf32, #tpu.memory_space<vmem>>, vector<1x2x32xf32>,
        %c1_492 = arith.constant 1 : index
        %c0_493 = arith.constant 0 : index
        %c0_494 = arith.constant 0 : index
        %902 = vector.load %arg10[%c1_492, %c0_493, %c0_494] : memref<2x32x128xf32, #tpu.memory_space<vmem>>, vector<1x32x128xf32>
        %903 = vector.shape_cast %902 : vector<1x32x128xf32> to vector<32x128xf32>
        %cst_495 = arith.constant dense<0.000000e+00> : vector<2x128xf32>
        %904 = tpu.matmul %895, %903, %cst_495 {dimension_numbers = #tpu.dot_dimension_numbers<[1], [0], [0], [1], [0, 0, 1, 1], [], []>} : vector<2x32xf32>, vector<32x128xf32>, vector<2x128xf32> -> vector<2x128xf32>
        %c1_496 = arith.constant 1 : index
        %c0_497 = arith.constant 0 : index
        %c0_498 = arith.constant 0 : index
        %905 = vector.load %arg25[%c1_496, %c0_497, %c0_498] : memref<2x2x32xf32, #tpu.memory_space<vmem>>, vector<1x2x32xf32>
        %906 = vector.shape_cast %905 : vector<1x2x32xf32> to vector<2x32xf32>
        %c1_499 = arith.constant 1 : index
        %c0_500 = arith.constant 0 : index
        %c0_501 = arith.constant 0 : index
        %907 = vector.load %arg11[%c1_499, %c0_500, %c0_501] : memref<2x32x128xf32, #tpu.memory_space<vmem>>, vector<1x32x128xf32>
        %908 = vector.shape_cast %907 : vector<1x32x128xf32> to vector<32x128xf32>
        %cst_502 = arith.constant dense<0.000000e+00> : vector<2x128xf32>
        %909 = tpu.matmul %906, %908, %cst_502 {dimension_numbers = #tpu.dot_dimension_numbers<[1], [0], [0], [1], [0, 0, 1, 1], [], []>} : vector<2x32xf32>, vector<32x128xf32>, vector<2x128xf32> -> vector<2x128xf32>
        %910 = arith.addf %904, %909 : vector<2x128xf32>
        %c1_503 = arith.constant 1 : index
        %c0_504 = arith.constant 0 : index
        %c0_505 = arith.constant 0 : index
        %911 = vector.load %arg12[%c1_503, %c0_504, %c0_505] : memref<2x1x128xf32, #tpu.memory_space<vmem>>, vector<1x1x128xf32>
        %912 = vector.shape_cast %911 : vector<1x1x128xf32> to vector<1x128xf32>
        %913 = vector.broadcast %912 : vector<1x128xf32> to vector<2x128xf32>
        %914 = arith.addf %910, %913 : vector<2x128xf32>
        %c1_506 = arith.constant 1 : index
        %c0_507 = arith.constant 0 : index
        %c0_508 = arith.constant 0 : index
        %915 = vector.load %arg26[%c1_506, %c0_507, %c0_508] : memref<2x2x32xf32, #tpu.memory_space<vmem>>, vector<1x2x32xf32>
        %916 = vector.shape_cast %915 : vector<1x2x32xf32> to vector<2x32xf32>
        %917 = vector.extract_strided_slice %914 {offsets = [0, 0], sizes = [2, 32], strides = [1, 1]} : vector<2x128xf32> to vector<2x32xf32>
        %918 = arith.negf %917 : vector<2x32xf32>
        %919 = math.exp %918 : vector<2x32xf32>
        %cst_509 = arith.constant 1.000000e+00 : f32
        %920 = vector.broadcast %cst_509 : f32 to vector<2x32xf32>
        %921 = arith.addf %920, %919 : vector<2x32xf32>
        %922 = arith.divf %920, %921 : vector<2x32xf32>
        %923 = vector.extract_strided_slice %914 {offsets = [0, 32], sizes = [2, 32], strides = [1, 1]} : vector<2x128xf32> to vector<2x32xf32>
        %924 = arith.negf %923 : vector<2x32xf32>
        %925 = math.exp %924 : vector<2x32xf32>
        %cst_510 = arith.constant 1.000000e+00 : f32
        %926 = vector.broadcast %cst_510 : f32 to vector<2x32xf32>
        %927 = arith.addf %926, %925 : vector<2x32xf32>
        %928 = arith.divf %926, %927 : vector<2x32xf32>
        %929 = vector.extract_strided_slice %914 {offsets = [0, 64], sizes = [2, 32], strides = [1, 1]} : vector<2x128xf32> to vector<2x32xf32>
        %930 = math.tanh %929 : vector<2x32xf32>
        %931 = vector.extract_strided_slice %914 {offsets = [0, 96], sizes = [2, 32], strides = [1, 1]} : vector<2x128xf32> to vector<2x32xf32>
        %932 = arith.negf %931 : vector<2x32xf32>
        %933 = math.exp %932 : vector<2x32xf32>
        %cst_511 = arith.constant 1.000000e+00 : f32
        %934 = vector.broadcast %cst_511 : f32 to vector<2x32xf32>
        %935 = arith.addf %934, %933 : vector<2x32xf32>
        %936 = arith.divf %934, %935 : vector<2x32xf32>
        %937 = arith.mulf %928, %916 : vector<2x32xf32>
        %938 = arith.mulf %922, %930 : vector<2x32xf32>
        %939 = arith.addf %937, %938 : vector<2x32xf32>
        %940 = math.tanh %939 : vector<2x32xf32>
        %941 = arith.mulf %936, %940 : vector<2x32xf32>
        %c1_512 = arith.constant 1 : index
        %c0_513 = arith.constant 0 : index
        %c0_514 = arith.constant 0 : index
        %942 = vector.load %arg25[%c1_512, %c0_513, %c0_514] : memref<2x2x32xf32, #tpu.memory_space<vmem>>, vector<1x2x32xf32>
        %943 = vector.shape_cast %942 : vector<1x2x32xf32> to vector<2x32xf32>
        %944 = vector.shape_cast %941 : vector<2x32xf32> to vector<1x2x32xf32>
        tpu.vector_store %arg25[%c1_512, %c0_513, %c0_514], %944 {strides = array<i32>} : memref<2x2x32xf32, #tpu.memory_space<vmem>>, vector<1x2x32xf32>,
        %c1_515 = arith.constant 1 : index
        %c0_516 = arith.constant 0 : index
        %c0_517 = arith.constant 0 : index
        %945 = vector.load %arg26[%c1_515, %c0_516, %c0_517] : memref<2x2x32xf32, #tpu.memory_space<vmem>>, vector<1x2x32xf32>
        %946 = vector.shape_cast %945 : vector<1x2x32xf32> to vector<2x32xf32>
        %947 = vector.shape_cast %939 : vector<2x32xf32> to vector<1x2x32xf32>
        tpu.vector_store %arg26[%c1_515, %c0_516, %c0_517], %947 {strides = array<i32>} : memref<2x2x32xf32, #tpu.memory_space<vmem>>, vector<1x2x32xf32>,
      }
      %c1_421 = arith.constant 1 : index
      %c0_422 = arith.constant 0 : index
      %c0_423 = arith.constant 0 : index
      %759 = vector.load %arg25[%c1_421, %c0_422, %c0_423] : memref<2x2x32xf32, #tpu.memory_space<vmem>>, vector<1x2x32xf32>
      %760 = vector.shape_cast %759 : vector<1x2x32xf32> to vector<2x32xf32>
      %c0_424 = arith.constant 0 : index
      %c0_425 = arith.constant 0 : index
      %761 = vector.load %arg16[%c0_424, %c0_425] : memref<32x40xf32, #tpu.memory_space<vmem>>, vector<32x40xf32>
      %cst_426 = arith.constant dense<0.000000e+00> : vector<2x40xf32>
      %762 = tpu.matmul %760, %761, %cst_426 {dimension_numbers = #tpu.dot_dimension_numbers<[1], [0], [0], [1], [0, 0, 1, 1], [], []>} : vector<2x32xf32>, vector<32x40xf32>, vector<2x40xf32> -> vector<2x40xf32>
      %763 = arith.addf %762, %755 : vector<2x40xf32>
      %cst_427 = arith.constant 0.000000e+00 : f32
      %764 = vector.broadcast %cst_427 : f32 to vector<2x40xf32>
      %765 = arith.maximumf %763, %764 : vector<2x40xf32>
      %cst_428 = arith.constant dense<0.000000e+00> : vector<2xf32>
      %766 = vector.multi_reduction <add>, %765, %cst_428 [1] : vector<2x40xf32> to vector<2xf32>
      %767 = vector.shape_cast %766 : vector<2xf32> to vector<2x1xf32>
      %cst_429 = arith.constant 4.000000e+01 : f32
      %768 = vector.broadcast %cst_429 : f32 to vector<2x1xf32>
      %769 = arith.divf %767, %768 : vector<2x1xf32>
      %770 = vector.broadcast %769 : vector<2x1xf32> to vector<2x40xf32>
      %771 = arith.subf %765, %770 : vector<2x40xf32>
      %772 = arith.mulf %771, %771 : vector<2x40xf32>
      %cst_430 = arith.constant dense<0.000000e+00> : vector<2xf32>
      %773 = vector.multi_reduction <add>, %772, %cst_430 [1] : vector<2x40xf32> to vector<2xf32>
      %774 = vector.shape_cast %773 : vector<2xf32> to vector<2x1xf32>
      %cst_431 = arith.constant 4.000000e+01 : f32
      %775 = vector.broadcast %cst_431 : f32 to vector<2x1xf32>
      %776 = arith.divf %774, %775 : vector<2x1xf32>
      %777 = vector.broadcast %769 : vector<2x1xf32> to vector<2x40xf32>
      %778 = arith.subf %765, %777 : vector<2x40xf32>
      %cst_432 = arith.constant 9.99999974E-6 : f32
      %779 = vector.broadcast %cst_432 : f32 to vector<2x1xf32>
      %780 = arith.addf %776, %779 : vector<2x1xf32>
      %781 = math.rsqrt %780 : vector<2x1xf32>
      %782 = vector.broadcast %781 : vector<2x1xf32> to vector<2x40xf32>
      %783 = arith.mulf %778, %782 : vector<2x40xf32>
      %c0_433 = arith.constant 0 : index
      %c0_434 = arith.constant 0 : index
      %784 = vector.load %arg19[%c0_433, %c0_434] : memref<1x40xf32, #tpu.memory_space<vmem>>, vector<1x40xf32>
      %785 = vector.broadcast %784 : vector<1x40xf32> to vector<2x40xf32>
      %786 = arith.mulf %783, %785 : vector<2x40xf32>
      %c0_435 = arith.constant 0 : index
      %c0_436 = arith.constant 0 : index
      %787 = vector.load %arg20[%c0_435, %c0_436] : memref<1x40xf32, #tpu.memory_space<vmem>>, vector<1x40xf32>
      %788 = vector.broadcast %787 : vector<1x40xf32> to vector<2x40xf32>
      %789 = arith.addf %786, %788 : vector<2x40xf32>
      %c0_437 = arith.constant 0 : index
      %c0_438 = arith.constant 0 : index
      %790 = vector.load %arg21[%c0_437, %c0_438] : memref<40x16xf32, #tpu.memory_space<vmem>>, vector<40x16xf32>
      %cst_439 = arith.constant dense<0.000000e+00> : vector<2x16xf32>
      %791 = tpu.matmul %789, %790, %cst_439 {dimension_numbers = #tpu.dot_dimension_numbers<[1], [0], [0], [1], [0, 0, 1, 1], [], []>} : vector<2x40xf32>, vector<40x16xf32>, vector<2x16xf32> -> vector<2x16xf32>
      %c0_440 = arith.constant 0 : index
      %c0_441 = arith.constant 0 : index
      %792 = vector.load %arg22[%c0_440, %c0_441] : memref<1x16xf32, #tpu.memory_space<vmem>>, vector<1x16xf32>
      %793 = vector.broadcast %792 : vector<1x16xf32> to vector<2x16xf32>
      %794 = arith.addf %791, %793 : vector<2x16xf32>
      %cst_442 = arith.constant dense<0xFF800000> : vector<2xf32>
      %795 = vector.multi_reduction <maximumf>, %794, %cst_442 [1] : vector<2x16xf32> to vector<2xf32>
      %796 = vector.shape_cast %795 : vector<2xf32> to vector<2x1xf32>
      %797 = vector.broadcast %796 : vector<2x1xf32> to vector<2x16xf32>
      %798 = arith.subf %794, %797 : vector<2x16xf32>
      %799 = math.exp %798 : vector<2x16xf32>
      %cst_443 = arith.constant dense<0.000000e+00> : vector<2xf32>
      %800 = vector.multi_reduction <add>, %799, %cst_443 [1] : vector<2x16xf32> to vector<2xf32>
      %801 = vector.shape_cast %800 : vector<2xf32> to vector<2x1xf32>
      %802 = math.log %801 : vector<2x1xf32>
      %803 = arith.addf %796, %802 : vector<2x1xf32>
      %804 = vector.broadcast %803 : vector<2x1xf32> to vector<2x16xf32>
      %805 = arith.subf %794, %804 : vector<2x16xf32>
      %806 = arith.index_cast %arg28 : i32 to index
      %c0_444 = arith.constant 0 : index
      %c0_445 = arith.constant 0 : index
      %807 = vector.load %arg2[%806, %c0_444, %c0_445] : memref<8x2x16xf32, #tpu.memory_space<vmem>>, vector<1x2x16xf32>
      %808 = vector.shape_cast %807 : vector<1x2x16xf32> to vector<2x16xf32>
      %809 = arith.addf %805, %808 : vector<2x16xf32>
      %cst_446 = arith.constant dense<0xFF800000> : vector<2xf32>
      %810 = vector.multi_reduction <maximumf>, %809, %cst_446 [1] : vector<2x16xf32> to vector<2xf32>
      %811 = vector.shape_cast %810 : vector<2xf32> to vector<2x1xf32>
      %812 = vector.broadcast %811 : vector<2x1xf32> to vector<2x16xf32>
      %813 = arith.cmpf oge, %809, %812 : vector<2x16xf32>
      %c16_i32 = arith.constant 16 : i32
      %814 = vector.broadcast %c16_i32 : i32 to vector<2x16xi32>
      %815 = arith.select %813, %712, %814 : vector<2x16xi1>, vector<2x16xi32>
      %cst_447 = arith.constant dense<2147483647> : vector<2xi32>
      %816 = vector.multi_reduction <minsi>, %815, %cst_447 [1] : vector<2x16xi32> to vector<2xi32>
      %817 = vector.shape_cast %816 : vector<2xi32> to vector<2x1xi32>
      %818 = vector.broadcast %817 : vector<2x1xi32> to vector<2x16xi32>
      %819 = arith.cmpi eq, %712, %818 : vector<2x16xi32>
      %cst_448 = arith.constant 0.000000e+00 : f32
      %820 = vector.broadcast %cst_448 : f32 to vector<2x16xf32>
      %821 = arith.select %819, %805, %820 : vector<2x16xi1>, vector<2x16xf32>
      %cst_449 = arith.constant dense<0.000000e+00> : vector<2xf32>
      %822 = vector.multi_reduction <add>, %821, %cst_449 [1] : vector<2x16xf32> to vector<2xf32>
      %823 = vector.shape_cast %822 : vector<2xf32> to vector<2x1xf32>
      %824 = arith.index_cast %arg28 : i32 to index
      %c0_450 = arith.constant 0 : index
      %c0_451 = arith.constant 0 : index
      %825 = vector.load %arg1[%824, %c0_450, %c0_451] : memref<8x2x1xi32, #tpu.memory_space<vmem>>, vector<1x2x1xi32>
      %826 = vector.shape_cast %825 : vector<1x2x1xi32> to vector<2x1xi32>
      %c3_i32 = arith.constant 3 : i32
      %827 = vector.broadcast %c3_i32 : i32 to vector<2x1xi32>
      %828 = arith.cmpi eq, %826, %827 : vector<2x1xi32>
      %829 = arith.select %828, %817, %826 : vector<2x1xi1>, vector<2x1xi32>
      %830 = arith.index_cast %arg28 : i32 to index
      %c0_452 = arith.constant 0 : index
      %c0_453 = arith.constant 0 : index
      %831 = vector.load %arg23[%830, %c0_452, %c0_453] : memref<8x2x1xf32, #tpu.memory_space<vmem>>, vector<1x2x1xf32>
      %832 = vector.shape_cast %831 : vector<1x2x1xf32> to vector<2x1xf32>
      %833 = vector.shape_cast %823 : vector<2x1xf32> to vector<1x2x1xf32>
      tpu.vector_store %arg23[%830, %c0_452, %c0_453], %833 {strides = array<i32>} : memref<8x2x1xf32, #tpu.memory_space<vmem>>, vector<1x2x1xf32>,
      %834 = arith.index_cast %arg28 : i32 to index
      %c0_454 = arith.constant 0 : index
      %c0_455 = arith.constant 0 : index
      %835 = vector.load %arg24[%834, %c0_454, %c0_455] : memref<8x2x1xi32, #tpu.memory_space<vmem>>, vector<1x2x1xi32>
      %836 = vector.shape_cast %835 : vector<1x2x1xi32> to vector<2x1xi32>
      %837 = vector.shape_cast %829 : vector<2x1xi32> to vector<1x2x1xi32>
      tpu.vector_store %arg24[%834, %c0_454, %c0_455], %837 {strides = array<i32>} : memref<8x2x1xi32, #tpu.memory_space<vmem>>, vector<1x2x1xi32>,
      %838 = vector.broadcast %829 : vector<2x1xi32> to vector<2x16xi32>
      %839 = arith.cmpi eq, %712, %838 : vector<2x16xi32>
      %840 = arith.extui %839 : vector<2x16xi1> to vector<2x16xi32>
      %841 = arith.sitofp %840 : vector<2x16xi32> to vector<2x16xf32>
      %c0_456 = arith.constant 0 : index
      %c0_457 = arith.constant 0 : index
      %842 = vector.load %arg5[%c0_456, %c0_457] : memref<16x32xf32, #tpu.memory_space<vmem>>, vector<16x32xf32>
      %cst_458 = arith.constant dense<0.000000e+00> : vector<2x32xf32>
      %843 = tpu.matmul %841, %842, %cst_458 {dimension_numbers = #tpu.dot_dimension_numbers<[1], [0], [0], [1], [0, 0, 1, 1], [], []>} : vector<2x16xf32>, vector<16x32xf32>, vector<2x32xf32> -> vector<2x32xf32>
      %c0_459 = arith.constant 0 : index
      %c0_460 = arith.constant 0 : index
      %844 = vector.load %arg6[%c0_459, %c0_460] : memref<1x32xf32, #tpu.memory_space<vmem>>, vector<1x32xf32>
      %845 = vector.broadcast %844 : vector<1x32xf32> to vector<2x32xf32>
      %846 = arith.addf %843, %845 : vector<2x32xf32>
      %cst_461 = arith.constant 0.000000e+00 : f32
      %847 = vector.broadcast %cst_461 : f32 to vector<2x32xf32>
      %848 = arith.maximumf %846, %847 : vector<2x32xf32>
      %c0_462 = arith.constant 0 : index
      %c0_463 = arith.constant 0 : index
      %c0_464 = arith.constant 0 : index
      %849 = vector.load %arg10[%c0_462, %c0_463, %c0_464] : memref<2x32x128xf32, #tpu.memory_space<vmem>>, vector<1x32x128xf32>
      %850 = vector.shape_cast %849 : vector<1x32x128xf32> to vector<32x128xf32>
      %cst_465 = arith.constant dense<0.000000e+00> : vector<2x128xf32>
      %851 = tpu.matmul %848, %850, %cst_465 {dimension_numbers = #tpu.dot_dimension_numbers<[1], [0], [0], [1], [0, 0, 1, 1], [], []>} : vector<2x32xf32>, vector<32x128xf32>, vector<2x128xf32> -> vector<2x128xf32>
      %c0_466 = arith.constant 0 : index
      %c0_467 = arith.constant 0 : index
      %c0_468 = arith.constant 0 : index
      %852 = vector.load %arg12[%c0_466, %c0_467, %c0_468] : memref<2x1x128xf32, #tpu.memory_space<vmem>>, vector<1x1x128xf32>
      %853 = vector.shape_cast %852 : vector<1x1x128xf32> to vector<1x128xf32>
      %854 = vector.broadcast %853 : vector<1x128xf32> to vector<2x128xf32>
      %855 = arith.addf %851, %854 : vector<2x128xf32>
      %856 = arith.index_cast %arg28 : i32 to index
      %c0_469 = arith.constant 0 : index
      %c0_470 = arith.constant 0 : index
      %857 = vector.load %arg27[%856, %c0_469, %c0_470] : memref<8x2x128xf32, #tpu.memory_space<vmem>>, vector<1x2x128xf32>
      %858 = vector.shape_cast %857 : vector<1x2x128xf32> to vector<2x128xf32>
      %859 = vector.shape_cast %855 : vector<2x128xf32> to vector<1x2x128xf32>
      tpu.vector_store %arg27[%856, %c0_469, %c0_470], %859 {strides = array<i32>} : memref<8x2x128xf32, #tpu.memory_space<vmem>>, vector<1x2x128xf32>,
    }
    %c7_i32_418 = arith.constant 7 : i32
    return
  }
}

</mosaic_0001>

<bundles_post_ra>
// kernel: forward.1
= control target key start
LH: loop header
LB: loop body
LE: loop exit
PB: predicated region body
PF: predicated region fallthrough
CT: control target
= control target key end

     0   :  { %v5082_v0 = vmov 0   ;;  %v81_v9 = vlaneseq  ;;  %vm106_vm0 = vcmask 130048   ;;  %v5083_v12 = vmov 0.0   ;;  %s5088_s28 = smov 96   ;;  %s5945_s0 = inlined_call_operand.vmem [shape: s32[16,1], index: 0, kind: input, shape index: {}]   ;;  %s5946_s3 = inlined_call_operand.vmem [shape: f32[16,32], index: 3, kind: input, shape index: {}]   ;;  %s5947_s2 = inlined_call_operand.vmem [shape: f32[8,2,16], index: 2, kind: input, shape index: {}]   ;;  %s5948_s11 = inlined_call_operand.vmem [shape: f32[2,32,128], index: 11, kind: input, shape index: {}]   ;;  %s5949_s16 = inlined_call_operand.vmem [shape: f32[32,40], index: 16, kind: input, shape index: {}]   ;;  %s5950_s19 = inlined_call_operand.vmem [shape: f32[1,40], index: 19, kind: input, shape index: {}]   ;;  %s5951_s20 = inlined_call_operand.vmem [shape: f32[1,40], index: 20, kind: input, shape index: {}]   ;;  %s5952_s21 = inlined_call_operand.vmem [shape: f32[40,16], index: 21, kind: input, shape index: {}]   ;;  %s5953_s22 = inlined_call_operand.vmem [shape: f32[1,16], index: 22, kind: input, shape index: {}]   ;;  %s5954_s7 = inlined_call_operand.vmem [shape: f32[2,32,128], index: 7, kind: input, shape index: {}]   ;;  %s5955_s8 = inlined_call_operand.vmem [shape: f32[2,32,128], index: 8, kind: input, shape index: {}]   ;;  %s5956_s4 = inlined_call_operand.vmem [shape: f32[1,32], index: 4, kind: input, shape index: {}]   ;;  %s5957_s9 = inlined_call_operand.vmem [shape: f32[2,1,128], index: 9, kind: input, shape index: {}]   ;;  %s5958_s1 = inlined_call_operand.vmem [shape: s32[8,2,1], index: 1, kind: input, shape index: {}]   ;;  %s5959_s23 = inlined_call_operand.vmem [shape: f32[8,2,1], index: 23, kind: output, shape index: {0}]   ;;  %s5960_s24 = inlined_call_operand.vmem [shape: s32[8,2,1], index: 24, kind: output, shape index: {1}]   ;;  %s5961_s13 = inlined_call_operand.vmem [shape: f32[2,1], index: 13, kind: input, shape index: {}]   ;;  %s5962_s17 = inlined_call_operand.vmem [shape: f32[8,40], index: 17, kind: input, shape index: {}]   ;;  %s5963_s14 = inlined_call_operand.vmem [shape: f32[1,8], index: 14, kind: input, shape index: {}]   ;;  %s5964_s15 = inlined_call_operand.vmem [shape: f32[1,8], index: 15, kind: input, shape index: {}]   ;;  %s5965_s5 = inlined_call_operand.vmem [shape: f32[16,32], index: 5, kind: input, shape index: {}]   ;;  %s5966_s18 = inlined_call_operand.vmem [shape: f32[1,40], index: 18, kind: input, shape index: {}]   ;;  %s5967_s10 = inlined_call_operand.vmem [shape: f32[2,32,128], index: 10, kind: input, shape index: {}]   ;;  %s5968_s6 = inlined_call_operand.vmem [shape: f32[1,32], index: 6, kind: input, shape index: {}]   ;;  %s5969_s12 = inlined_call_operand.vmem [shape: f32[2,1,128], index: 12, kind: input, shape index: {}]  }
   0x1   :  { %5975 = sst [smem:[#allocation5_spill]] %s5945_s0  ;;  %4912 = vset.pattern.permute.xlu0 %v5082_v0  ;;  %4913 = vset.pattern.permute.xlu1 %v5082_v0  ;;  %v190_v6 = vld [vmem:[%s5954_s7] sm:$0xff]  ;;  %v191_v7 = vld [vmem:[%s5954_s7 + $0x8] sm:$0xff]  ;;  %v192_v19 = vld [vmem:[%s5954_s7 + $0x10] sm:$0xff]  ;;  %vm76_vm3 = vcmask 254976   ;;  %v5084_v21 = vmov 0.0|0.0  }
   0x2   :  { %5976 = sst [smem:[#allocation6_spill]] %s5946_s3  ;;  %s5984_s27 = sld [smem:[#allocation5_spill]]  ;;  %v4679_v8 = vpack.c.bf16 %v191_v7, %v190_v6  ;;  %v5242_v10 = vand.u32 127, %v81_v9  ;;  %v284_v16 = vld [vmem:[%s5955_s8] sm:$0xff]  ;;  %v285_v17 = vld [vmem:[%s5955_s8 + $0x8] sm:$0xff]  ;;  %v193_v20 = vld [vmem:[%s5954_s7 + $0x18] sm:$0xff] }
   0x3   :  { %5977 = sst [smem:[#allocation7_spill]] %s5947_s2  ;;  %s5985_s2 = sld [smem:[#allocation6_spill]]  ;;  %v5256_v18 = vpack.c.bf16 %v285_v17, %v284_v16  ;;  %v4683_v22 = vpack.c.bf16 %v193_v20, %v192_v19  ;;  %77 = vst.msk [vmem:[#allocation2] sm:$0x3] %vm76_vm3, %v5083_v12  ;;  %78 = vst.msk [vmem:[#allocation2 + $0x2] sm:$0x3] %vm76_vm3, %v5083_v12 }
   0x4   :  { %5978 = sst [smem:[#allocation8_spill]] %s5948_s11  ;;  %4680 = vmatprep.subr.bf16.mxu1 %v4679_v8  ;;  %79 = vst.msk [vmem:[#allocation3] sm:$0x3] %vm76_vm3, %v5083_v12  ;;  %80 = vst.msk [vmem:[#allocation3 + $0x2] sm:$0x3] %vm76_vm3, %v5083_v12  ;;  %v286_v23 = vld [vmem:[%s5955_s8 + $0x10] sm:$0xff] }
   0x5   :  { %5979 = sst [smem:[#allocation9_spill]] %s5949_s16  ;;  %4682 = vmatpush3.bf16.msra.mxu1 %v4679_v8  ;;  %v287_v24 = vld [vmem:[%s5955_s8 + $0x18] sm:$0xff]  ;;  %vm201_vm4 = vcmask 261120   ;;  %vm5085_vm5 = vmmov 0   ;;  %v3958_v27 = vld [vmem:[%s5956_s4] ss:$0 sm:$0xff] }
   0x6   :  { %5980 = sst [smem:[#allocation10_spill]] %s5950_s19  ;;  %4684 = vmatprep.subr.bf16.mxu1 %v4683_v22  ;;  %v5281_v25 = vpack.c.bf16 %v287_v24, %v286_v23  ;;  %v3961_v36 = vld [vmem:[%s5957_s9] ss:$0 sm:$0xff]  ;;  %s5086_s4 = smov 64   ;;  %v3971_v55 = vld [vmem:[%s5955_s8 + $0x28] sm:$0xff]  ;;  %v3972_v59 = vld [vmem:[%s5955_s8 + $0x30] sm:$0xff] }
   0x7   :  { %5981 = sst [smem:[#allocation11_spill]] %s5951_s20  ;;  %s5087_s19 = smov 32   ;;  %v3970_v54 = vld [vmem:[%s5955_s8 + $0x20] sm:$0xff]  ;;  %v3967_v58 = vld [vmem:[%s5954_s7 + $0x28] sm:$0xff]  ;;  %v3973_v60 = vld [vmem:[%s5955_s8 + $0x38] sm:$0xff]  ;;  %vm723_vm6 = vcmask 257026  }
   0x8   :  { %5982 = sst [smem:[#allocation12_spill]] %s5952_s21  ;;  %v83_v1 = vld [vmem:[%s5984_s27] sm:$0xff]  ;;  %v84_v4 = vld [vmem:[%s5984_s27 + $0x8] sm:$0xff]  ;;  %v5318_v57 = vpack.c.bf16 %v3971_v55, %v3970_v54  ;;  %v3968_v62 = vld [vmem:[%s5954_s7 + $0x30] sm:$0xff]  ;;  %v5338_v0 = vpack.c.bf16 %v3973_v60, %v3972_v59  ;;  %vm1050_vm7 = vcmask 259076   ;;  %vm1377_vm8 = vcmask 261126  }
   0x9   :  { %5983 = sst [smem:[#allocation13_spill]] %s5953_s22  ;;  %v97_v2 = vld [vmem:[%s5985_s2] sm:$0xff]  ;;  %86 = vperm.xlu0 %4912, %v83_v1   ;;  %v98_v3 = vld [vmem:[%s5985_s2 + $0x8] sm:$0xff]  ;;  %4686 = vmatpush3.bf16.msra.mxu1 %v4683_v22  ;;  %v3969_v63 = vld [vmem:[%s5954_s7 + $0x38] sm:$0xff]  ;;  %vm3060_vm9 = vcmask 1024   ;;  %vm3093_vm10 = vcmask 64512  }
   0xa   :  { %v4675_v5 = vpack.c.bf16 %v98_v3, %v97_v2  ;;  %4693 = vmatprep.subr.bf16.mxu1 %v5084_v21  ;;  %v283_v26 = vld [vmem:[#allocation2] sm:$0x3]  ;;  %v5342_v1 = vpack.c.bf16 %v3969_v63, %v3968_v62  ;;  %v407_v3 = vld [vmem:[#allocation2 + $0x2] sm:$0x3]  ;;  %3062 = vst.msk [vmem:[%s5959_s23] sm:$0x3] %vm3060_vm9, %v5083_v12 }
   0xb   :  { %v362_v43 = vld [vmem:[#allocation3] sm:$0x3] }
   0xc   :  { %4676 = vmatprep.subr.bf16.mxu0 %v4675_v5  ;;  %v3966_v56 = vld [vmem:[%s5954_s7 + $0x20] sm:$0xff] }
   0xd   :  { %89 = vperm.xlu0 %4912, %v84_v4   ;;  %4678 = vmatpush3.bf16.msra.mxu0 %v4675_v5  ;;  %v5329_v61 = vpack.c.bf16 %v3967_v58, %v3966_v56 }
   0xe   :  { %4687 = vmatprep.subr.bf16.mxu0 %v5084_v21 }
  0x88   :  { %v87_v11 = vpop.permute.xlu0 %86 }
  0x89   :  { %vm91_vm1 = vcmp.eq.s32.totalorder %v5242_v10, %v87_v11 }
  0x8a   :  { %v3956_v13 = vsel %vm91_vm1, 1.0, %v5083_v12 }
  0x8b   :  { %4299 = vmatprep.mubr.msk.f32.mxu0 %vm106_vm0, %v3956_v13 }
  0x8c   :  { %v90_v14 = vpop.permute.xlu0 %89 }
  0x8d   :  { %vm92_vm2 = vcmp.eq.s32.totalorder %v5242_v10, %v90_v14  ;;  %v5378_v14 = vld [vmem:[%s5957_s9 + $0x1] ss:$0 sm:$0xff] }
  0x8e   :  { %v3957_v15 = vsel %vm92_vm2, 1.0, %v5083_v12 }
  0x8f   :  { %4300 = vmatmul.mubr.msk.f32.vlgmr.msra.gmra.mrb[0].mxu0 %vm106_vm0, %v3957_v15 }
  0x90   :  { %4689 = vmatpush3.bf16.msra.mxu0 %v5256_v18  ;;  %4321 = vmatprep.mubr.msk.f32.mxu0 %vm5085_vm5, %v5083_v12 }
  0x91   :  { %4690 = vmatprep.subr.bf16.mxu0 %v5084_v21 }
  0x94   :  { %4692 = vmatpush3.bf16.msra.mxu0 %v5281_v25 }
  0x95   :  { %4699 = vmatprep.subr.bf16.mxu0 %v5084_v21 }
  0x97   :  { %4322 = vmatmul.mubr.msk.f32.vlgmr.msra.gmra.mrb[2].mxu0 %vm201_vm4, %v283_v26  ;;  %v568_v26 = vld [vmem:[#allocation3 + $0x2] sm:$0x3] }
  0x98   :  { %4343 = vmatprep.mubr.msk.f32.mxu0 %vm5085_vm5, %v5083_v12  ;;  %4701 = vmatpush3.bf16.msra.mxu0 %v5329_v61 }
  0x99   :  { %4702 = vmatprep.subr.bf16.mxu0 %v5084_v21 }
  0x9c   :  { %4704 = vmatpush3.bf16.msra.mxu0 %v5342_v1 }
  0x9d   :  { %4711 = vmatprep.subr.bf16.mxu0 %v5084_v21 }
 0x162   :  { %v4301_v28 = vpop.f32.mrb[0].mxu0 }
 0x163   :  { %v185_v29 = vadd.f32 %v4301_v28, %v3958_v27  ;;  %v179_v30 = vpop.f32.mrb[1].mxu0 }
 0x164   :  { %v180_v31 = vadd.f32 %v3958_v27, %v179_v30 }
 0x165   :  { %v189_v33 = vmax.f32 %v185_v29, 0.0 }
 0x166   :  { %v188_v32 = vmax.f32 %v180_v31, 0.0 }
 0x168   :  { %4310 = vmatprep.mubr.msk.f32.mxu1 %vm201_vm4, %v188_v32 }
 0x169   :  { %4311 = vmatmul.mubr.msk.f32.vlgmr.msra.gmra.mrb[0].mxu1 %vm201_vm4, %v189_v33 }
 0x16a   :  { %4332 = vmatprep.mubr.msk.f32.mxu1 %vm5085_vm5, %v5083_v12  ;;  %v357_v34 = vpop.f32.mrb[2].mxu0  ;;  %4695 = vmatpush3.bf16.msra.mxu1 %v5318_v57 }
 0x16b   :  { %v4323_v35 = vpop.f32.mrb[3].mxu0  ;;  %4696 = vmatprep.subr.bf16.mxu1 %v5084_v21 }
 0x16e   :  { %4698 = vmatpush3.bf16.msra.mxu1 %v5338_v0 }
 0x16f   :  { %4705 = vmatprep.subr.bf16.mxu1 %v5084_v21 }
 0x171   :  { %4333 = vmatmul.mubr.msk.f32.vlgmr.msra.gmra.mrb[2].mxu1 %vm201_vm4, %v407_v3 }
 0x172   :  { %4707 = vmatpush3.bf16.msra.mxu1 %v5256_v18  ;;  %4354 = vmatprep.mubr.msk.f32.mxu1 %vm5085_vm5, %v5083_v12 }
 0x173   :  { %4708 = vmatprep.subr.bf16.mxu1 %v5084_v21 }
 0x176   :  { %4710 = vmatpush3.bf16.msra.mxu1 %v5281_v25 }
 0x177   :  { %4717 = vmatprep.subr.bf16.mxu1 %v5084_v21 }
 0x23c   :  { %v4312_v37 = vpop.f32.mrb[0].mxu1 }
 0x23d   :  { %v5301_v38 = vadd.f32 %v4312_v37, %v3961_v36  ;;  %v274_v39 = vpop.f32.mrb[1].mxu1 }
 0x23e   :  { %v5303_v40 = vadd.f32 %v3961_v36, %v274_v39 }
 0x240   :  { %v361_v41 = vadd.f32 %v357_v34, %v5303_v40 }
 0x242   :  { %4914 = vtanh.f32 %v361_v41  ;;  %v3965_v44 = vmul.f32 -1.442695, %v361_v41 }
 0x244   :  { %4916 = vpow2.f32 %v3965_v44  ;;  %v482_v9 = vpop.f32.mrb[2].mxu1 }
 0x245   :  { %v4334_v11 = vpop.f32.mrb[3].mxu1 }
 0x24c   :  { %v4915_v42 = vpop.eup %4914 }
 0x24d   :  { %376 = vrot.lane.b32.xlu1 %v4915_v42, %s5086_s4 }
 0x24e   :  { %v4917_v45 = vpop.eup %4916 }
 0x24f   :  { %v366_v46 = vadd.f32 1.0, %v4917_v45 }
 0x251   :  { %371 = vrot.lane.b32.xlu1 %v362_v43, %s5087_s19  ;;  %4918 = vrcp.f32 %v366_v46 }
 0x25b   :  { %v4919_v47 = vpop.eup %4918 }
 0x2bf   :  { %v377_v48 = vpop.permute.xlu1 %376 }
 0x2c0   :  { %v379_v49 = vmul.f32 %v4919_v47, %v377_v48 }
 0x2c2   :  { %381 = vrot.lane.b32.xlu0 %v379_v49, %s5087_s19 }
 0x2c3   :  { %v372_v50 = vpop.permute.xlu1 %371 }
 0x2c4   :  { %v374_v51 = vmul.f32 %v4919_v47, %v372_v50 }
 0x334   :  { %v382_v52 = vpop.permute.xlu0 %381 }
 0x335   :  { %v384_v53 = vadd.f32 %v382_v52, %v374_v51 }
 0x337   :  { %4920 = vtanh.f32 %v384_v53 }
 0x341   :  { %v4921_v2 = vpop.eup %4920 }
 0x342   :  { %387 = vrot.lane.b32.xlu1 %v4921_v2, %s5086_s4 }
 0x346   :  { %397 = vrot.lane.b32.xlu1 %v384_v53, %s5088_s28 }
 0x3b4   :  { %v388_v4 = vpop.permute.xlu1 %387 }
 0x3b5   :  { %v390_v5 = vmul.f32 %v4919_v47, %v388_v4 }
 0x3b7   :  { %392 = vrot.lane.b32.xlu0 %v390_v5, %s5087_s19 }
 0x3b8   :  { %v398_v6 = vpop.permute.xlu1 %397 }
 0x3b9   :  { %400 = vst.msk [vmem:[#allocation3] sm:$0x3] %vm76_vm3, %v398_v6 }
 0x3c0   :  { %v689_v27 = vld [vmem:[#allocation3] sm:$0x3] }
 0x3c1   :  { %v698_v28 = vrot.slane %v689_v27, 6 }
 0x429   :  { %v393_v7 = vpop.permute.xlu0 %392 }
 0x42a   :  { %395 = vst.msk [vmem:[#allocation2] sm:$0x3] %vm76_vm3, %v393_v7  ;;  %4344 = vmatmul.mubr.msk.f32.vlgmr.msra.gmra.mrb[4].mxu0 %vm201_vm4, %v393_v7 }
 0x42b   :  { %4713 = vmatpush3.bf16.msra.mxu0 %v5318_v57  ;;  %4365 = vmatprep.mubr.msk.f32.mxu0 %vm5085_vm5, %v5083_v12 }
 0x42c   :  { %4714 = vmatprep.subr.bf16.mxu0 %v5084_v21 }
 0x42f   :  { %4716 = vmatpush3.bf16.msra.mxu0 %v5338_v0 }
 0x430   :  { %4723 = vmatprep.subr.bf16.mxu0 %v5084_v21 }
 0x431   :  { %v607_v8 = vld [vmem:[#allocation2] sm:$0x3] }
 0x432   :  { %4355 = vmatmul.mubr.msk.f32.vlgmr.msra.gmra.mrb[4].mxu1 %vm201_vm4, %v607_v8 }
 0x433   :  { %4719 = vmatpush3.bf16.msra.mxu1 %v5329_v61  ;;  %4376 = vmatprep.mubr.msk.f32.mxu1 %vm5085_vm5, %v5083_v12 }
 0x434   :  { %4720 = vmatprep.subr.bf16.mxu1 %v5084_v21 }
 0x437   :  { %4722 = vmatpush3.bf16.msra.mxu1 %v5342_v1 }
 0x438   :  { %4729 = vmatprep.subr.bf16.mxu1 %v5084_v21 }
 0x4fd   :  { %v554_v13 = vpop.f32.mrb[4].mxu0 }
 0x4fe   :  { %v555_v15 = vadd.f32 %v554_v13, %v482_v9  ;;  %v4345_v16 = vpop.f32.mrb[5].mxu0 }
 0x500   :  { %v566_v17 = vadd.f32 %v5378_v14, %v555_v15 }
 0x502   :  { %4922 = vtanh.f32 %v566_v17  ;;  %v3978_v30 = vmul.f32 -1.442695, %v566_v17 }
 0x505   :  { %v681_v19 = vpop.f32.mrb[4].mxu1 }
 0x506   :  { %v686_v20 = vrot.slane %v681_v19, 6  ;;  %v4356_v22 = vpop.f32.mrb[5].mxu1 }
 0x508   :  { %v688_v23 = vadd.f32 %v686_v20, %v5303_v40 }
 0x50a   :  { %4924 = vtanh.f32 %v688_v23  ;;  %v3980_v31 = vmul.f32 -1.442695, %v688_v23 }
 0x50b   :  { %4926 = vpow2.f32 %v3978_v30 }
 0x50c   :  { %v4923_v24 = vpop.eup %4922  ;;  %4928 = vpow2.f32 %v3980_v31 }
 0x50d   :  { %582 = vrot.lane.b32.xlu0 %v4923_v24, %s5086_s4 }
 0x511   :  { %577 = vrot.lane.b32.xlu0 %v568_v26, %s5087_s19 }
 0x514   :  { %v4925_v29 = vpop.eup %4924 }
 0x515   :  { %704 = vrot.lane.b32.xlu1 %v4925_v29, %s5086_s4  ;;  %699 = vrot.lane.b32.xlu0 %v698_v28, %s5087_s19  ;;  %v4927_v32 = vpop.eup %4926 }
 0x516   :  { %v572_v33 = vadd.f32 1.0, %v4927_v32  ;;  %v4929_v34 = vpop.eup %4928 }
 0x517   :  { %v693_v35 = vadd.f32 1.0, %v4929_v34 }
 0x518   :  { %4930 = vrcp.f32 %v572_v33 }
 0x519   :  { %4932 = vrcp.f32 %v693_v35 }
 0x522   :  { %v4931_v36 = vpop.eup %4930 }
 0x523   :  { %v4933_v41 = vpop.eup %4932 }
 0x57f   :  { %v583_v37 = vpop.permute.xlu0 %582 }
 0x580   :  { %v585_v39 = vmul.f32 %v4931_v36, %v583_v37 }
 0x582   :  { %587 = vrot.lane.b32.xlu1 %v585_v39, %s5087_s19 }
 0x583   :  { %v578_v44 = vpop.permute.xlu0 %577 }
 0x584   :  { %v580_v45 = vmul.f32 %v4931_v36, %v578_v44 }
 0x587   :  { %v705_v42 = vpop.permute.xlu1 %704  ;;  %v700_v48 = vpop.permute.xlu0 %699 }
 0x588   :  { %v707_v43 = vmul.f32 %v4933_v41, %v705_v42  ;;  %v702_v49 = vmul.f32 %v4933_v41, %v700_v48 }
 0x58a   :  { %709 = vrot.lane.b32.xlu1 %v707_v43, %s5087_s19 }
 0x5f4   :  { %v588_v46 = vpop.permute.xlu1 %587 }
 0x5f5   :  { %v590_v47 = vadd.f32 %v588_v46, %v580_v45 }
 0x5f7   :  { %4934 = vtanh.f32 %v590_v47 }
 0x5fc   :  { %v710_v50 = vpop.permute.xlu1 %709 }
 0x5fd   :  { %v712_v51 = vadd.f32 %v710_v50, %v702_v49 }
 0x5ff   :  { %4936 = vtanh.f32 %v712_v51 }
 0x601   :  { %v4935_v52 = vpop.eup %4934 }
 0x602   :  { %593 = vrot.lane.b32.xlu0 %v4935_v52, %s5086_s4 }
 0x609   :  { %v4937_v53 = vpop.eup %4936 }
 0x60a   :  { %715 = vrot.lane.b32.xlu1 %v4937_v53, %s5086_s4 }
 0x674   :  { %v594_v54 = vpop.permute.xlu0 %593 }
 0x675   :  { %v596_v55 = vmul.f32 %v4931_v36, %v594_v54 }
 0x677   :  { %598 = vrot.lane.b32.xlu0 %v596_v55, %s5087_s19 }
 0x67c   :  { %v716_v56 = vpop.permute.xlu1 %715 }
 0x67d   :  { %v718_v58 = vmul.f32 %v4933_v41, %v716_v56 }
 0x67f   :  { %v812_v59 = vrot.slane %v718_v58, 2  ;;  %720 = vrot.lane.b32.xlu1 %v718_v58, %s5087_s19 }
 0x681   :  { %813 = vrot.lane.b32.xlu0 %v812_v59, %s5087_s19 }
 0x683   :  { %603 = vrot.lane.b32.xlu1 %v590_v47, %s5088_s28 }
 0x685   :  { %726 = vrot.lane.b32.xlu0 %v712_v51, %s5088_s28 }
 0x6e9   :  { %v599_v60 = vpop.permute.xlu0 %598 }
 0x6ea   :  { %601 = vst.msk [vmem:[#allocation2 + $0x2] sm:$0x3] %vm76_vm3, %v599_v60 }
 0x6f1   :  { %v721_v62 = vpop.permute.xlu1 %720  ;;  %v734_v63 = vld [vmem:[#allocation2 + $0x2] sm:$0x3] }
 0x6f2   :  { %724 = vst.msk [vmem:[#allocation2 - $0x2] sm:$0xc] %vm723_vm6, %v721_v62  ;;  %4366 = vmatmul.mubr.msk.f32.vlgmr.msra.gmra.mrb[6].mxu0 %vm201_vm4, %v734_v63 }
 0x6f3   :  { %4725 = vmatpush3.bf16.msra.mxu0 %v5256_v18  ;;  %v814_v2 = vpop.permute.xlu0 %813  ;;  %4387 = vmatprep.mubr.msk.f32.mxu0 %vm5085_vm5, %v5083_v12 }
 0x6f4   :  { %4377 = vmatmul.mubr.msk.f32.vlgmr.msra.gmra.mrb[6].mxu1 %vm201_vm4, %v814_v2  ;;  %4726 = vmatprep.subr.bf16.mxu0 %v5084_v21 }
 0x6f5   :  { %v604_v3 = vpop.permute.xlu1 %603  ;;  %4731 = vmatpush3.bf16.msra.mxu1 %v5318_v57  ;;  %4398 = vmatprep.mubr.msk.f32.mxu1 %vm5085_vm5, %v5083_v12 }
 0x6f6   :  { %606 = vst.msk [vmem:[#allocation3 + $0x2] sm:$0x3] %vm76_vm3, %v604_v3  ;;  %4732 = vmatprep.subr.bf16.mxu1 %v5084_v21 }
 0x6f7   :  { %4728 = vmatpush3.bf16.msra.mxu0 %v5281_v25  ;;  %v727_v4 = vpop.permute.xlu0 %726 }
 0x6f8   :  { %729 = vst.msk [vmem:[#allocation3 - $0x2] sm:$0xc] %vm723_vm6, %v727_v4  ;;  %4735 = vmatprep.subr.bf16.mxu0 %v5084_v21 }
 0x6f9   :  { %v934_v5 = vld [vmem:[#allocation2] sm:$0x3]  ;;  %4734 = vmatpush3.bf16.msra.mxu1 %v5338_v0 }
 0x6fa   :  { %4388 = vmatmul.mubr.msk.f32.vlgmr.msra.gmra.mrb[8].mxu0 %vm201_vm4, %v934_v5  ;;  %4741 = vmatprep.subr.bf16.mxu1 %v5084_v21 }
 0x6fb   :  { %4737 = vmatpush3.bf16.msra.mxu0 %v5329_v61  ;;  %4409 = vmatprep.mubr.msk.f32.mxu0 %vm5085_vm5, %v5083_v12 }
 0x6fc   :  { %4738 = vmatprep.subr.bf16.mxu0 %v5084_v21 }
 0x6fd   :  { %v895_v22 = vld [vmem:[#allocation3 + $0x2] sm:$0x3] }
 0x6ff   :  { %4740 = vmatpush3.bf16.msra.mxu0 %v5342_v1  ;;  %v1016_v23 = vld [vmem:[#allocation3] sm:$0x3] }
 0x700   :  { %4747 = vmatprep.subr.bf16.mxu0 %v5084_v21  ;;  %v1025_v26 = vrot.slane %v1016_v23, 4 }
 0x7c5   :  { %v808_v6 = vpop.f32.mrb[6].mxu0 }
 0x7c6   :  { %v4367_v7 = vpop.f32.mrb[7].mxu0 }
 0x7c7   :  { %v883_v8 = vpop.f32.mrb[6].mxu1 }
 0x7c8   :  { %v884_v9 = vadd.f32 %v883_v8, %v808_v6  ;;  %v4378_v11 = vpop.f32.mrb[7].mxu1 }
 0x7ca   :  { %v894_v13 = vadd.f32 %v5378_v14, %v884_v9 }
 0x7cc   :  { %4938 = vtanh.f32 %v894_v13  ;;  %v3993_v27 = vmul.f32 -1.442695, %v894_v13 }
 0x7cd   :  { %v1008_v15 = vpop.f32.mrb[8].mxu0 }
 0x7ce   :  { %v1013_v16 = vrot.slane %v1008_v15, 4  ;;  %v4389_v17 = vpop.f32.mrb[9].mxu0 }
 0x7d0   :  { %v1015_v19 = vadd.f32 %v1013_v16, %v5303_v40 }
 0x7d2   :  { %4940 = vtanh.f32 %v1015_v19  ;;  %v3995_v28 = vmul.f32 -1.442695, %v1015_v19 }
 0x7d3   :  { %4942 = vpow2.f32 %v3993_v27 }
 0x7d4   :  { %4944 = vpow2.f32 %v3995_v28 }
 0x7d6   :  { %v4939_v20 = vpop.eup %4938 }
 0x7d7   :  { %909 = vrot.lane.b32.xlu1 %v4939_v20, %s5086_s4 }
 0x7db   :  { %904 = vrot.lane.b32.xlu1 %v895_v22, %s5087_s19 }
 0x7dc   :  { %v4941_v24 = vpop.eup %4940 }
 0x7dd   :  { %1031 = vrot.lane.b32.xlu0 %v4941_v24, %s5086_s4  ;;  %v4943_v29 = vpop.eup %4942 }
 0x7de   :  { %v899_v30 = vadd.f32 1.0, %v4943_v29  ;;  %v4945_v31 = vpop.eup %4944 }
 0x7df   :  { %1026 = vrot.lane.b32.xlu1 %v1025_v26, %s5087_s19  ;;  %v1020_v32 = vadd.f32 1.0, %v4945_v31 }
 0x7e0   :  { %4946 = vrcp.f32 %v899_v30 }
 0x7e1   :  { %4948 = vrcp.f32 %v1020_v32 }
 0x7ea   :  { %v4947_v33 = vpop.eup %4946 }
 0x7eb   :  { %v4949_v36 = vpop.eup %4948 }
 0x849   :  { %v910_v34 = vpop.permute.xlu1 %909 }
 0x84a   :  { %v912_v35 = vmul.f32 %v4947_v33, %v910_v34 }
 0x84c   :  { %914 = vrot.lane.b32.xlu0 %v912_v35, %s5087_s19 }
 0x84d   :  { %v905_v41 = vpop.permute.xlu1 %904 }
 0x84e   :  { %v907_v42 = vmul.f32 %v4947_v33, %v905_v41 }
 0x84f   :  { %v1032_v37 = vpop.permute.xlu0 %1031 }
 0x850   :  { %v1034_v39 = vmul.f32 %v4949_v36, %v1032_v37 }
 0x851   :  { %v1027_v45 = vpop.permute.xlu1 %1026 }
 0x852   :  { %1036 = vrot.lane.b32.xlu0 %v1034_v39, %s5087_s19  ;;  %v1029_v46 = vmul.f32 %v4949_v36, %v1027_v45 }
 0x8be   :  { %v915_v43 = vpop.permute.xlu0 %914 }
 0x8bf   :  { %v917_v44 = vadd.f32 %v915_v43, %v907_v42 }
 0x8c1   :  { %4950 = vtanh.f32 %v917_v44 }
 0x8c4   :  { %v1037_v47 = vpop.permute.xlu0 %1036 }
 0x8c5   :  { %v1039_v48 = vadd.f32 %v1037_v47, %v1029_v46 }
 0x8c7   :  { %4952 = vtanh.f32 %v1039_v48 }
 0x8cb   :  { %v4951_v49 = vpop.eup %4950 }
 0x8cc   :  { %920 = vrot.lane.b32.xlu1 %v4951_v49, %s5086_s4 }
 0x8d1   :  { %v4953_v50 = vpop.eup %4952 }
 0x8d2   :  { %1042 = vrot.lane.b32.xlu0 %v4953_v50, %s5086_s4 }
 0x93e   :  { %v921_v51 = vpop.permute.xlu1 %920 }
 0x93f   :  { %v923_v52 = vmul.f32 %v4947_v33, %v921_v51 }
 0x941   :  { %925 = vrot.lane.b32.xlu1 %v923_v52, %s5087_s19 }
 0x944   :  { %v1043_v53 = vpop.permute.xlu0 %1042 }
 0x945   :  { %v1045_v54 = vmul.f32 %v4949_v36, %v1043_v53 }
 0x947   :  { %v1139_v55 = vrot.slane %v1045_v54, 4  ;;  %1047 = vrot.lane.b32.xlu0 %v1045_v54, %s5087_s19 }
 0x949   :  { %1140 = vrot.lane.b32.xlu1 %v1139_v55, %s5087_s19 }
 0x94b   :  { %930 = vrot.lane.b32.xlu0 %v917_v44, %s5088_s28 }
 0x94d   :  { %1053 = vrot.lane.b32.xlu1 %v1039_v48, %s5088_s28 }
 0x9b3   :  { %v926_v56 = vpop.permute.xlu1 %925 }
 0x9b4   :  { %928 = vst.msk [vmem:[#allocation2 + $0x2] sm:$0x3] %vm76_vm3, %v926_v56 }
 0x9b9   :  { %v1048_v58 = vpop.permute.xlu0 %1047 }
 0x9ba   :  { %1051 = vst.msk [vmem:[#allocation2 - $0x4] sm:$0x30] %vm1050_vm7, %v1048_v58 }
 0x9bb   :  { %v1141_v59 = vpop.permute.xlu1 %1140  ;;  %v1061_v60 = vld [vmem:[#allocation2 + $0x2] sm:$0x3] }
 0x9bc   :  { %4399 = vmatmul.mubr.msk.f32.vlgmr.msra.gmra.mrb[8].mxu1 %vm201_vm4, %v1061_v60  ;;  %4410 = vmatmul.mubr.msk.f32.vlgmr.msra.gmra.mrb[10].mxu0 %vm201_vm4, %v1141_v59 }
 0x9bd   :  { %4743 = vmatpush3.bf16.msra.mxu1 %v5256_v18  ;;  %v931_v62 = vpop.permute.xlu0 %930  ;;  %4420 = vmatprep.mubr.msk.f32.mxu1 %vm5085_vm5, %v5083_v12 }
 0x9be   :  { %933 = vst.msk [vmem:[#allocation3 + $0x2] sm:$0x3] %vm76_vm3, %v931_v62  ;;  %4744 = vmatprep.subr.bf16.mxu1 %v5084_v21  ;;  %4749 = vmatpush3.bf16.msra.mxu0 %v5318_v57 }
 0x9bf   :  { %v1054_v63 = vpop.permute.xlu1 %1053  ;;  %4750 = vmatprep.subr.bf16.mxu0 %v5084_v21  ;;  %4431 = vmatprep.mubr.msk.f32.mxu0 %vm5085_vm5, %v5083_v12 }
 0x9c0   :  { %1056 = vst.msk [vmem:[#allocation3 - $0x4] sm:$0x30] %vm1050_vm7, %v1054_v63 }
 0x9c1   :  { %4746 = vmatpush3.bf16.msra.mxu1 %v5281_v25  ;;  %v1261_v2 = vld [vmem:[#allocation2] sm:$0x3] }
 0x9c2   :  { %4753 = vmatprep.subr.bf16.mxu1 %v5084_v21  ;;  %4752 = vmatpush3.bf16.msra.mxu0 %v5338_v0 }
 0x9c3   :  { %4759 = vmatprep.subr.bf16.mxu0 %v5084_v21 }
 0x9c4   :  { %4421 = vmatmul.mubr.msk.f32.vlgmr.msra.gmra.mrb[10].mxu1 %vm201_vm4, %v1261_v2 }
 0x9c5   :  { %4755 = vmatpush3.bf16.msra.mxu1 %v5329_v61  ;;  %4442 = vmatprep.mubr.msk.f32.mxu1 %vm5085_vm5, %v5083_v12  ;;  %v1222_v17 = vld [vmem:[#allocation3 + $0x2] sm:$0x3] }
 0x9c6   :  { %4756 = vmatprep.subr.bf16.mxu1 %v5084_v21 }
 0x9c7   :  { %v1343_v19 = vld [vmem:[#allocation3] sm:$0x3] }
 0x9c8   :  { %v1352_v20 = vrot.slane %v1343_v19, 2 }
 0x9c9   :  { %4758 = vmatpush3.bf16.msra.mxu1 %v5342_v1 }
 0x9ca   :  { %4765 = vmatprep.subr.bf16.mxu1 %v5084_v21 }
 0xa8f   :  { %v1135_v3 = vpop.f32.mrb[8].mxu1  ;;  %v1210_v4 = vpop.f32.mrb[10].mxu0 }
 0xa90   :  { %v1211_v5 = vadd.f32 %v1210_v4, %v1135_v3  ;;  %v4400_v6 = vpop.f32.mrb[9].mxu1  ;;  %v4411_v7 = vpop.f32.mrb[11].mxu0 }
 0xa92   :  { %v1221_v8 = vadd.f32 %v5378_v14, %v1211_v5 }
 0xa94   :  { %4954 = vtanh.f32 %v1221_v8  ;;  %v4008_v23 = vmul.f32 -1.442695, %v1221_v8 }
 0xa97   :  { %v1335_v9 = vpop.f32.mrb[10].mxu1 }
 0xa98   :  { %v1340_v11 = vrot.slane %v1335_v9, 2  ;;  %v4422_v13 = vpop.f32.mrb[11].mxu1 }
 0xa9a   :  { %v1342_v15 = vadd.f32 %v1340_v11, %v5303_v40 }
 0xa9c   :  { %4956 = vtanh.f32 %v1342_v15  ;;  %v4010_v24 = vmul.f32 -1.442695, %v1342_v15 }
 0xa9d   :  { %4958 = vpow2.f32 %v4008_v23 }
 0xa9e   :  { %v4955_v16 = vpop.eup %4954  ;;  %4960 = vpow2.f32 %v4010_v24 }
 0xa9f   :  { %1236 = vrot.lane.b32.xlu0 %v4955_v16, %s5086_s4 }
 0xaa3   :  { %1231 = vrot.lane.b32.xlu0 %v1222_v17, %s5087_s19 }
 0xaa6   :  { %v4957_v22 = vpop.eup %4956 }
 0xaa7   :  { %1358 = vrot.lane.b32.xlu1 %v4957_v22, %s5086_s4  ;;  %1353 = vrot.lane.b32.xlu0 %v1352_v20, %s5087_s19  ;;  %v4959_v26 = vpop.eup %4958 }
 0xaa8   :  { %v1226_v40 = vadd.f32 1.0, %v4959_v26  ;;  %v4961_v27 = vpop.eup %4960 }
 0xaa9   :  { %v1347_v28 = vadd.f32 1.0, %v4961_v27 }
 0xaaa   :  { %4962 = vrcp.f32 %v1226_v40 }
 0xaab   :  { %4964 = vrcp.f32 %v1347_v28 }
 0xab4   :  { %v4963_v29 = vpop.eup %4962 }
 0xab5   :  { %v4965_v32 = vpop.eup %4964 }
 0xb11   :  { %v1237_v30 = vpop.permute.xlu0 %1236 }
 0xb12   :  { %v1239_v31 = vmul.f32 %v4963_v29, %v1237_v30 }
 0xb14   :  { %1241 = vrot.lane.b32.xlu1 %v1239_v31, %s5087_s19 }
 0xb15   :  { %v1232_v35 = vpop.permute.xlu0 %1231 }
 0xb16   :  { %v1234_v36 = vmul.f32 %v4963_v29, %v1232_v35 }
 0xb19   :  { %v1359_v33 = vpop.permute.xlu1 %1358  ;;  %v1354_v41 = vpop.permute.xlu0 %1353 }
 0xb1a   :  { %v1361_v34 = vmul.f32 %v4965_v32, %v1359_v33  ;;  %v1356_v42 = vmul.f32 %v4965_v32, %v1354_v41 }
 0xb1c   :  { %1363 = vrot.lane.b32.xlu1 %v1361_v34, %s5087_s19 }
 0xb86   :  { %v1242_v37 = vpop.permute.xlu1 %1241 }
 0xb87   :  { %v1244_v39 = vadd.f32 %v1242_v37, %v1234_v36 }
 0xb89   :  { %4966 = vtanh.f32 %v1244_v39 }
 0xb8e   :  { %v1364_v43 = vpop.permute.xlu1 %1363 }
 0xb8f   :  { %v1366_v44 = vadd.f32 %v1364_v43, %v1356_v42 }
 0xb91   :  { %4968 = vtanh.f32 %v1366_v44 }
 0xb93   :  { %v4967_v45 = vpop.eup %4966 }
 0xb94   :  { %1247 = vrot.lane.b32.xlu0 %v4967_v45, %s5086_s4 }
 0xb9b   :  { %v4969_v46 = vpop.eup %4968 }
 0xb9c   :  { %1369 = vrot.lane.b32.xlu1 %v4969_v46, %s5086_s4 }
 0xc06   :  { %v1248_v47 = vpop.permute.xlu0 %1247 }
 0xc07   :  { %v1250_v48 = vmul.f32 %v4963_v29, %v1248_v47 }
 0xc09   :  { %1252 = vrot.lane.b32.xlu0 %v1250_v48, %s5087_s19 }
 0xc0e   :  { %v1370_v49 = vpop.permute.xlu1 %1369 }
 0xc0f   :  { %v1372_v50 = vmul.f32 %v4965_v32, %v1370_v49 }
 0xc11   :  { %v1466_v51 = vrot.slane %v1372_v50, 6  ;;  %1374 = vrot.lane.b32.xlu0 %v1372_v50, %s5087_s19 }
 0xc13   :  { %1467 = vrot.lane.b32.xlu1 %v1466_v51, %s5087_s19 }
 0xc15   :  { %1380 = vrot.lane.b32.xlu0 %v1366_v44, %s5088_s28 }
 0xc17   :  { %1257 = vrot.lane.b32.xlu1 %v1244_v39, %s5088_s28 }
 0xc7b   :  { %v1253_v52 = vpop.permute.xlu0 %1252 }
 0xc7c   :  { %1255 = vst.msk [vmem:[#allocation2 + $0x2] sm:$0x3] %vm76_vm3, %v1253_v52 }
 0xc83   :  { %v1375_v53 = vpop.permute.xlu0 %1374  ;;  %v1388_v54 = vld [vmem:[#allocation2 + $0x2] sm:$0x3] }
 0xc84   :  { %1378 = vst.msk [vmem:[#allocation2 - $0x6] sm:$0xc0] %vm1377_vm8, %v1375_v53  ;;  %4432 = vmatmul.mubr.msk.f32.vlgmr.msra.gmra.mrb[12].mxu0 %vm201_vm4, %v1388_v54 }
 0xc85   :  { %4761 = vmatpush3.bf16.msra.mxu0 %v5256_v18  ;;  %v1468_v55 = vpop.permute.xlu1 %1467  ;;  %4453 = vmatprep.mubr.msk.f32.mxu0 %vm5085_vm5, %v5083_v12 }
 0xc86   :  { %4443 = vmatmul.mubr.msk.f32.vlgmr.msra.gmra.mrb[12].mxu1 %vm201_vm4, %v1468_v55  ;;  %4762 = vmatprep.subr.bf16.mxu0 %v5084_v21 }
 0xc87   :  { %v1381_v56 = vpop.permute.xlu0 %1380  ;;  %4767 = vmatpush3.bf16.msra.mxu1 %v5318_v57  ;;  %4464 = vmatprep.mubr.msk.f32.mxu1 %vm5085_vm5, %v5083_v12 }
 0xc88   :  { %1383 = vst.msk [vmem:[#allocation3 - $0x6] sm:$0xc0] %vm1377_vm8, %v1381_v56  ;;  %4768 = vmatprep.subr.bf16.mxu1 %v5084_v21 }
 0xc89   :  { %4764 = vmatpush3.bf16.msra.mxu0 %v5281_v25  ;;  %v1258_v58 = vpop.permute.xlu1 %1257 }
 0xc8a   :  { %1260 = vst.msk [vmem:[#allocation3 + $0x2] sm:$0x3] %vm76_vm3, %v1258_v58  ;;  %4771 = vmatprep.subr.bf16.mxu0 %v5084_v21 }
 0xc8b   :  { %v1588_v59 = vld [vmem:[#allocation2] sm:$0x3]  ;;  %4770 = vmatpush3.bf16.msra.mxu1 %v5338_v0 }
 0xc8c   :  { %4454 = vmatmul.mubr.msk.f32.vlgmr.msra.gmra.mrb[14].mxu0 %vm201_vm4, %v1588_v59  ;;  %4777 = vmatprep.subr.bf16.mxu1 %v5084_v21 }
 0xc8d   :  { %4773 = vmatpush3.bf16.msra.mxu0 %v5329_v61  ;;  %4475 = vmatprep.mubr.msk.f32.mxu0 %vm5085_vm5, %v5083_v12 }
 0xc8e   :  { %4774 = vmatprep.subr.bf16.mxu0 %v5084_v21 }
 0xc8f   :  { %v1667_v13 = vld [vmem:[#allocation3] sm:$0x3] }
 0xc91   :  { %4776 = vmatpush3.bf16.msra.mxu0 %v5342_v1  ;;  %v1549_v11 = vld [vmem:[#allocation3 + $0x2] sm:$0x3] }
 0xc92   :  { %4783 = vmatprep.subr.bf16.mxu0 %v5084_v21 }
 0xd57   :  { %v1462_v60 = vpop.f32.mrb[12].mxu0 }
 0xd58   :  { %v4433_v62 = vpop.f32.mrb[13].mxu0 }
 0xd59   :  { %v1537_v63 = vpop.f32.mrb[12].mxu1 }
 0xd5a   :  { %v1538_v2 = vadd.f32 %v1537_v63, %v1462_v60  ;;  %v4444_v3 = vpop.f32.mrb[13].mxu1 }
 0xd5c   :  { %v1548_v4 = vadd.f32 %v5378_v14, %v1538_v2 }
 0xd5e   :  { %4970 = vtanh.f32 %v1548_v4  ;;  %v4023_v15 = vmul.f32 -1.442695, %v1548_v4 }
 0xd5f   :  { %v1662_v5 = vpop.f32.mrb[14].mxu0 }
 0xd60   :  { %v1666_v6 = vadd.f32 %v1662_v5, %v5301_v38  ;;  %v4455_v7 = vpop.f32.mrb[15].mxu0 }
 0xd62   :  { %4972 = vtanh.f32 %v1666_v6  ;;  %v4025_v16 = vmul.f32 -1.442695, %v1666_v6 }
 0xd63   :  { %4974 = vpow2.f32 %v4023_v15 }
 0xd64   :  { %4976 = vpow2.f32 %v4025_v16 }
 0xd68   :  { %v4971_v8 = vpop.eup %4970 }
 0xd69   :  { %1563 = vrot.lane.b32.xlu1 %v4971_v8, %s5086_s4 }
 0xd6c   :  { %v4973_v9 = vpop.eup %4972 }
 0xd6d   :  { %1681 = vrot.lane.b32.xlu0 %v4973_v9, %s5086_s4  ;;  %1558 = vrot.lane.b32.xlu1 %v1549_v11, %s5087_s19  ;;  %v4975_v17 = vpop.eup %4974 }
 0xd6e   :  { %v1553_v19 = vadd.f32 1.0, %v4975_v17  ;;  %v4977_v20 = vpop.eup %4976 }
 0xd6f   :  { %v1671_v22 = vadd.f32 1.0, %v4977_v20 }
 0xd70   :  { %4978 = vrcp.f32 %v1553_v19 }
 0xd71   :  { %1676 = vrot.lane.b32.xlu1 %v1667_v13, %s5087_s19  ;;  %4980 = vrcp.f32 %v1671_v22 }
 0xd7a   :  { %v4979_v23 = vpop.eup %4978 }
 0xd7b   :  { %v4981_v40 = vpop.eup %4980 }
 0xddb   :  { %v1564_v24 = vpop.permute.xlu1 %1563 }
 0xddc   :  { %v1566_v26 = vmul.f32 %v4979_v23, %v1564_v24 }
 0xdde   :  { %1568 = vrot.lane.b32.xlu0 %v1566_v26, %s5087_s19 }
 0xddf   :  { %v1682_v27 = vpop.permute.xlu0 %1681  ;;  %v1559_v29 = vpop.permute.xlu1 %1558 }
 0xde0   :  { %v1684_v28 = vmul.f32 %v4981_v40, %v1682_v27  ;;  %v1561_v30 = vmul.f32 %v4979_v23, %v1559_v29 }
 0xde2   :  { %1686 = vrot.lane.b32.xlu0 %v1684_v28, %s5087_s19 }
 0xde3   :  { %v1677_v31 = vpop.permute.xlu1 %1676 }
 0xde4   :  { %v1679_v34 = vmul.f32 %v4981_v40, %v1677_v31 }
 0xe50   :  { %v1569_v32 = vpop.permute.xlu0 %1568 }
 0xe51   :  { %v1571_v33 = vadd.f32 %v1569_v32, %v1561_v30  ;;  %v2234_v32 = vld [vmem:[%s5955_s8] sm:$0xff] }
 0xe53   :  { %4982 = vtanh.f32 %v1571_v33 }
 0xe54   :  { %v1687_v35 = vpop.permute.xlu0 %1686 }
 0xe55   :  { %v1689_v36 = vadd.f32 %v1687_v35, %v1679_v34  ;;  %v2236_v35 = vld [vmem:[%s5955_s8 + $0x10] sm:$0xff] }
 0xe57   :  { %4984 = vtanh.f32 %v1689_v36 }
 0xe5d   :  { %v4983_v37 = vpop.eup %4982 }
 0xe5e   :  { %1574 = vrot.lane.b32.xlu1 %v4983_v37, %s5086_s4 }
 0xe61   :  { %v4985_v39 = vpop.eup %4984 }
 0xe62   :  { %1692 = vrot.lane.b32.xlu0 %v4985_v39, %s5086_s4 }
 0xed0   :  { %v1575_v41 = vpop.permute.xlu1 %1574 }
 0xed1   :  { %v1577_v42 = vmul.f32 %v4979_v23, %v1575_v41 }
 0xed3   :  { %1579 = vrot.lane.b32.xlu1 %v1577_v42, %s5087_s19 }
 0xed4   :  { %v1693_v43 = vpop.permute.xlu0 %1692 }
 0xed5   :  { %v1695_v44 = vmul.f32 %v4981_v40, %v1693_v43 }
 0xed7   :  { %1697 = vrot.lane.b32.xlu0 %v1695_v44, %s5087_s19  ;;  %1584 = vrot.lane.b32.xlu1 %v1571_v33, %s5088_s28  ;;  %v2235_v33 = vld [vmem:[%s5955_s8 + $0x8] sm:$0xff] }
 0xed8   :  { %v5561_v34 = vpack.c.bf16 %v2235_v33, %v2234_v32  ;;  %v4059_v32 = vld [vmem:[%s5954_s7 + $0x38] sm:$0xff] }
 0xedb   :  { %1702 = vrot.lane.b32.xlu0 %v1689_v36, %s5088_s28  ;;  %v2237_v36 = vld [vmem:[%s5955_s8 + $0x18] sm:$0xff] }
 0xedc   :  { %v5572_v42 = vpack.c.bf16 %v2237_v36, %v2236_v35 }
 0xf45   :  { %v1580_v45 = vpop.permute.xlu1 %1579 }
 0xf46   :  { %1582 = vst.msk [vmem:[#allocation2 + $0x2] sm:$0x3] %vm76_vm3, %v1580_v45 }
 0xf49   :  { %v1698_v46 = vpop.permute.xlu0 %1697  ;;  %v1585_v47 = vpop.permute.xlu1 %1584 }
 0xf4a   :  { %1700 = vst.msk [vmem:[#allocation2] sm:$0x3] %vm76_vm3, %v1698_v46  ;;  %1587 = vst.msk [vmem:[#allocation3 + $0x2] sm:$0x3] %vm76_vm3, %v1585_v47  ;;  %4476 = vmatmul.mubr.msk.f32.vlgmr.msra.gmra.mrb[16].mxu0 %vm201_vm4, %v1698_v46 }
 0xf4b   :  { %4785 = vmatpush3.bf16.msra.mxu0 %v5318_v57  ;;  %4497 = vmatprep.mubr.msk.f32.mxu0 %vm5085_vm5, %v5083_v12 }
 0xf4c   :  { %4786 = vmatprep.subr.bf16.mxu0 %v5084_v21 }
 0xf4d   :  { %v1703_v48 = vpop.permute.xlu0 %1702  ;;  %v1710_v49 = vld [vmem:[#allocation2 + $0x2] sm:$0x3] }
 0xf4e   :  { %1705 = vst.msk [vmem:[#allocation3] sm:$0x3] %vm76_vm3, %v1703_v48  ;;  %4465 = vmatmul.mubr.msk.f32.vlgmr.msra.gmra.mrb[14].mxu1 %vm201_vm4, %v1710_v49  ;;  %v5590_v49 = vld [vmem:[%s5957_s9 + $0x1] ss:$0 sm:$0xff] }
 0xf4f   :  { %4779 = vmatpush3.bf16.msra.mxu1 %v5256_v18  ;;  %4486 = vmatprep.mubr.msk.f32.mxu1 %vm5085_vm5, %v5083_v12 }
 0xf50   :  { %4780 = vmatprep.subr.bf16.mxu1 %v5084_v21  ;;  %4788 = vmatpush3.bf16.msra.mxu0 %v5338_v0 }
 0xf51   :  { %4795 = vmatprep.subr.bf16.mxu0 %v5084_v21  ;;  %v1907_v57 = vld [vmem:[#allocation2] sm:$0x3] }
 0xf53   :  { %4782 = vmatpush3.bf16.msra.mxu1 %v5281_v25 }
 0xf54   :  { %4789 = vmatprep.subr.bf16.mxu1 %v5084_v21 }
 0xf55   :  { %v1989_v58 = vld [vmem:[#allocation3] sm:$0x3] }
 0xf56   :  { %4487 = vmatmul.mubr.msk.f32.vlgmr.msra.gmra.mrb[16].mxu1 %vm201_vm4, %v1907_v57  ;;  %v1998_v59 = vrot.slane %v1989_v58, 6 }
 0xf57   :  { %4791 = vmatpush3.bf16.msra.mxu1 %v5329_v61  ;;  %4508 = vmatprep.mubr.msk.f32.mxu1 %vm5085_vm5, %v5083_v12 }
 0xf58   :  { %4792 = vmatprep.subr.bf16.mxu1 %v5084_v21 }
 0xf5b   :  { %4794 = vmatpush3.bf16.msra.mxu1 %v5342_v1  ;;  %v1868_v1 = vld [vmem:[#allocation3 + $0x2] sm:$0x3] }
 0xf5c   :  { %4801 = vmatprep.subr.bf16.mxu1 %v5084_v21 }
0x101d   :  { %v1856_v18 = vpop.f32.mrb[16].mxu0 }
0x101e   :  { %v4477_v0 = vpop.f32.mrb[17].mxu0 }
0x1021   :  { %v1784_v50 = vpop.f32.mrb[14].mxu1 }
0x1022   :  { %v1857_v25 = vadd.f32 %v1856_v18, %v1784_v50  ;;  %v4466_v51 = vpop.f32.mrb[15].mxu1 }
0x1024   :  { %v1867_v52 = vadd.f32 %v5378_v14, %v1857_v25 }
0x1026   :  { %4986 = vtanh.f32 %v1867_v52  ;;  %v4038_v14 = vmul.f32 -1.442695, %v1867_v52 }
0x1029   :  { %v1981_v53 = vpop.f32.mrb[16].mxu1 }
0x102a   :  { %v1986_v54 = vrot.slane %v1981_v53, 6  ;;  %v4488_v61 = vpop.f32.mrb[17].mxu1 }
0x102c   :  { %v1988_v55 = vadd.f32 %v1986_v54, %v5301_v38 }
0x102e   :  { %4988 = vtanh.f32 %v1988_v55  ;;  %v4040_v62 = vmul.f32 -1.442695, %v1988_v55 }
0x102f   :  { %4990 = vpow2.f32 %v4038_v14 }
0x1030   :  { %v4987_v56 = vpop.eup %4986  ;;  %4992 = vpow2.f32 %v4040_v62 }
0x1031   :  { %1882 = vrot.lane.b32.xlu1 %v4987_v56, %s5086_s4 }
0x1035   :  { %1877 = vrot.lane.b32.xlu1 %v1868_v1, %s5087_s19 }
0x1038   :  { %v4989_v60 = vpop.eup %4988 }
0x1039   :  { %2004 = vrot.lane.b32.xlu0 %v4989_v60, %s5086_s4  ;;  %1999 = vrot.lane.b32.xlu1 %v1998_v59, %s5087_s19  ;;  %v4991_v63 = vpop.eup %4990 }
0x103a   :  { %v1872_v2 = vadd.f32 1.0, %v4991_v63  ;;  %v4993_v3 = vpop.eup %4992 }
0x103b   :  { %v1993_v4 = vadd.f32 1.0, %v4993_v3 }
0x103c   :  { %4994 = vrcp.f32 %v1872_v2 }
0x103d   :  { %4996 = vrcp.f32 %v1993_v4 }
0x1046   :  { %v4995_v5 = vpop.eup %4994 }
0x1047   :  { %v4997_v8 = vpop.eup %4996 }
0x10a3   :  { %v1883_v6 = vpop.permute.xlu1 %1882 }
0x10a4   :  { %v1885_v7 = vmul.f32 %v4995_v5, %v1883_v6 }
0x10a6   :  { %1887 = vrot.lane.b32.xlu0 %v1885_v7, %s5087_s19 }
0x10a7   :  { %v1878_v13 = vpop.permute.xlu1 %1877 }
0x10a8   :  { %v1880_v15 = vmul.f32 %v4995_v5, %v1878_v13 }
0x10ab   :  { %v2005_v9 = vpop.permute.xlu0 %2004  ;;  %v2000_v19 = vpop.permute.xlu1 %1999 }
0x10ac   :  { %v2007_v11 = vmul.f32 %v4997_v8, %v2005_v9  ;;  %v2002_v20 = vmul.f32 %v4997_v8, %v2000_v19 }
0x10ae   :  { %2009 = vrot.lane.b32.xlu0 %v2007_v11, %s5087_s19 }
0x1118   :  { %v1888_v16 = vpop.permute.xlu0 %1887 }
0x1119   :  { %v1890_v17 = vadd.f32 %v1888_v16, %v1880_v15 }
0x111b   :  { %4998 = vtanh.f32 %v1890_v17 }
0x1120   :  { %v2010_v22 = vpop.permute.xlu0 %2009 }
0x1121   :  { %v2012_v23 = vadd.f32 %v2010_v22, %v2002_v20  ;;  %v4060_v22 = vld [vmem:[%s5955_s8 + $0x20] sm:$0xff] }
0x1123   :  { %5000 = vtanh.f32 %v2012_v23 }
0x1125   :  { %v4999_v24 = vpop.eup %4998 }
0x1126   :  { %1893 = vrot.lane.b32.xlu1 %v4999_v24, %s5086_s4 }
0x112d   :  { %v5001_v26 = vpop.eup %5000 }
0x112e   :  { %2015 = vrot.lane.b32.xlu0 %v5001_v26, %s5086_s4  ;;  %v4056_v26 = vld [vmem:[%s5954_s7 + $0x20] sm:$0xff] }
0x1198   :  { %v1894_v40 = vpop.permute.xlu1 %1893 }
0x1199   :  { %v1896_v27 = vmul.f32 %v4995_v5, %v1894_v40  ;;  %v4057_v40 = vld [vmem:[%s5954_s7 + $0x28] sm:$0xff] }
0x119b   :  { %1898 = vrot.lane.b32.xlu1 %v1896_v27, %s5087_s19  ;;  %v4808_v27 = vpack.c.bf16 %v4057_v40, %v4056_v26 }
0x11a0   :  { %v2016_v28 = vpop.permute.xlu0 %2015 }
0x11a1   :  { %v2018_v29 = vmul.f32 %v4997_v8, %v2016_v28  ;;  %v4062_v28 = vld [vmem:[%s5955_s8 + $0x30] sm:$0xff] }
0x11a3   :  { %v2111_v30 = vrot.slane %v2018_v29, 2  ;;  %2020 = vrot.lane.b32.xlu0 %v2018_v29, %s5087_s19  ;;  %v4063_v29 = vld [vmem:[%s5955_s8 + $0x38] sm:$0xff] }
0x11a5   :  { %2112 = vrot.lane.b32.xlu1 %v2111_v30, %s5087_s19  ;;  %v4058_v30 = vld [vmem:[%s5954_s7 + $0x30] sm:$0xff] }
0x11a6   :  { %v4811_v33 = vpack.c.bf16 %v4059_v32, %v4058_v30  ;;  %v3085_v32 = vld [vmem:[%s5962_s17] sm:$0xff] }
0x11a7   :  { %1903 = vrot.lane.b32.xlu0 %v1890_v17, %s5088_s28 }
0x11a9   :  { %2025 = vrot.lane.b32.xlu1 %v2012_v23, %s5088_s28  ;;  %v4061_v23 = vld [vmem:[%s5955_s8 + $0x28] sm:$0xff] }
0x11aa   :  { %v4802_v24 = vpack.c.bf16 %v4061_v23, %v4060_v22 }
0x120d   :  { %v1899_v31 = vpop.permute.xlu1 %1898 }
0x120e   :  { %1901 = vst.msk [vmem:[#allocation2 + $0x2] sm:$0x3] %vm76_vm3, %v1899_v31  ;;  %v4805_v31 = vpack.c.bf16 %v4063_v29, %v4062_v28  ;;  %v3063_v29 = vld [vmem:[%s5961_s13] sm:$0x3] }
0x1215   :  { %v2021_v37 = vpop.permute.xlu0 %2020  ;;  %v2033_v39 = vld [vmem:[#allocation2 + $0x2] sm:$0x3] }
0x1216   :  { %2023 = vst.msk [vmem:[#allocation2 - $0x2] sm:$0xc] %vm723_vm6, %v2021_v37  ;;  %4498 = vmatmul.mubr.msk.f32.vlgmr.msra.gmra.mrb[18].mxu0 %vm201_vm4, %v2033_v39 }
0x1217   :  { %4797 = vmatpush3.bf16.msra.mxu0 %v5561_v34  ;;  %v2113_v41 = vpop.permute.xlu1 %2112  ;;  %4519 = vmatprep.mubr.msk.f32.mxu0 %vm5085_vm5, %v5083_v12 }
0x1218   :  { %4509 = vmatmul.mubr.msk.f32.vlgmr.msra.gmra.mrb[18].mxu1 %vm201_vm4, %v2113_v41  ;;  %4798 = vmatprep.subr.bf16.mxu0 %v5084_v21 }
0x1219   :  { %v1904_v43 = vpop.permute.xlu0 %1903  ;;  %4530 = vmatprep.mubr.msk.f32.mxu1 %vm5085_vm5, %v5083_v12  ;;  %4803 = vmatpush3.bf16.msra.mxu1 %v4802_v24 }
0x121a   :  { %1906 = vst.msk [vmem:[#allocation3 + $0x2] sm:$0x3] %vm76_vm3, %v1904_v43  ;;  %4804 = vmatprep.subr.bf16.mxu1 %v5084_v21 }
0x121b   :  { %4800 = vmatpush3.bf16.msra.mxu0 %v5572_v42  ;;  %v2026_v44 = vpop.permute.xlu1 %2025 }
0x121c   :  { %2028 = vst.msk [vmem:[#allocation3 - $0x2] sm:$0xc] %vm723_vm6, %v2026_v44  ;;  %4807 = vmatprep.subr.bf16.mxu0 %v5084_v21 }
0x121d   :  { %v2233_v45 = vld [vmem:[#allocation2] sm:$0x3]  ;;  %4806 = vmatpush3.bf16.msra.mxu1 %v4805_v31 }
0x121e   :  { %4520 = vmatmul.mubr.msk.f32.vlgmr.msra.gmra.mrb[20].mxu0 %vm201_vm4, %v2233_v45  ;;  %4813 = vmatprep.subr.bf16.mxu1 %v5084_v21 }
0x121f   :  { %4541 = vmatprep.mubr.msk.f32.mxu0 %vm5085_vm5, %v5083_v12  ;;  %4809 = vmatpush3.bf16.msra.mxu0 %v4808_v27 }
0x1220   :  { %4810 = vmatprep.subr.bf16.mxu0 %v5084_v21 }
0x1221   :  { %v2194_v54 = vld [vmem:[#allocation3 + $0x2] sm:$0x3] }
0x1223   :  { %v2315_v61 = vld [vmem:[#allocation3] sm:$0x3]  ;;  %4812 = vmatpush3.bf16.msra.mxu0 %v4811_v33 }
0x1224   :  { %v2324_v56 = vrot.slane %v2315_v61, 4  ;;  %4819 = vmatprep.subr.bf16.mxu0 %v5084_v21 }
0x12e9   :  { %v2107_v46 = vpop.f32.mrb[18].mxu0 }
0x12ea   :  { %v4499_v47 = vpop.f32.mrb[19].mxu0 }
0x12eb   :  { %v2182_v48 = vpop.f32.mrb[18].mxu1 }
0x12ec   :  { %v2183_v57 = vadd.f32 %v2182_v48, %v2107_v46  ;;  %v4510_v18 = vpop.f32.mrb[19].mxu1 }
0x12ee   :  { %v2193_v0 = vadd.f32 %v5590_v49, %v2183_v57 }
0x12f0   :  { %5002 = vtanh.f32 %v2193_v0  ;;  %v4053_v1 = vmul.f32 -1.442695, %v2193_v0 }
0x12f1   :  { %v2307_v50 = vpop.f32.mrb[20].mxu0 }
0x12f2   :  { %v2312_v25 = vrot.slane %v2307_v50, 4  ;;  %v4521_v51 = vpop.f32.mrb[21].mxu0 }
0x12f4   :  { %v2314_v52 = vadd.f32 %v2312_v25, %v5301_v38 }
0x12f6   :  { %5004 = vtanh.f32 %v2314_v52  ;;  %v4055_v58 = vmul.f32 -1.442695, %v2314_v52 }
0x12f7   :  { %5006 = vpow2.f32 %v4053_v1 }
0x12f8   :  { %5008 = vpow2.f32 %v4055_v58 }
0x12fa   :  { %v5003_v53 = vpop.eup %5002 }
0x12fb   :  { %2208 = vrot.lane.b32.xlu0 %v5003_v53, %s5086_s4 }
0x12ff   :  { %2203 = vrot.lane.b32.xlu0 %v2194_v54, %s5087_s19 }
0x1300   :  { %v5005_v55 = vpop.eup %5004 }
0x1301   :  { %2330 = vrot.lane.b32.xlu1 %v5005_v55, %s5086_s4  ;;  %v5007_v59 = vpop.eup %5006 }
0x1302   :  { %v2198_v60 = vadd.f32 1.0, %v5007_v59  ;;  %v5009_v14 = vpop.eup %5008 }
0x1303   :  { %2325 = vrot.lane.b32.xlu0 %v2324_v56, %s5087_s19  ;;  %v2319_v62 = vadd.f32 1.0, %v5009_v14 }
0x1304   :  { %5010 = vrcp.f32 %v2198_v60 }
0x1305   :  { %5012 = vrcp.f32 %v2319_v62 }
0x130e   :  { %v5011_v63 = vpop.eup %5010 }
0x130f   :  { %v5013_v4 = vpop.eup %5012 }
0x136d   :  { %v2209_v2 = vpop.permute.xlu0 %2208 }
0x136e   :  { %v2211_v3 = vmul.f32 %v5011_v63, %v2209_v2 }
0x1370   :  { %2213 = vrot.lane.b32.xlu1 %v2211_v3, %s5087_s19 }
0x1371   :  { %v2204_v7 = vpop.permute.xlu0 %2203 }
0x1372   :  { %v2206_v8 = vmul.f32 %v5011_v63, %v2204_v7 }
0x1373   :  { %v2331_v5 = vpop.permute.xlu1 %2330 }
0x1374   :  { %v2333_v6 = vmul.f32 %v5013_v4, %v2331_v5 }
0x1375   :  { %v2326_v13 = vpop.permute.xlu0 %2325 }
0x1376   :  { %2335 = vrot.lane.b32.xlu1 %v2333_v6, %s5087_s19  ;;  %v2328_v15 = vmul.f32 %v5013_v4, %v2326_v13 }
0x13e2   :  { %v2214_v9 = vpop.permute.xlu1 %2213 }
0x13e3   :  { %v2216_v11 = vadd.f32 %v2214_v9, %v2206_v8 }
0x13e5   :  { %5014 = vtanh.f32 %v2216_v11 }
0x13e8   :  { %v2336_v16 = vpop.permute.xlu1 %2335 }
0x13e9   :  { %v2338_v17 = vadd.f32 %v2336_v16, %v2328_v15  ;;  %v2885_v16 = vld [vmem:[%s5958_s1] sm:$0x3] }
0x13ea   :  { %3061 = vst.msk [vmem:[%s5960_s24] sm:$0x3] %vm3060_vm9, %v2885_v16 }
0x13eb   :  { %5016 = vtanh.f32 %v2338_v17 }
0x13ef   :  { %v5015_v19 = vpop.eup %5014 }
0x13f0   :  { %2219 = vrot.lane.b32.xlu0 %v5015_v19, %s5086_s4 }
0x13f5   :  { %v5017_v20 = vpop.eup %5016 }
0x13f6   :  { %2341 = vrot.lane.b32.xlu1 %v5017_v20, %s5086_s4 }
0x1462   :  { %v2220_v35 = vpop.permute.xlu0 %2219 }
0x1463   :  { %v2222_v36 = vmul.f32 %v5011_v63, %v2220_v35 }
0x1465   :  { %2224 = vrot.lane.b32.xlu0 %v2222_v36, %s5087_s19 }
0x1468   :  { %v2342_v37 = vpop.permute.xlu1 %2341 }
0x1469   :  { %v2344_v39 = vmul.f32 %v5013_v4, %v2342_v37  ;;  %v4089_v37 = vld [vmem:[%s5963_s14] ss:$0 sm:$0xff] }
0x146b   :  { %v2437_v41 = vrot.slane %v2344_v39, 4  ;;  %2346 = vrot.lane.b32.xlu1 %v2344_v39, %s5087_s19  ;;  %v4090_v39 = vld [vmem:[%s5964_s15] ss:$0 sm:$0xff] }
0x146d   :  { %2438 = vrot.lane.b32.xlu0 %v2437_v41, %s5087_s19 }
0x146f   :  { %2229 = vrot.lane.b32.xlu1 %v2216_v11, %s5088_s28 }
0x1471   :  { %2351 = vrot.lane.b32.xlu0 %v2338_v17, %s5088_s28 }
0x14d7   :  { %v2225_v43 = vpop.permute.xlu0 %2224 }
0x14d8   :  { %2227 = vst.msk [vmem:[#allocation2 + $0x2] sm:$0x3] %vm76_vm3, %v2225_v43 }
0x14dd   :  { %v2347_v44 = vpop.permute.xlu1 %2346 }
0x14de   :  { %2349 = vst.msk [vmem:[#allocation2 - $0x4] sm:$0x30] %vm1050_vm7, %v2347_v44 }
0x14df   :  { %v2439_v45 = vpop.permute.xlu0 %2438  ;;  %v2359_v46 = vld [vmem:[#allocation2 + $0x2] sm:$0x3] }
0x14e0   :  { %4531 = vmatmul.mubr.msk.f32.vlgmr.msra.gmra.mrb[20].mxu1 %vm201_vm4, %v2359_v46  ;;  %4542 = vmatmul.mubr.msk.f32.vlgmr.msra.gmra.mrb[22].mxu0 %vm201_vm4, %v2439_v45  ;;  %v2892_v46 = vld [vmem:[%s5965_s5] sm:$0xff] }
0x14e1   :  { %4815 = vmatpush3.bf16.msra.mxu1 %v5561_v34  ;;  %v2230_v47 = vpop.permute.xlu1 %2229  ;;  %4552 = vmatprep.mubr.msk.f32.mxu1 %vm5085_vm5, %v5083_v12 }
0x14e2   :  { %2232 = vst.msk [vmem:[#allocation3 + $0x2] sm:$0x3] %vm76_vm3, %v2230_v47  ;;  %4816 = vmatprep.subr.bf16.mxu1 %v5084_v21  ;;  %4821 = vmatpush3.bf16.msra.mxu0 %v4802_v24  ;;  %v2893_v47 = vld [vmem:[%s5965_s5 + $0x8] sm:$0xff] }
0x14e3   :  { %v2352_v48 = vpop.permute.xlu0 %2351  ;;  %4822 = vmatprep.subr.bf16.mxu0 %v5084_v21  ;;  %4563 = vmatprep.mubr.msk.f32.mxu0 %vm5085_vm5, %v5083_v12 }
0x14e4   :  { %2354 = vst.msk [vmem:[#allocation3 - $0x4] sm:$0x30] %vm1050_vm7, %v2352_v48  ;;  %v4832_v48 = vpack.c.bf16 %v2893_v47, %v2892_v46 }
0x14e5   :  { %4818 = vmatpush3.bf16.msra.mxu1 %v5572_v42  ;;  %v2559_v34 = vld [vmem:[#allocation2] sm:$0x3] }
0x14e6   :  { %4825 = vmatprep.subr.bf16.mxu1 %v5084_v21  ;;  %4824 = vmatpush3.bf16.msra.mxu0 %v4805_v31 }
0x14e7   :  { %4831 = vmatprep.subr.bf16.mxu0 %v5084_v21 }
0x14e8   :  { %4553 = vmatmul.mubr.msk.f32.vlgmr.msra.gmra.mrb[22].mxu1 %vm201_vm4, %v2559_v34 }
0x14e9   :  { %4827 = vmatpush3.bf16.msra.mxu1 %v4808_v27  ;;  %4574 = vmatprep.mubr.msk.f32.mxu1 %vm5085_vm5, %v5083_v12  ;;  %v2520_v55 = vld [vmem:[#allocation3 + $0x2] sm:$0x3] }
0x14ea   :  { %4828 = vmatprep.subr.bf16.mxu1 %v5084_v21 }
0x14eb   :  { %v2641_v56 = vld [vmem:[#allocation3] sm:$0x3] }
0x14ec   :  { %v2650_v1 = vrot.slane %v2641_v56, 2 }
0x14ed   :  { %4830 = vmatpush3.bf16.msra.mxu1 %v4811_v33 }
0x14ee   :  { %4595 = vmatprep.subr.mxu1 %v5083_v12 }
0x15b3   :  { %v2433_v57 = vpop.f32.mrb[20].mxu1  ;;  %v2508_v18 = vpop.f32.mrb[22].mxu0 }
0x15b4   :  { %v2509_v42 = vadd.f32 %v2508_v18, %v2433_v57  ;;  %v4532_v0 = vpop.f32.mrb[21].mxu1  ;;  %v4543_v50 = vpop.f32.mrb[23].mxu0 }
0x15b6   :  { %v2519_v25 = vadd.f32 %v5590_v49, %v2509_v42 }
0x15b8   :  { %5018 = vtanh.f32 %v2519_v25  ;;  %v4068_v59 = vmul.f32 -1.442695, %v2519_v25 }
0x15bb   :  { %v2633_v51 = vpop.f32.mrb[22].mxu1 }
0x15bc   :  { %v2638_v52 = vrot.slane %v2633_v51, 2  ;;  %v4554_v53 = vpop.f32.mrb[23].mxu1 }
0x15be   :  { %v2640_v54 = vadd.f32 %v2638_v52, %v5301_v38  ;;  %v4091_v52 = vld [vmem:[%s5966_s18] ss:$0 sm:$0xff] }
0x15c0   :  { %5020 = vtanh.f32 %v2640_v54  ;;  %v4070_v60 = vmul.f32 -1.442695, %v2640_v54 }
0x15c1   :  { %5022 = vpow2.f32 %v4068_v59  ;;  %v2975_v59 = vld [vmem:[%s5967_s10] sm:$0xff] }
0x15c2   :  { %v5019_v61 = vpop.eup %5018  ;;  %5024 = vpow2.f32 %v4070_v60  ;;  %v2976_v60 = vld [vmem:[%s5967_s10 + $0x8] sm:$0xff] }
0x15c3   :  { %2534 = vrot.lane.b32.xlu1 %v5019_v61, %s5086_s4 }
0x15c7   :  { %2529 = vrot.lane.b32.xlu1 %v2520_v55, %s5087_s19 }
0x15ca   :  { %v5021_v58 = vpop.eup %5020 }
0x15cb   :  { %2656 = vrot.lane.b32.xlu0 %v5021_v58, %s5086_s4  ;;  %2651 = vrot.lane.b32.xlu1 %v2650_v1, %s5087_s19  ;;  %v5023_v14 = vpop.eup %5022 }
0x15cc   :  { %v2524_v38 = vadd.f32 1.0, %v5023_v14  ;;  %v5025_v62 = vpop.eup %5024  ;;  %v4835_v14 = vpack.c.bf16 %v2976_v60, %v2975_v59 }
0x15cd   :  { %v2645_v63 = vadd.f32 1.0, %v5025_v62  ;;  %v2977_v62 = vld [vmem:[%s5967_s10 + $0x10] sm:$0xff] }
0x15ce   :  { %5026 = vrcp.f32 %v2524_v38 }
0x15cf   :  { %5028 = vrcp.f32 %v2645_v63  ;;  %v2978_v63 = vld [vmem:[%s5967_s10 + $0x18] sm:$0xff] }
0x15d8   :  { %v5027_v2 = vpop.eup %5026 }
0x15d9   :  { %v5029_v5 = vpop.eup %5028 }
0x1635   :  { %v2535_v3 = vpop.permute.xlu1 %2534 }
0x1636   :  { %v2537_v4 = vmul.f32 %v5027_v2, %v2535_v3 }
0x1638   :  { %2539 = vrot.lane.b32.xlu0 %v2537_v4, %s5087_s19 }
0x1639   :  { %v2530_v8 = vpop.permute.xlu1 %2529 }
0x163a   :  { %v2532_v9 = vmul.f32 %v5027_v2, %v2530_v8 }
0x163d   :  { %v2657_v6 = vpop.permute.xlu0 %2656  ;;  %v2652_v15 = vpop.permute.xlu1 %2651 }
0x163e   :  { %v2659_v7 = vmul.f32 %v5029_v5, %v2657_v6  ;;  %v2654_v17 = vmul.f32 %v5029_v5, %v2652_v15 }
0x1640   :  { %2661 = vrot.lane.b32.xlu0 %v2659_v7, %s5087_s19 }
0x16aa   :  { %v2540_v11 = vpop.permute.xlu0 %2539 }
0x16ab   :  { %v2542_v13 = vadd.f32 %v2540_v11, %v2532_v9 }
0x16ad   :  { %5030 = vtanh.f32 %v2542_v13 }
0x16b2   :  { %v2662_v19 = vpop.permute.xlu0 %2661 }
0x16b3   :  { %v5676_v20 = vadd.f32 %v2662_v19, %v2654_v17 }
0x16b5   :  { %5032 = vtanh.f32 %v5676_v20 }
0x16b7   :  { %v5031_v22 = vpop.eup %5030 }
0x16b8   :  { %2545 = vrot.lane.b32.xlu1 %v5031_v22, %s5086_s4 }
0x16bf   :  { %v5033_v23 = vpop.eup %5032 }
0x16c0   :  { %2667 = vrot.lane.b32.xlu0 %v5033_v23, %s5086_s4 }
0x172a   :  { %v2546_v24 = vpop.permute.xlu1 %2545 }
0x172b   :  { %v2548_v26 = vmul.f32 %v5027_v2, %v2546_v24  ;;  %v4085_v2 = vld [vmem:[%s5968_s6] ss:$0 sm:$0xff] }
0x172d   :  { %2550 = vrot.lane.b32.xlu1 %v2548_v26, %s5087_s19 }
0x1731   :  { %2887 = vperm.xlu1 %4913, %v2885_v16  }
0x1732   :  { %v2668_v40 = vpop.permute.xlu0 %2667 }
0x1733   :  { %v5682_v27 = vmul.f32 %v5029_v5, %v2668_v40  ;;  %v4838_v5 = vpack.c.bf16 %v2978_v63, %v2977_v62 }
0x1735   :  { %v2763_v28 = vrot.slane %v5682_v27, 6  ;;  %2555 = vrot.lane.b32.xlu1 %v2542_v13, %s5088_s28 }
0x1737   :  { %2764 = vrot.lane.b32.xlu0 %v2763_v28, %s5087_s19 }
0x173b   :  { %3067 = vperm.xlu0 %4912, %v3063_v29  }
0x179f   :  { %v2551_v30 = vpop.permute.xlu1 %2550 }
0x17a0   :  { %2553 = vst.msk [vmem:[#allocation2 + $0x2] sm:$0x3] %vm76_vm3, %v2551_v30 }
0x17a7   :  { %v2685_v31 = vld [vmem:[#allocation2 + $0x2] sm:$0x3] }
0x17a8   :  { %4564 = vmatmul.mubr.msk.f32.vlgmr.msra.gmra.mrb[24].mxu0 %vm201_vm4, %v2685_v31 }
0x17a9   :  { %v2765_v33 = vpop.permute.xlu0 %2764  ;;  %4581 = vmatprep.mubr.msk.f32.mxu0 %vm5085_vm5, %v5083_v12  ;;  %4833 = vmatpush3.bf16.msra.mxu0 %v4832_v48 }
0x17aa   :  { %4575 = vmatmul.mubr.msk.f32.vlgmr.msra.gmra.mrb[24].mxu1 %vm201_vm4, %v2765_v33  ;;  %4834 = vmatprep.subr.bf16.mxu0 %v5084_v21 }
0x17ab   :  { %4596 = vmatpush3.msra.mxu1 %v3085_v32  ;;  %4597 = vmatprep.mubr.msk.f32.mxu1 %vm5085_vm5, %v5083_v12 }
0x17b0   :  { %v2888_v35 = vpop.permute.xlu1 %2887 }
0x17b1   :  { %vm2889_vm11 = vcmp.eq.s32.totalorder %v5242_v10, %v2888_v35 }
0x17b2   :  { %v4084_v34 = vsel %vm2889_vm11, 1.0, %v5083_v12 }
0x17b3   :  { %4582 = vmatmul.mubr.msk.f32.vlgmr.msra.gmra.mrb[26].mxu0 %vm106_vm0, %v4084_v34 }
0x17b4   :  { %v2556_v36 = vpop.permute.xlu1 %2555  ;;  %4592 = vmatprep.mubr.msk.f32.mxu0 %vm5085_vm5, %v5083_v12  ;;  %4836 = vmatpush3.bf16.msra.mxu0 %v4835_v14 }
0x17b5   :  { %2558 = vst.msk [vmem:[#allocation3 + $0x2] sm:$0x3] %vm76_vm3, %v2556_v36  ;;  %4837 = vmatprep.subr.bf16.mxu0 %v5084_v21  ;;  %v4087_v21 = vld [vmem:[%s5969_s12] ss:$0 sm:$0xff] }
0x17b8   :  { %4839 = vmatpush3.bf16.msra.mxu0 %v4838_v5 }
0x17ba   :  { %v3068_v41 = vpop.permute.xlu0 %3067 }
0x17bb   :  { %v3076_v43 = vmul.f32 %v4089_v37, %v3068_v41 }
0x17bc   :  { %v2846_v44 = vld [vmem:[#allocation3 + $0x2] sm:$0x3] }
0x17bd   :  { %v3084_v45 = vadd.f32 %v4090_v39, %v3076_v43  ;;  %2855 = vrot.lane.b32.xlu1 %v2846_v44, %s5087_s19 }
0x17bf   :  { %4598 = vmatmul.mubr.msk.f32.vlgmr.msra.gmra.mrb[26].mxu1 %vm3093_vm10, %v3084_v45 }
0x182f   :  { %v2856_v7 = vpop.permute.xlu1 %2855 }
0x187b   :  { %v2759_v57 = vpop.f32.mrb[24].mxu0 }
0x187c   :  { %v4565_v18 = vpop.f32.mrb[25].mxu0 }
0x187d   :  { %v2834_v42 = vpop.f32.mrb[24].mxu1 }
0x187e   :  { %v2835_v0 = vadd.f32 %v2834_v42, %v2759_v57  ;;  %v4576_v50 = vpop.f32.mrb[25].mxu1 }
0x1880   :  { %v2845_v25 = vadd.f32 %v5590_v49, %v2835_v0 }
0x1882   :  { %5034 = vtanh.f32 %v2845_v25  ;;  %v4083_v12 = vmul.f32 -1.442695, %v2845_v25 }
0x1884   :  { %5036 = vpow2.f32 %v4083_v12 }
0x1886   :  { %v2970_v38 = vpop.f32.mrb[26].mxu0 }
0x1887   :  { %v4583_v3 = vpop.f32.mrb[27].mxu0  ;;  %v2971_v4 = vadd.f32 %v4085_v2, %v2970_v38 }
0x1889   :  { %v2974_v6 = vmax.f32 %v2971_v4, 0.0 }
0x188b   :  { %4593 = vmatmul.mubr.msk.f32.vlgmr.msra.gmra.mrb[28].mxu0 %vm201_vm4, %v2974_v6 }
0x188c   :  { %v5035_v51 = vpop.eup %5034 }
0x188d   :  { %2860 = vrot.lane.b32.xlu0 %v5035_v51, %s5086_s4 }
0x188e   :  { %v5037_v55 = vpop.eup %5036 }
0x188f   :  { %v2850_v56 = vadd.f32 1.0, %v5037_v55 }
0x1891   :  { %5038 = vrcp.f32 %v2850_v56 }
0x1892   :  { %v3163_v53 = vpop.f32.mrb[26].mxu1 }
0x1893   :  { %v5725_v54 = vadd.f32 %v4091_v52, %v3163_v53  ;;  %v4599_v61 = vpop.f32.mrb[27].mxu1 }
0x189b   :  { %v5039_v1 = vpop.eup %5038 }
0x189c   :  { %v2858_v8 = vmul.f32 %v5039_v1, %v2856_v7 }
0x18ff   :  { %v2861_v58 = vpop.permute.xlu0 %2860 }
0x1900   :  { %v2863_v49 = vmul.f32 %v5039_v1, %v2861_v58 }
0x1902   :  { %2865 = vrot.lane.b32.xlu0 %v2863_v49, %s5087_s19 }
0x1906   :  { %2672 = vrot.lane.b32.xlu0 %v5682_v27, %s5087_s19 }
0x195e   :  { %v3055_v16 = vpop.f32.mrb[28].mxu0 }
0x195f   :  { %v3056_v17 = vadd.f32 %v4087_v21, %v3055_v16  ;;  %v4594_v19 = vpop.f32.mrb[29].mxu0 }
0x1961   :  { %3059 = vst [vmem:[#allocation4] sm:$0x3] %v3056_v17 }
0x1974   :  { %v2866_v9 = vpop.permute.xlu0 %2865 }
0x1975   :  { %v2868_v11 = vadd.f32 %v2866_v9, %v2858_v8 }
0x1977   :  { %5040 = vtanh.f32 %v2868_v11 }
0x1978   :  { %v2673_v13 = vpop.permute.xlu0 %2672 }
0x1979   :  { %2675 = vst.msk [vmem:[#allocation2 - $0x6] sm:$0xc0] %vm1377_vm8, %v2673_v13 }
0x1981   :  { %v5041_v15 = vpop.eup %5040 }
0x1982   :  { %2871 = vrot.lane.b32.xlu1 %v5041_v15, %s5086_s4  ;;  %s5759_s4 = smov 1  }
0x1986   :  { %2677 = vrot.lane.b32.xlu1 %v5676_v20, %s5088_s28 }
0x198a   :  { %2881 = vrot.lane.b32.xlu1 %v2868_v11, %s5088_s28 }
0x19f4   :  { %v2872_v22 = vpop.permute.xlu1 %2871 }
0x19f5   :  { %v2874_v23 = vmul.f32 %v5039_v1, %v2872_v22 }
0x19f7   :  { %2876 = vrot.lane.b32.xlu0 %v2874_v23, %s5087_s19 }
0x19f8   :  { %v2678_v24 = vpop.permute.xlu1 %2677 }
0x19f9   :  { %2680 = vst.msk [vmem:[#allocation3 - $0x6] sm:$0xc0] %vm1377_vm8, %v2678_v24 }
0x19fc   :  { %v2882_v26 = vpop.permute.xlu1 %2881 }
0x19fd   :  { %2884 = vst.msk [vmem:[#allocation3 + $0x2] sm:$0x3] %vm76_vm3, %v2882_v26 }
0x1a69   :  { %v2877_v20 = vpop.permute.xlu0 %2876 }
0x1a6a   :  { %2879 = vst.msk [vmem:[#allocation2 + $0x2] sm:$0x3] %vm76_vm3, %v2877_v20 }
0x1a6b LB: > { %p4093_p0 = scmp.le.s32.totalorder %s5076_s4, 0  ;;  %s5076_s4 = sphi %s5759_s4, %s3172_s4  }
0x1a6c   : > { %s5765_s19 = smov (!%p4093_p0), 0  }
0x1a6d   : > { %3948 = sbr.rel (%p4093_p0) target bundleno = 8195 (0x2003), region = 142 }
0x1a74 LB: >> { %s5986_s16 = sld [smem:[#allocation8_spill]]  ;;  %v5089_v29 = vmov 0.0|0.0   ;;  %vm5090_vm12 = vmmov 0   ;;  %v5091_v32 = vmov 0.0   ;;  %v3182_v35 = vld [vmem:[#allocation2] sm:$0x3]  ;;  %s5080_s19 = sphi %s5765_s19, %s3176_s19  }
0x1a75   : >> { %4840 = vmatprep.subr.bf16.mxu0 %v5089_v29  ;;  %4608 = vmatprep.mubr.msk.f32.mxu0 %vm5090_vm12, %v5091_v32  ;;  %s4094_s27 = sshll.u32 %s5080_s19, 1  ;;  %s5092_s8 = smov 64   ;;  %v3261_v44 = vld [vmem:[#allocation3] sm:$0x3]  ;;  %v4098_v61 = vld [vmem:[%s5967_s10 + $0x28] sm:$0xff]  ;;  %v4099_v1 = vld [vmem:[%s5967_s10 + $0x30] sm:$0xff] }
0x1a76   : >> { %4846 = vmatprep.subr.bf16.mxu1 %v5089_v29  ;;  %4619 = vmatprep.mubr.msk.f32.mxu1 %vm5090_vm12, %v5091_v32  ;;  %s3180_s7 = scalar_lea.vmem [#allocation4], %s4094_s27  ;;  %s5093_s18 = smov 32   ;;  %v4097_v52 = vld [vmem:[%s5967_s10 + $0x20] sm:$0xff]  ;;  %v4100_v58 = vld [vmem:[%s5967_s10 + $0x38] sm:$0xff] }
0x1a77   : >> { %v3181_v36 = vld [vmem:[%s3180_s7] sm:$0x3]  ;;  %v4853_v56 = vpack.c.bf16 %v4098_v61, %v4097_v52  ;;  %v4856_v59 = vpack.c.bf16 %v4100_v58, %v4099_v1  ;;  %v3305_v60 = vld [vmem:[#allocation2 + $0x2] sm:$0x3]  ;;  %v3465_v63 = vld [vmem:[#allocation3 + $0x2] sm:$0x3] }
0x1a78   : >> { %v4108_v6 = vld [vmem:[%s5969_s12 + $0x1] ss:$0 sm:$0xff]  ;;  %s5094_s7 = smov 96   ;;  %s3176_s19 = sadd.s32 1, %s5080_s19  }
0x1a79   : >> { %p3175_p1 = scmp.ge.s32.totalorder %s3176_s19, %s5076_s4 }
0x1a7a   : >> { %v3183_v40 = vld [vmem:[%s5986_s16] sm:$0xff]  ;;  %v3184_v27 = vld [vmem:[%s5986_s16 + $0x8] sm:$0xff]  ;;  %v3185_v28 = vld [vmem:[%s5986_s16 + $0x10] sm:$0xff] }
0x1a7b   : >> { %v4841_v30 = vpack.c.bf16 %v3184_v27, %v3183_v40  ;;  %v3186_v31 = vld [vmem:[%s5986_s16 + $0x18] sm:$0xff]  ;;  %v4101_v25 = vld [vmem:[%s5986_s16 + $0x20] sm:$0xff]  ;;  %v4102_v51 = vld [vmem:[%s5986_s16 + $0x28] sm:$0xff] }
0x1a7c   : >> { %v4844_v33 = vpack.c.bf16 %v3186_v31, %v3185_v28  ;;  %v4847_v53 = vpack.c.bf16 %v4102_v51, %v4101_v25  ;;  %v4103_v12 = vld [vmem:[%s5986_s16 + $0x30] sm:$0xff]  ;;  %v4104_v55 = vld [vmem:[%s5986_s16 + $0x38] sm:$0xff] }
0x1a7d   : >> { %4842 = vmatpush3.bf16.msra.mxu0 %v4841_v30  ;;  %v4850_v49 = vpack.c.bf16 %v4104_v55, %v4103_v12 }
0x1a7e   : >> { %4843 = vmatprep.subr.bf16.mxu0 %v5089_v29  ;;  %4848 = vmatpush3.bf16.msra.mxu1 %v4847_v53 }
0x1a7f   : >> { %4849 = vmatprep.subr.bf16.mxu1 %v5089_v29 }
0x1a81   : >> { %4845 = vmatpush3.bf16.msra.mxu0 %v4844_v33 }
0x1a82   : >> { %4852 = vmatprep.subr.bf16.mxu0 %v5089_v29  ;;  %4851 = vmatpush3.bf16.msra.mxu1 %v4850_v49 }
0x1a84   : >> { %4609 = vmatmul.mubr.msk.f32.vlgmr.msra.gmra.mrb[0].mxu0 %vm201_vm4, %v3182_v35 }
0x1a85   : >> { %4630 = vmatprep.mubr.msk.f32.mxu0 %vm5090_vm12, %v5091_v32  ;;  %4854 = vmatpush3.bf16.msra.mxu0 %v4853_v56 }
0x1a86   : >> { %4855 = vmatprep.subr.bf16.mxu0 %v5089_v29  ;;  %4620 = vmatmul.mubr.msk.f32.vlgmr.msra.gmra.mrb[0].mxu1 %vm201_vm4, %v3305_v60 }
0x1a89   : >> { %4857 = vmatpush3.bf16.msra.mxu0 %v4856_v59 }
0x1b57   : >> { %v3256_v37 = vpop.f32.mrb[0].mxu0 }
0x1b58   : >> { %v3260_v39 = vadd.f32 %v3256_v37, %v3181_v36  ;;  %v4610_v41 = vpop.f32.mrb[1].mxu0 }
0x1b59   : >> { %v3380_v2 = vpop.f32.mrb[0].mxu1 }
0x1b5a   : >> { %5042 = vtanh.f32 %v3260_v39  ;;  %v4096_v45 = vmul.f32 -1.442695, %v3260_v39  ;;  %v4621_v3 = vpop.f32.mrb[1].mxu1 }
0x1b5c   : >> { %5044 = vpow2.f32 %v4096_v45 }
0x1b64   : >> { %v5043_v43 = vpop.eup %5042 }
0x1b65   : >> { %3275 = vrot.lane.b32.xlu0 %v5043_v43, %s5092_s8 }
0x1b66   : >> { %v5045_v46 = vpop.eup %5044 }
0x1b67   : >> { %v3265_v47 = vadd.f32 1.0, %v5045_v46 }
0x1b69   : >> { %3270 = vrot.lane.b32.xlu0 %v3261_v44, %s5093_s18  ;;  %5046 = vrcp.f32 %v3265_v47 }
0x1b73   : >> { %v5047_v48 = vpop.eup %5046 }
0x1bd7   : >> { %v3276_v34 = vpop.permute.xlu0 %3275 }
0x1bd8   : >> { %v3278_v57 = vmul.f32 %v5047_v48, %v3276_v34 }
0x1bda   : >> { %3280 = vrot.lane.b32.xlu1 %v3278_v57, %s5093_s18 }
0x1bdb   : >> { %v3271_v18 = vpop.permute.xlu0 %3270 }
0x1bdc   : >> { %v3273_v42 = vmul.f32 %v5047_v48, %v3271_v18 }
0x1c4c   : >> { %v3281_v0 = vpop.permute.xlu1 %3280 }
0x1c4d   : >> { %v3283_v50 = vadd.f32 %v3281_v0, %v3273_v42 }
0x1c4f   : >> { %5048 = vtanh.f32 %v3283_v50 }
0x1c59   : >> { %v5049_v14 = vpop.eup %5048 }
0x1c5a   : >> { %3286 = vrot.lane.b32.xlu1 %v5049_v14, %s5092_s8 }
0x1ccc   : >> { %v3287_v38 = vpop.permute.xlu1 %3286 }
0x1ccd   : >> { %v3289_v62 = vmul.f32 %v5047_v48, %v3287_v38 }
0x1ccf   : >> { %3291 = vrot.lane.b32.xlu0 %v3289_v62, %s5093_s18 }
0x1cd3   : >> { %3474 = vrot.lane.b32.xlu0 %v3465_v63, %s5093_s18 }
0x1d41   : >> { %v3292_v4 = vpop.permute.xlu0 %3291 }
0x1d42   : >> { %3294 = vst.msk [vmem:[#allocation2] sm:$0x3] %vm76_vm3, %v3292_v4  ;;  %4631 = vmatmul.mubr.msk.f32.vlgmr.msra.gmra.mrb[2].mxu0 %vm201_vm4, %v3292_v4 }
0x1d45   : >> { %v3475_v22 = vpop.permute.xlu0 %3474 }
0x1e15   : >> { %v3452_v5 = vpop.f32.mrb[2].mxu0 }
0x1e16   : >> { %v3453_v7 = vadd.f32 %v3452_v5, %v3380_v2  ;;  %v4632_v8 = vpop.f32.mrb[3].mxu0 }
0x1e18   : >> { %v3464_v9 = vadd.f32 %v4108_v6, %v3453_v7 }
0x1e1a   : >> { %5050 = vtanh.f32 %v3464_v9  ;;  %v4109_v13 = vmul.f32 -1.442695, %v3464_v9 }
0x1e1c   : >> { %5052 = vpow2.f32 %v4109_v13 }
0x1e24   : >> { %v5051_v11 = vpop.eup %5050 }
0x1e25   : >> { %3479 = vrot.lane.b32.xlu1 %v5051_v11, %s5092_s8 }
0x1e26   : >> { %v5053_v15 = vpop.eup %5052 }
0x1e27   : >> { %v3469_v21 = vadd.f32 1.0, %v5053_v15 }
0x1e29   : >> { %5054 = vrcp.f32 %v3469_v21 }
0x1e33   : >> { %v5055_v16 = vpop.eup %5054 }
0x1e34   : >> { %v3477_v23 = vmul.f32 %v5055_v16, %v3475_v22 }
0x1e97   : >> { %v3480_v17 = vpop.permute.xlu1 %3479 }
0x1e98   : >> { %v3482_v19 = vmul.f32 %v5055_v16, %v3480_v17 }
0x1e9a   : >> { %3484 = vrot.lane.b32.xlu1 %v3482_v19, %s5093_s18 }
0x1e9e   : >> { %3296 = vrot.lane.b32.xlu1 %v3283_v50, %s5094_s7 }
0x1f0c   : >> { %v3485_v24 = vpop.permute.xlu1 %3484 }
0x1f0d   : >> { %v3487_v26 = vadd.f32 %v3485_v24, %v3477_v23 }
0x1f0f   : >> { %5056 = vtanh.f32 %v3487_v26  ;;  %3500 = vrot.lane.b32.xlu1 %v3487_v26, %s5094_s7 }
0x1f10   : >> { %v3297_v20 = vpop.permute.xlu1 %3296 }
0x1f11   : >> { %3299 = vst.msk [vmem:[#allocation3] sm:$0x3] %vm76_vm3, %v3297_v20 }
0x1f19   : >> { %v5057_v40 = vpop.eup %5056 }
0x1f1a   : >> { %3490 = vrot.lane.b32.xlu0 %v5057_v40, %s5092_s8 }
0x1f81   : >> { %v3501_v27 = vpop.permute.xlu1 %3500 }
0x1f82   : >> { %3503 = vst.msk [vmem:[#allocation3 + $0x2] sm:$0x3] %vm76_vm3, %v3501_v27 }
0x1f8c   : >> { %v3491_v28 = vpop.permute.xlu0 %3490 }
0x1f8d   : >> { %v3493_v29 = vmul.f32 %v5055_v16, %v3491_v28 }
0x1f8f   : >> { %3495 = vrot.lane.b32.xlu0 %v3493_v29, %s5093_s18 }
0x1ffc   : > { %3178 = sbr.rel (!%p3175_p1) target bundleno = 6772 (0x1a74), region = 148 }
0x2001   : >> { %v3496_v30 = vpop.permute.xlu0 %3495 }
0x2002   : >> { %3498 = vst.msk [vmem:[#allocation2 + $0x2] sm:$0x3] %vm76_vm3, %v3496_v30 }
0x2003 PF: > { %s5987_s2 = sld [smem:[#allocation9_spill]]  ;;  %v5095_v35 = vmov 0.0|0.0   ;;  %vm5096_vm13 = vmmov 0   ;;  %v5097_v39 = vmov 0.0   ;;  %vm3583_vm14 = vcmask 320512   ;;  %s5988_s13 = sld [smem:[#allocation12_spill]] }
0x2004   : > { %4858 = vmatprep.subr.bf16.mxu0 %v5095_v35  ;;  %4641 = vmatprep.mubr.msk.f32.mxu0 %vm5096_vm13, %v5097_v39  ;;  %s5989_s20 = sld [smem:[#allocation10_spill]]  ;;  %s5990_s0 = sld [smem:[#allocation11_spill]]  ;;  %vm3626_vm15 = vcmask 326656   ;;  %vm3700_vm1 = vcmask 123904  }
0x2005   : > { %4864 = vmatprep.subr.bf16.mxu1 %v5095_v35  ;;  %4654 = vmatprep.mubr.msk.f32.mxu1 %vm5096_vm13, %v5097_v39  ;;  %s5991_s30 = sld [smem:[#allocation13_spill]]  ;;  %s5887_s19 = sshll.u32 %s5076_s4, 1 }
0x2006   : > { %s5992_s28 = sld [smem:[#allocation7_spill]]  ;;  %s3743_s27 = scalar_lea.vmem %s5958_s1, %s5887_s19 }
0x2007   : > { %s3749_s8 = scalar_lea.vmem %s5960_s24, %s5887_s19  ;;  %s3747_s25 = scalar_lea.vmem %s5959_s23, %s5887_s19 }
0x2008   : > { %s3172_s4 = sadd.s32 1, %s5076_s4  }
0x2009   : > { %v3505_v31 = vld [vmem:[%s5987_s2] sm:$0xff]  ;;  %v3506_v32 = vld [vmem:[%s5987_s2 + $0x8] sm:$0xff]  ;;  %v3507_v33 = vld [vmem:[%s5987_s2 + $0x10] sm:$0xff]  ;;  %p3169_p2 = scmp.ge.s32.totalorder %s3172_s4, 8  }
0x200a   : > { %v4859_v36 = vpack.c.bf16 %v3506_v32, %v3505_v31  ;;  %v3508_v37 = vld [vmem:[%s5987_s2 + $0x18] sm:$0xff]  ;;  %v3504_v43 = vld [vmem:[#allocation2 + $0x2] sm:$0x3]  ;;  %v3615_v25 = vld [vmem:[%s5988_s13 + $0x8] sm:$0xff]  ;;  %v5098_v31 = vmov 0  }
0x200b   : > { %v4862_v41 = vpack.c.bf16 %v3508_v37, %v3507_v33  ;;  %v3614_v50 = vld [vmem:[%s5988_s13] sm:$0xff]  ;;  %v3616_v51 = vld [vmem:[%s5988_s13 + $0x10] sm:$0xff]  ;;  %v3617_v53 = vld [vmem:[%s5988_s13 + $0x18] sm:$0xff]  ;;  %5058 = vset.pattern.permute.xlu1 %v5098_v31  ;;  %5059 = vset.pattern.permute.xlu0 %v5098_v31 }
0x200c   : > { %4860 = vmatpush3.bf16.msra.mxu0 %v4859_v36  ;;  %v4865_v52 = vpack.c.bf16 %v3615_v25, %v3614_v50  ;;  %v4868_v61 = vpack.c.bf16 %v3617_v53, %v3616_v51  ;;  %v3618_v12 = vld [vmem:[%s5988_s13 + $0x20] sm:$0xff]  ;;  %s3715_s22 = scalar_lea.vmem %s5992_s28, %s5887_s19  ;;  %v3758_v33 = vld [vmem:[%s5965_s5 + $0x8] sm:$0xff]  ;;  %v3842_v51 = vld [vmem:[%s5967_s10 + $0x10] sm:$0xff] }
0x200d   : > { %4861 = vmatprep.subr.bf16.mxu0 %v5095_v35  ;;  %v4111_v49 = vld [vmem:[%s5989_s20] ss:$0 sm:$0xff] }
0x200e   : > { %4866 = vmatpush3.bf16.msra.mxu1 %v4865_v52  ;;  %v4112_v60 = vld [vmem:[%s5990_s0] ss:$0 sm:$0xff] }
0x200f   : > { %4867 = vmatprep.subr.bf16.mxu1 %v5095_v35  ;;  %v4113_v62 = vld [vmem:[%s5991_s30] ss:$0 sm:$0xff] }
0x2010   : > { %4863 = vmatpush3.bf16.msra.mxu0 %v4862_v41  ;;  %v3716_v16 = vld [vmem:[%s3715_s22] sm:$0x3] }
0x2011   : > { %4870 = vmatprep.subr.bf16.mxu0 %v5095_v35  ;;  %v3757_v32 = vld [vmem:[%s5965_s5] sm:$0xff] }
0x2012   : > { %4869 = vmatpush3.bf16.msra.mxu1 %v4868_v61  ;;  %v4871_v36 = vpack.c.bf16 %v3758_v33, %v3757_v32  ;;  %v3744_v41 = vld [vmem:[%s3743_s27] sm:$0x3]  ;;  %s3924_s27 = scalar_lea.vmem [#allocation4], %s5887_s19 }
0x2013   : > { %4642 = vmatmul.mubr.msk.f32.vlgmr.msra.gmra.mrb[0].mxu0 %vm201_vm4, %v3504_v43  ;;  %4652 = vmatprep.subr.mxu1 %v5097_v39  ;;  %vm3745_vm6 = vcmp.eq.s32.totalorder %v3744_v41, 3 }
0x2014   : > { %4661 = vmatprep.mubr.msk.f32.mxu0 %vm5096_vm13, %v5097_v39  ;;  %4872 = vmatpush3.bf16.msra.mxu0 %v4871_v36 }
0x2016   : > { %4653 = vmatpush3.msra.mxu1 %v3618_v12 }
0x2017   : > { %4873 = vmatprep.subr.bf16.mxu1 %v5095_v35 }
0x20e6   : > { %v3578_v44 = vpop.f32.mrb[0].mxu0 }
0x20e7   : > { %v3579_v45 = vadd.f32 %v3578_v44, %v5725_v54  ;;  %v4643_v46 = vpop.f32.mrb[1].mxu0 }
0x20e9   : > { %v3582_v47 = vmax.f32 %v3579_v45, 0.0 }
0x20eb   : > { %v3584_v48 = vsel %vm3583_vm14, %v3582_v47, 0.0 }
0x20ec   : > { %3585 = vadd.xlane.f32.xlu0 %v3584_v48 }
0x2179   : > { %v3586_v34 = vpop.xlane.xlu0 %3585 }
0x217a   : > { %v3588_v57 = vmul.f32 0.025, %v3586_v34 }
0x217c   : > { %v3589_v18 = vsub.f32 %v3582_v47, %v3588_v57  ;;  %v3840_v57 = vld [vmem:[%s5967_s10] sm:$0xff] }
0x217e   : > { %v3590_v42 = vmul.f32 %v3589_v18, %v3589_v18 }
0x2180   : > { %v3591_v0 = vsel %vm3583_vm14, %v3590_v42, 0.0 }
0x2181   : > { %3592 = vadd.xlane.f32.xlu0 %v3591_v0 }
0x220e   : > { %v3593_v55 = vpop.xlane.xlu0 %3592 }
0x220f   : > { %v3594_v56 = vmul.f32 0.025, %v3593_v55 }
0x2211   : > { %v3595_v1 = vadd.f32 1e-05, %v3594_v56  ;;  %v4119_v56 = vld [vmem:[%s5969_s12] ss:$0 sm:$0xff] }
0x2213   : > { %5060 = vrsqrt.f32 %v3595_v1 }
0x221d   : > { %v5061_v58 = vpop.eup %5060 }
0x221e   : > { %v3597_v59 = vmul.f32 %v5061_v58, %v3589_v18  ;;  %v3841_v18 = vld [vmem:[%s5967_s10 + $0x8] sm:$0xff] }
0x221f   : > { %v4874_v42 = vpack.c.bf16 %v3841_v18, %v3840_v57 }
0x2220   : > { %v3605_v14 = vmul.f32 %v4111_v49, %v3597_v59 }
0x2222   : > { %v3613_v38 = vadd.f32 %v4112_v60, %v3605_v14 }
0x2224   : > { %4655 = vmatmul.mubr.msk.f32.vlgmr.msra.gmra.mrb[0].mxu1 %vm3626_vm15, %v3613_v38 }
0x2225   : > { %4672 = vmatprep.mubr.msk.f32.mxu1 %vm5096_vm13, %v5097_v39  ;;  %4875 = vmatpush3.bf16.msra.mxu1 %v4874_v42 }
0x2226   : > { %4876 = vmatprep.subr.bf16.mxu1 %v5095_v35  ;;  %v3843_v35 = vld [vmem:[%s5967_s10 + $0x18] sm:$0xff] }
0x2227   : > { %v4877_v52 = vpack.c.bf16 %v3843_v35, %v3842_v51 }
0x2229   : > { %4878 = vmatpush3.bf16.msra.mxu1 %v4877_v52 }
0x22f7   : > { %v3696_v63 = vpop.f32.mrb[0].mxu1 }
0x22f8   : > { %v3697_v2 = vadd.f32 %v4113_v62, %v3696_v63  ;;  %v4656_v3 = vpop.f32.mrb[1].mxu1 }
0x22fa   : > { %v3701_v4 = vsel %vm3700_vm1, %v3697_v2, -inf }
0x22fb   : > { %3702 = vmax.xlane.f32.xlu1 %v3701_v4 }
0x2388   : > { %v3703_v5 = vpop.xlane.xlu1 %3702 }
0x2389   : > { %v3704_v6 = vsub.f32 %v3697_v2, %v3703_v5 }
0x238b   : > { %v3705_v7 = vmul.f32 1.442695, %v3704_v6 }
0x238d   : > { %5062 = vpow2.f32 %v3705_v7 }
0x2397   : > { %v5063_v8 = vpop.eup %5062 }
0x2398   : > { %v3707_v9 = vsel %vm3700_vm1, %v5063_v8, 0.0 }
0x2399   : > { %3708 = vadd.xlane.f32.xlu1 %v3707_v9 }
0x2426   : > { %v3709_v11 = vpop.xlane.xlu1 %3708 }
0x2427   : > { %5064 = vlog2.f32 %v3709_v11 }
0x2431   : > { %v5065_v13 = vpop.eup %5064 }
0x2432   : > { %v3711_v15 = vmul.f32 0.6931472, %v5065_v13 }
0x2434   : > { %v3712_v21 = vadd.f32 %v3711_v15, %v3703_v5 }
0x2436   : > { %v3713_v17 = vsub.f32 %v3697_v2, %v3712_v21 }
0x2438   : > { %v3717_v19 = vadd.f32 %v3716_v16, %v3713_v17 }
0x243a   : > { %v3718_v22 = vsel %vm3700_vm1, %v3717_v19, -inf }
0x243b   : > { %3719 = vmax.xlane.f32.xlu0 %v3718_v22 }
0x24c8   : > { %v3720_v23 = vpop.xlane.xlu0 %3719 }
0x24c9   : > { %vm3721_vm2 = vcmp.ge.f32.partialorder %v3717_v19, %v3720_v23 }
0x24ca   : > { %v3722_v24 = vsel %vm3721_vm2, %v5242_v10, 16 }
0x24cb   : > { %v3723_v26 = vsel %vm3700_vm1, %v3722_v24, 2147483647 }
0x24cc   : > { %v3725_v20 = vshra.s32 %v3723_v26, 16  ;;  %v3724_v27 = vand.u32 65535, %v3723_v26 }
0x24ce   : > { %v3727_v40 = vcvt.s32.f32 %v3725_v20  ;;  %v3726_v29 = vcvt.s32.f32 %v3724_v27 }
0x24d0   : > { %3728 = vmin.xlane.f32.xlu1 %v3727_v40 }
0x255d   : > { %v3729_v28 = vpop.xlane.xlu1 %3728 }
0x255e   : > { %vm3730_vm5 = vcmp.eq.f32.partialorder %v3727_v40, %v3729_v28  ;;  %v3735_v37 = vcvt.f32.s32 %v3729_v28 }
0x255f   : > { %v3731_v30 = vsel %vm3730_vm5, %v3726_v29, inf }
0x2560   : > { %3732 = vmin.xlane.f32.xlu0 %v3731_v30  ;;  %v3736_v44 = vshll.u32 %v3735_v37, 16 }
0x25ed   : > { %v3733_v43 = vpop.xlane.xlu0 %3732 }
0x25ee   : > { %v3734_v45 = vcvt.f32.s32 %v3733_v43 }
0x25f0   : > { %v3737_v46 = vadd.s32 %v3736_v44, %v3734_v45 }
0x25f2   : > { %v3746_v47 = vsel %vm3745_vm6, %v3737_v46, %v3744_v41  ;;  %vm3738_vm7 = vcmp.eq.s32.totalorder %v5242_v10, %v3737_v46 }
0x25f3   : > { %3752 = vperm.xlu1 %5058, %v3746_v47   ;;  %3750 = vst.msk [vmem:[%s3749_s8] sm:$0x3] %vm3060_vm9, %v3746_v47  ;;  %v3739_v48 = vsel %vm3738_vm7, %v3713_v17, 0.0 }
0x25f4   : > { %v3740_v34 = vsel %vm3700_vm1, %v3739_v48, 0.0 }
0x25f5   : > { %3741 = vadd.xlane.f32.xlu0 %v3740_v34 }
0x2672   : > { %v3753_v0 = vpop.permute.xlu1 %3752 }
0x2673   : > { %vm3754_vm8 = vcmp.eq.s32.totalorder %v5242_v10, %v3753_v0 }
0x2674   : > { %v4116_v50 = vsel %vm3754_vm8, 1.0, %v5097_v39  ;;  %v4117_v39 = vld [vmem:[%s5968_s6] ss:$0 sm:$0xff] }
0x2675   : > { %4662 = vmatmul.mubr.msk.f32.vlgmr.msra.gmra.mrb[2].mxu0 %vm106_vm0, %v4116_v50 }
0x2682   : > { %v3742_v25 = vpop.xlane.xlu0 %3741 }
0x2683   : > { %3748 = vst.msk [vmem:[%s3747_s25] sm:$0x3] %vm3060_vm9, %v3742_v25 }
0x2748   : > { %v3835_v53 = vpop.f32.mrb[2].mxu0 }
0x2749   : > { %v3836_v61 = vadd.f32 %v4117_v39, %v3835_v53  ;;  %v4663_v12 = vpop.f32.mrb[3].mxu0 }
0x274b   : > { %v3839_v55 = vmax.f32 %v3836_v61, 0.0 }
0x274d   : > { %4673 = vmatmul.mubr.msk.f32.vlgmr.msra.gmra.mrb[2].mxu1 %vm201_vm4, %v3839_v55 }
0x281d   :  { %3171 = sbr.rel (!%p3169_p2) target bundleno = 6763 (0x1a6b), region = 159 }
0x2820   : > { %v3920_v1 = vpop.f32.mrb[2].mxu1 }
0x2821   : > { %v3921_v58 = vadd.f32 %v4119_v56, %v3920_v1  ;;  %v4674_v49 = vpop.f32.mrb[3].mxu1 }
0x2823   : > { %3925 = vst [vmem:[%s3924_s27] sm:$0x3] %v3921_v58 }

</bundles_post_ra>
